<compile_context>
chip_gen: v6e
topology: v6e:2x2x1
jax: 0.10.0
libtpu: 0.0.40
codegen_flags: <defaults>
</compile_context>

<pallas_src>
import functools

import jax
import jax.numpy as jnp
from jax.experimental import pallas as pl
from jax.experimental.pallas import tpu as pltpu


def _const_spec(block_shape):
    # Grid-invariant operand: constant index map + single buffer (no double-buffering).
    nd = len(block_shape)
    return pl.BlockSpec(block_shape, lambda *_: (0,) * nd,
                        pipeline_mode=pl.Buffered(1))


# ----------------------------- fused kernel ----------------------------------

def _fused_mha_kernel(x_ref, wqkv_ref, bqkv_ref, bias_ref, wo_ref, p_ref,
                      o_ref, qkv_scr, *, n_sub, dh, mxu_dtype, eps, approx_recip):
    """One head per grid step: QKV proj + masked softmax attention + fc + residual + LN."""
    f32 = jnp.float32
    E = n_sub * dh
    xc = x_ref[...]                                                    # (rph, E) f32
    rph = xc.shape[0]

    # 1) fused QKV projection: one lane-dense (rph, 3E) MXU matmul.
    #    (1/sqrt(dh) is pre-folded into the Q columns of wqkv / bqkv.)
    acc = jnp.dot(xc.astype(mxu_dtype), wqkv_ref[...],
                  preferred_element_type=f32) + bqkv_ref[...]
    qkv_scr[...] = acc

    # 2) attention in the module's raw-view layout, decomposed into dh-wide sub-slices:
    #    head token t = n_sub*i + a  <->  (row i of this x block, column slice a).
    #    All tiles keep their natural (sublane, lane) shapes -- no in-kernel reshapes.
    k_sub = [qkv_scr[:, E + b * dh:E + (b + 1) * dh].astype(mxu_dtype)
             for b in range(n_sub)]
    v_sub = [qkv_scr[:, 2 * E + b * dh:2 * E + (b + 1) * dh].astype(mxu_dtype)
             for b in range(n_sub)]

    proj = jnp.zeros((rph, E), f32)
    for a in range(n_sub):
        q_a = qkv_scr[:, a * dh:(a + 1) * dh].astype(mxu_dtype)       # (rph, dh)
        # score blocks against every key sub-slice + additive mask bias
        s_b = [jax.lax.dot_general(q_a, k_sub[b], (((1,), (1,)), ((), ())),
                                   preferred_element_type=f32) + bias_ref[a, b]
               for b in range(n_sub)]
        # softmax over the full key axis (union of the n_sub blocks)
        m = s_b[0].max(axis=-1, keepdims=True)
        for b in range(1, n_sub):
            m = jnp.maximum(m, s_b[b].max(axis=-1, keepdims=True))
        p_b = [jnp.exp(s - m) for s in s_b]
        denom = p_b[0].sum(axis=-1, keepdims=True)
        for b in range(1, n_sub):
            denom = denom + p_b[b].sum(axis=-1, keepdims=True)
        inv = pl.reciprocal(denom, approx=True) if approx_recip else 1.0 / denom
        # attention output of sub-slice a, folded straight into the fc matmul
        attn_a = jnp.dot(p_b[0].astype(mxu_dtype), v_sub[0],
                         preferred_element_type=f32)
        for b in range(1, n_sub):
            attn_a = attn_a + jnp.dot(p_b[b].astype(mxu_dtype), v_sub[b],
                                      preferred_element_type=f32)
        attn_a = attn_a * inv                                          # (rph, dh) f32
        proj = proj + jnp.dot(attn_a.astype(mxu_dtype),
                              wo_ref[a * dh:(a + 1) * dh, :],
                              preferred_element_type=f32)

    # 3) fc bias + residual + two-pass LayerNorm (p_ref rows: [bo, gamma, beta]).
    out = proj + p_ref[0:1, :] + xc
    mean = jnp.mean(out, axis=-1, keepdims=True)
    cen = out - mean
    var = jnp.mean(cen * cen, axis=-1, keepdims=True)
    y = cen * jax.lax.rsqrt(var + eps)
    o_ref[...] = (y * p_ref[1:2, :] + p_ref[2:3, :]).astype(o_ref.dtype)


# ----------------------------- wrappers ----------------------------------------

def prepare_params(wq, bq, wk, bk, wv, bv, wo, bo, gamma, beta, n_heads,
                   mxu_dtype=jnp.bfloat16):
    """One-time packing of the module weights into the kernel's fused layout.

    Weights are (in_features, out_features), i.e. transposed vs nn.Linear storage,
    so the kernel computes x @ W + b exactly like the PyTorch module.
    """
    f32 = jnp.float32
    E = wq.shape[0]
    dh = E // n_heads
    scale = 1.0 / (dh ** 0.5)
    w_qkv = jnp.concatenate([wq.astype(f32) * scale, wk, wv], axis=1).astype(mxu_dtype)
    b_qkv = jnp.concatenate([bq.astype(f32) * scale, bk, bv]).reshape(1, 3 * E).astype(f32)
    ln = jnp.stack([bo, gamma, beta]).astype(f32)
    return dict(w_qkv=w_qkv, b_qkv=b_qkv, wo=wo.astype(mxu_dtype), ln=ln,
                n_heads=n_heads, mxu_dtype=mxu_dtype)


def multi_head_attention(x, pad_index, params):
    """x: (S, E) float32; pad_index: (S, S)-broadcastable {0,1} mask (1 = masked).
    Returns LayerNorm(fc(attention(x)) + x), shape (S, E) float32."""
    f32 = jnp.float32
    x = x.astype(f32)
    S, E = x.shape
    n_heads = params["n_heads"]
    mxu_dtype = params["mxu_dtype"]
    assert E % n_heads == 0, "emb_length must be divisible by n_heads"
    dh = E // n_heads
    n_sub = E // dh                       # == n_heads for the module's raw head view
    assert S % n_heads == 0 and (S // n_heads) % 8 == 0, (
        "fused kernel needs seq_len % (8 * n_heads) == 0")
    rph = S // n_heads                    # x rows (and output rows) per head

    # Additive mask bias, rearranged once into per-(a, b) sub-slice blocks:
    # bias[a, b, i, j] = -1e9 if pad_index[n_sub*i + a, n_sub*j + b] == 1 else 0.
    pad = jnp.broadcast_to(pad_index, (S, S))
    bias = jnp.where(pad == 1, -1e9, 0.0).astype(f32)
    bias = bias.reshape(rph, n_sub, rph, n_sub).transpose(1, 3, 0, 2)

    # Rough VMEM budget guard (matters on v7x's smaller VMEM once S grows).
    isz = jnp.dtype(mxu_dtype).itemsize
    vmem_est = (4 * rph * E * 4                 # x + out, double-buffered, f32
                + 3 * E * E * isz               # fused qkv weight
                + E * E * isz                   # fc weight
                + S * S * 4                     # mask bias
                + rph * 3 * E * 4               # qkv scratch (f32)
                + 3 * n_sub * rph * rph * 4)    # live score/prob blocks for one sub-slice
    assert vmem_est < 32 * 1024 * 1024, (
        "attention tile too large for VMEM; needs flash-style KV tiling")

    kernel = functools.partial(
        _fused_mha_kernel, n_sub=n_sub, dh=dh, mxu_dtype=mxu_dtype, eps=1e-5,
        approx_recip=(mxu_dtype != jnp.float32))

    return pl.pallas_call(
        kernel,
        out_shape=jax.ShapeDtypeStruct((S, E), f32),
        grid=(n_heads,),
        in_specs=[
            pl.BlockSpec((rph, E), lambda h: (h, 0)),        # x rows of this head
            _const_spec((E, 3 * E)),                         # fused QKV weight
            _const_spec((1, 3 * E)),                         # fused QKV bias
            _const_spec((n_sub, n_sub, rph, rph)),           # additive mask bias
            _const_spec((E, E)),                             # fc weight
            _const_spec((3, E)),                             # [fc bias, gamma, beta]
        ],
        out_specs=pl.BlockSpec((rph, E), lambda h: (h, 0)),
        scratch_shapes=[pltpu.VMEM((rph, 3 * E), f32)],
        compiler_params=pltpu.CompilerParams(dimension_semantics=("parallel",)),
    )(x, params["w_qkv"], params["b_qkv"], bias, params["wo"], params["ln"])


# ----------------------------- reference --------------------------------------

def _reference(x, wq, bq, wk, bk, wv, bv, wo, bo, gamma, beta, pad_index, n_heads,
               matmul_dtype=None):
    """Pure-JAX replica of Multi_Head_Attention.forward (optionally with the same
    low-precision-operand / f32-accumulation matmuls the kernel uses)."""
    def mm(a, b, dims=None):
        if matmul_dtype is not None:
            a, b = a.astype(matmul_dtype), b.astype(matmul_dtype)
        if dims is None:
            return jnp.dot(a, b, preferred_element_type=jnp.float32)
        return jax.lax.dot_general(a, b, dims, preferred_element_type=jnp.float32)

    S, E = x.shape
    dh = E // n_heads
    q = (mm(x, wq) + bq).reshape(n_heads, -1, dh)
    k = (mm(x, wk) + bk).reshape(n_heads, -1, dh)
    v = (mm(x, wv) + bv).reshape(n_heads, -1, dh)
    scores = mm(q, k, (((2,), (2,)), ((0,), (0,)))) / (dh ** 0.5)
    scores = jnp.where(pad_index == 1, -1e9, scores)
    p = jax.nn.softmax(scores, axis=-1)
    attn = mm(p, v, (((2,), (1,)), ((0,), (0,)))).reshape(-1, n_heads * dh)
    out = mm(attn, wo) + bo + x
    mean = jnp.mean(out, axis=-1, keepdims=True)
    var = jnp.mean((out - mean) ** 2, axis=-1, keepdims=True)
    return (out - mean) / jnp.sqrt(var + 1e-5) * gamma + beta


if __name__ == "__main__":
    S, E, N_HEADS = 128, 128, 4           # seq_len, emb_length, n_heads (dim_head = 32)

    key = jax.random.PRNGKey(0)
    kx, kq, kbq, kk, kbk, kv, kbv, ko, kbo = jax.random.split(key, 9)
    x = jax.random.normal(kx, (S, E), jnp.float32)

    lim = 1.0 / (E ** 0.5)                # PyTorch nn.Linear uniform init bound
    wq = jax.random.uniform(kq, (E, E), jnp.float32, -lim, lim)
    bq = jax.random.uniform(kbq, (E,), jnp.float32, -lim, lim)
    wk = jax.random.uniform(kk, (E, E), jnp.float32, -lim, lim)
    bk = jax.random.uniform(kbk, (E,), jnp.float32, -lim, lim)
    wv = jax.random.uniform(kv, (E, E), jnp.float32, -lim, lim)
    bv = jax.random.uniform(kbv, (E,), jnp.float32, -lim, lim)
    wo = jax.random.uniform(ko, (E, E), jnp.float32, -lim, lim)
    bo = jax.random.uniform(kbo, (E,), jnp.float32, -lim, lim)
    gamma = jnp.ones((E,), jnp.float32)   # LayerNorm weight init
    beta = jnp.zeros((E,), jnp.float32)   # LayerNorm bias init

    # pad_index == 1 marks masked key positions (last 16 key slots are padding).
    key_is_pad = jnp.arange(S) >= (S - 16)
    pad_index = jnp.broadcast_to(key_is_pad[None, :], (S, S)).astype(jnp.int32)

    args = (wq, bq, wk, bk, wv, bv, wo, bo, gamma, beta)

    # f32 MXU path: tight check against the pure-JAX reference.
    params_f32 = prepare_params(*args, N_HEADS, mxu_dtype=jnp.float32)
    out_f32 = jax.block_until_ready(multi_head_attention(x, pad_index, params_f32))
    ref = _reference(x, *args, pad_index, N_HEADS)
    assert out_f32.shape == x.shape
    err_f32 = float(jnp.max(jnp.abs(out_f32 - ref)))
    assert err_f32 < 5e-3, f"f32 kernel mismatch vs reference: {err_f32}"

    # Default fast path: bf16 MXU operands with f32 accumulation; compared against a
    # reference applying the same operand casts (looser tolerance).
    params_bf16 = prepare_params(*args, N_HEADS, mxu_dtype=jnp.bfloat16)
    out_bf16 = jax.block_until_ready(multi_head_attention(x, pad_index, params_bf16))
    ref_bf16 = _reference(x, *args, pad_index, N_HEADS, matmul_dtype=jnp.bfloat16)
    err_bf16 = float(jnp.max(jnp.abs(out_bf16 - ref_bf16)))
    assert err_bf16 < 5e-2, f"bf16 kernel mismatch vs bf16 reference: {err_bf16}"

    print("KERNEL_OK")
</pallas_src>

<mosaic_0001>
module attributes {stable_mosaic.version = 11 : i64} {
  func.func @_fused_mha_kernel(%arg0: i32, %arg1: memref<32x128xf32, #tpu.memory_space<vmem>>, %arg2: memref<128x384xf32, #tpu.memory_space<vmem>>, %arg3: memref<1x384xf32, #tpu.memory_space<vmem>>, %arg4: memref<4x4x32x32xf32, #tpu.memory_space<vmem>>, %arg5: memref<128x128xf32, #tpu.memory_space<vmem>>, %arg6: memref<3x128xf32, #tpu.memory_space<vmem>>, %arg7: memref<32x128xf32, #tpu.memory_space<vmem>>, %arg8: memref<32x384xf32, #tpu.memory_space<vmem>>) attributes {dimension_semantics = [#tpu.dimension_semantics<parallel>], iteration_bounds = array<i64: 4>, scalar_prefetch = 0 : i64, scratch_operands = 1 : i64, tpu.core_type = #tpu.core_type<tc>, window_params = [{transform_indices = @transform_0, window_bounds = array<i64: 32, 128>}, {pipeline_mode = #tpu.pipeline_mode<synchronous>, transform_indices = @transform_1, window_bounds = array<i64: 128, 384>}, {pipeline_mode = #tpu.pipeline_mode<synchronous>, transform_indices = @transform_2, window_bounds = array<i64: 1, 384>}, {pipeline_mode = #tpu.pipeline_mode<synchronous>, transform_indices = @transform_3, window_bounds = array<i64: 4, 4, 32, 32>}, {pipeline_mode = #tpu.pipeline_mode<synchronous>, transform_indices = @transform_4, window_bounds = array<i64: 128, 128>}, {pipeline_mode = #tpu.pipeline_mode<synchronous>, transform_indices = @transform_5, window_bounds = array<i64: 3, 128>}, {transform_indices = @transform_6, window_bounds = array<i64: 32, 128>}]} {
    %c0 = arith.constant 0 : index
    %c0_0 = arith.constant 0 : index
    %0 = vector.load %arg1[%c0, %c0_0] : memref<32x128xf32, #tpu.memory_space<vmem>>, vector<32x128xf32>
    %c0_1 = arith.constant 0 : index
    %c0_2 = arith.constant 0 : index
    %1 = vector.load %arg2[%c0_1, %c0_2] : memref<128x384xf32, #tpu.memory_space<vmem>>, vector<128x384xf32>
    %cst = arith.constant dense<0.000000e+00> : vector<32x384xf32>
    %2 = tpu.matmul %0, %1, %cst {dimension_numbers = #tpu.dot_dimension_numbers<[1], [0], [0], [1], [0, 0, 1, 1], [], []>} : vector<32x128xf32>, vector<128x384xf32>, vector<32x384xf32> -> vector<32x384xf32>
    %c0_3 = arith.constant 0 : index
    %c0_4 = arith.constant 0 : index
    %3 = vector.load %arg3[%c0_3, %c0_4] : memref<1x384xf32, #tpu.memory_space<vmem>>, vector<1x384xf32>
    %4 = vector.broadcast %3 : vector<1x384xf32> to vector<32x384xf32>
    %5 = arith.addf %2, %4 : vector<32x384xf32>
    %c0_5 = arith.constant 0 : index
    %c0_6 = arith.constant 0 : index
    %6 = vector.load %arg8[%c0_5, %c0_6] : memref<32x384xf32, #tpu.memory_space<vmem>>, vector<32x384xf32>
    tpu.vector_store %arg8[%c0_5, %c0_6], %5 {strides = array<i32>} : memref<32x384xf32, #tpu.memory_space<vmem>>, vector<32x384xf32>,
    %c0_7 = arith.constant 0 : index
    %c128 = arith.constant 128 : index
    %7 = vector.load %arg8[%c0_7, %c128] : memref<32x384xf32, #tpu.memory_space<vmem>>, vector<32x32xf32>
    %c0_8 = arith.constant 0 : index
    %c160 = arith.constant 160 : index
    %8 = vector.load %arg8[%c0_8, %c160] : memref<32x384xf32, #tpu.memory_space<vmem>>, vector<32x32xf32>
    %c0_9 = arith.constant 0 : index
    %c192 = arith.constant 192 : index
    %9 = vector.load %arg8[%c0_9, %c192] : memref<32x384xf32, #tpu.memory_space<vmem>>, vector<32x32xf32>
    %c0_10 = arith.constant 0 : index
    %c224 = arith.constant 224 : index
    %10 = vector.load %arg8[%c0_10, %c224] : memref<32x384xf32, #tpu.memory_space<vmem>>, vector<32x32xf32>
    %c0_11 = arith.constant 0 : index
    %c256 = arith.constant 256 : index
    %11 = vector.load %arg8[%c0_11, %c256] : memref<32x384xf32, #tpu.memory_space<vmem>>, vector<32x32xf32>
    %c0_12 = arith.constant 0 : index
    %c288 = arith.constant 288 : index
    %12 = vector.load %arg8[%c0_12, %c288] : memref<32x384xf32, #tpu.memory_space<vmem>>, vector<32x32xf32>
    %c0_13 = arith.constant 0 : index
    %c320 = arith.constant 320 : index
    %13 = vector.load %arg8[%c0_13, %c320] : memref<32x384xf32, #tpu.memory_space<vmem>>, vector<32x32xf32>
    %c0_14 = arith.constant 0 : index
    %c352 = arith.constant 352 : index
    %14 = vector.load %arg8[%c0_14, %c352] : memref<32x384xf32, #tpu.memory_space<vmem>>, vector<32x32xf32>
    %cst_15 = arith.constant 0.000000e+00 : f32
    %15 = vector.broadcast %cst_15 : f32 to vector<32x128xf32>
    %c0_16 = arith.constant 0 : index
    %c0_17 = arith.constant 0 : index
    %16 = vector.load %arg8[%c0_16, %c0_17] : memref<32x384xf32, #tpu.memory_space<vmem>>, vector<32x32xf32>
    %cst_18 = arith.constant dense<0.000000e+00> : vector<32x32xf32>
    %17 = tpu.matmul %16, %7, %cst_18 {dimension_numbers = #tpu.dot_dimension_numbers<[1], [1], [0], [0], [0, 0, 1, 0], [], []>} : vector<32x32xf32>, vector<32x32xf32>, vector<32x32xf32> -> vector<32x32xf32>
    %c0_19 = arith.constant 0 : index
    %c0_20 = arith.constant 0 : index
    %c0_21 = arith.constant 0 : index
    %c0_22 = arith.constant 0 : index
    %18 = vector.load %arg4[%c0_19, %c0_20, %c0_21, %c0_22] : memref<4x4x32x32xf32, #tpu.memory_space<vmem>>, vector<1x1x32x32xf32>
    %19 = vector.shape_cast %18 : vector<1x1x32x32xf32> to vector<32x32xf32>
    %20 = arith.addf %17, %19 : vector<32x32xf32>
    %cst_23 = arith.constant dense<0.000000e+00> : vector<32x32xf32>
    %21 = tpu.matmul %16, %8, %cst_23 {dimension_numbers = #tpu.dot_dimension_numbers<[1], [1], [0], [0], [0, 0, 1, 0], [], []>} : vector<32x32xf32>, vector<32x32xf32>, vector<32x32xf32> -> vector<32x32xf32>
    %c0_24 = arith.constant 0 : index
    %c1 = arith.constant 1 : index
    %c0_25 = arith.constant 0 : index
    %c0_26 = arith.constant 0 : index
    %22 = vector.load %arg4[%c0_24, %c1, %c0_25, %c0_26] : memref<4x4x32x32xf32, #tpu.memory_space<vmem>>, vector<1x1x32x32xf32>
    %23 = vector.shape_cast %22 : vector<1x1x32x32xf32> to vector<32x32xf32>
    %24 = arith.addf %21, %23 : vector<32x32xf32>
    %cst_27 = arith.constant dense<0.000000e+00> : vector<32x32xf32>
    %25 = tpu.matmul %16, %9, %cst_27 {dimension_numbers = #tpu.dot_dimension_numbers<[1], [1], [0], [0], [0, 0, 1, 0], [], []>} : vector<32x32xf32>, vector<32x32xf32>, vector<32x32xf32> -> vector<32x32xf32>
    %c0_28 = arith.constant 0 : index
    %c2 = arith.constant 2 : index
    %c0_29 = arith.constant 0 : index
    %c0_30 = arith.constant 0 : index
    %26 = vector.load %arg4[%c0_28, %c2, %c0_29, %c0_30] : memref<4x4x32x32xf32, #tpu.memory_space<vmem>>, vector<1x1x32x32xf32>
    %27 = vector.shape_cast %26 : vector<1x1x32x32xf32> to vector<32x32xf32>
    %28 = arith.addf %25, %27 : vector<32x32xf32>
    %cst_31 = arith.constant dense<0.000000e+00> : vector<32x32xf32>
    %29 = tpu.matmul %16, %10, %cst_31 {dimension_numbers = #tpu.dot_dimension_numbers<[1], [1], [0], [0], [0, 0, 1, 0], [], []>} : vector<32x32xf32>, vector<32x32xf32>, vector<32x32xf32> -> vector<32x32xf32>
    %c0_32 = arith.constant 0 : index
    %c3 = arith.constant 3 : index
    %c0_33 = arith.constant 0 : index
    %c0_34 = arith.constant 0 : index
    %30 = vector.load %arg4[%c0_32, %c3, %c0_33, %c0_34] : memref<4x4x32x32xf32, #tpu.memory_space<vmem>>, vector<1x1x32x32xf32>
    %31 = vector.shape_cast %30 : vector<1x1x32x32xf32> to vector<32x32xf32>
    %32 = arith.addf %29, %31 : vector<32x32xf32>
    %cst_35 = arith.constant dense<0xFF800000> : vector<32xf32>
    %33 = vector.multi_reduction <maximumf>, %20, %cst_35 [1] : vector<32x32xf32> to vector<32xf32>
    %34 = vector.shape_cast %33 : vector<32xf32> to vector<32x1xf32>
    %cst_36 = arith.constant dense<0xFF800000> : vector<32xf32>
    %35 = vector.multi_reduction <maximumf>, %24, %cst_36 [1] : vector<32x32xf32> to vector<32xf32>
    %36 = vector.shape_cast %35 : vector<32xf32> to vector<32x1xf32>
    %37 = arith.maximumf %34, %36 : vector<32x1xf32>
    %cst_37 = arith.constant dense<0xFF800000> : vector<32xf32>
    %38 = vector.multi_reduction <maximumf>, %28, %cst_37 [1] : vector<32x32xf32> to vector<32xf32>
    %39 = vector.shape_cast %38 : vector<32xf32> to vector<32x1xf32>
    %40 = arith.maximumf %37, %39 : vector<32x1xf32>
    %cst_38 = arith.constant dense<0xFF800000> : vector<32xf32>
    %41 = vector.multi_reduction <maximumf>, %32, %cst_38 [1] : vector<32x32xf32> to vector<32xf32>
    %42 = vector.shape_cast %41 : vector<32xf32> to vector<32x1xf32>
    %43 = arith.maximumf %40, %42 : vector<32x1xf32>
    %44 = vector.broadcast %43 : vector<32x1xf32> to vector<32x32xf32>
    %45 = arith.subf %20, %44 : vector<32x32xf32>
    %46 = math.exp %45 : vector<32x32xf32>
    %47 = vector.broadcast %43 : vector<32x1xf32> to vector<32x32xf32>
    %48 = arith.subf %24, %47 : vector<32x32xf32>
    %49 = math.exp %48 : vector<32x32xf32>
    %50 = vector.broadcast %43 : vector<32x1xf32> to vector<32x32xf32>
    %51 = arith.subf %28, %50 : vector<32x32xf32>
    %52 = math.exp %51 : vector<32x32xf32>
    %53 = vector.broadcast %43 : vector<32x1xf32> to vector<32x32xf32>
    %54 = arith.subf %32, %53 : vector<32x32xf32>
    %55 = math.exp %54 : vector<32x32xf32>
    %cst_39 = arith.constant dense<0.000000e+00> : vector<32xf32>
    %56 = vector.multi_reduction <add>, %46, %cst_39 [1] : vector<32x32xf32> to vector<32xf32>
    %57 = vector.shape_cast %56 : vector<32xf32> to vector<32x1xf32>
    %cst_40 = arith.constant dense<0.000000e+00> : vector<32xf32>
    %58 = vector.multi_reduction <add>, %49, %cst_40 [1] : vector<32x32xf32> to vector<32xf32>
    %59 = vector.shape_cast %58 : vector<32xf32> to vector<32x1xf32>
    %60 = arith.addf %57, %59 : vector<32x1xf32>
    %cst_41 = arith.constant dense<0.000000e+00> : vector<32xf32>
    %61 = vector.multi_reduction <add>, %52, %cst_41 [1] : vector<32x32xf32> to vector<32xf32>
    %62 = vector.shape_cast %61 : vector<32xf32> to vector<32x1xf32>
    %63 = arith.addf %60, %62 : vector<32x1xf32>
    %cst_42 = arith.constant dense<0.000000e+00> : vector<32xf32>
    %64 = vector.multi_reduction <add>, %55, %cst_42 [1] : vector<32x32xf32> to vector<32xf32>
    %65 = vector.shape_cast %64 : vector<32xf32> to vector<32x1xf32>
    %66 = arith.addf %63, %65 : vector<32x1xf32>
    %cst_43 = arith.constant 1.000000e+00 : f32
    %67 = vector.broadcast %cst_43 : f32 to vector<32x1xf32>
    %68 = arith.divf %67, %66 : vector<32x1xf32>
    %cst_44 = arith.constant dense<0.000000e+00> : vector<32x32xf32>
    %69 = tpu.matmul %46, %11, %cst_44 {dimension_numbers = #tpu.dot_dimension_numbers<[1], [0], [0], [1], [0, 0, 1, 1], [], []>} : vector<32x32xf32>, vector<32x32xf32>, vector<32x32xf32> -> vector<32x32xf32>
    %cst_45 = arith.constant dense<0.000000e+00> : vector<32x32xf32>
    %70 = tpu.matmul %49, %12, %cst_45 {dimension_numbers = #tpu.dot_dimension_numbers<[1], [0], [0], [1], [0, 0, 1, 1], [], []>} : vector<32x32xf32>, vector<32x32xf32>, vector<32x32xf32> -> vector<32x32xf32>
    %71 = arith.addf %69, %70 : vector<32x32xf32>
    %cst_46 = arith.constant dense<0.000000e+00> : vector<32x32xf32>
    %72 = tpu.matmul %52, %13, %cst_46 {dimension_numbers = #tpu.dot_dimension_numbers<[1], [0], [0], [1], [0, 0, 1, 1], [], []>} : vector<32x32xf32>, vector<32x32xf32>, vector<32x32xf32> -> vector<32x32xf32>
    %73 = arith.addf %71, %72 : vector<32x32xf32>
    %cst_47 = arith.constant dense<0.000000e+00> : vector<32x32xf32>
    %74 = tpu.matmul %55, %14, %cst_47 {dimension_numbers = #tpu.dot_dimension_numbers<[1], [0], [0], [1], [0, 0, 1, 1], [], []>} : vector<32x32xf32>, vector<32x32xf32>, vector<32x32xf32> -> vector<32x32xf32>
    %75 = arith.addf %73, %74 : vector<32x32xf32>
    %76 = vector.broadcast %68 : vector<32x1xf32> to vector<32x32xf32>
    %77 = arith.mulf %75, %76 : vector<32x32xf32>
    %c0_48 = arith.constant 0 : index
    %c0_49 = arith.constant 0 : index
    %78 = vector.load %arg5[%c0_48, %c0_49] : memref<128x128xf32, #tpu.memory_space<vmem>>, vector<32x128xf32>
    %cst_50 = arith.constant dense<0.000000e+00> : vector<32x128xf32>
    %79 = tpu.matmul %77, %78, %cst_50 {dimension_numbers = #tpu.dot_dimension_numbers<[1], [0], [0], [1], [0, 0, 1, 1], [], []>} : vector<32x32xf32>, vector<32x128xf32>, vector<32x128xf32> -> vector<32x128xf32>
    %80 = arith.addf %15, %79 : vector<32x128xf32>
    %c0_51 = arith.constant 0 : index
    %c32 = arith.constant 32 : index
    %81 = vector.load %arg8[%c0_51, %c32] : memref<32x384xf32, #tpu.memory_space<vmem>>, vector<32x32xf32>
    %cst_52 = arith.constant dense<0.000000e+00> : vector<32x32xf32>
    %82 = tpu.matmul %81, %7, %cst_52 {dimension_numbers = #tpu.dot_dimension_numbers<[1], [1], [0], [0], [0, 0, 1, 0], [], []>} : vector<32x32xf32>, vector<32x32xf32>, vector<32x32xf32> -> vector<32x32xf32>
    %c1_53 = arith.constant 1 : index
    %c0_54 = arith.constant 0 : index
    %c0_55 = arith.constant 0 : index
    %c0_56 = arith.constant 0 : index
    %83 = vector.load %arg4[%c1_53, %c0_54, %c0_55, %c0_56] : memref<4x4x32x32xf32, #tpu.memory_space<vmem>>, vector<1x1x32x32xf32>
    %84 = vector.shape_cast %83 : vector<1x1x32x32xf32> to vector<32x32xf32>
    %85 = arith.addf %82, %84 : vector<32x32xf32>
    %cst_57 = arith.constant dense<0.000000e+00> : vector<32x32xf32>
    %86 = tpu.matmul %81, %8, %cst_57 {dimension_numbers = #tpu.dot_dimension_numbers<[1], [1], [0], [0], [0, 0, 1, 0], [], []>} : vector<32x32xf32>, vector<32x32xf32>, vector<32x32xf32> -> vector<32x32xf32>
    %c1_58 = arith.constant 1 : index
    %c1_59 = arith.constant 1 : index
    %c0_60 = arith.constant 0 : index
    %c0_61 = arith.constant 0 : index
    %87 = vector.load %arg4[%c1_58, %c1_59, %c0_60, %c0_61] : memref<4x4x32x32xf32, #tpu.memory_space<vmem>>, vector<1x1x32x32xf32>
    %88 = vector.shape_cast %87 : vector<1x1x32x32xf32> to vector<32x32xf32>
    %89 = arith.addf %86, %88 : vector<32x32xf32>
    %cst_62 = arith.constant dense<0.000000e+00> : vector<32x32xf32>
    %90 = tpu.matmul %81, %9, %cst_62 {dimension_numbers = #tpu.dot_dimension_numbers<[1], [1], [0], [0], [0, 0, 1, 0], [], []>} : vector<32x32xf32>, vector<32x32xf32>, vector<32x32xf32> -> vector<32x32xf32>
    %c1_63 = arith.constant 1 : index
    %c2_64 = arith.constant 2 : index
    %c0_65 = arith.constant 0 : index
    %c0_66 = arith.constant 0 : index
    %91 = vector.load %arg4[%c1_63, %c2_64, %c0_65, %c0_66] : memref<4x4x32x32xf32, #tpu.memory_space<vmem>>, vector<1x1x32x32xf32>
    %92 = vector.shape_cast %91 : vector<1x1x32x32xf32> to vector<32x32xf32>
    %93 = arith.addf %90, %92 : vector<32x32xf32>
    %cst_67 = arith.constant dense<0.000000e+00> : vector<32x32xf32>
    %94 = tpu.matmul %81, %10, %cst_67 {dimension_numbers = #tpu.dot_dimension_numbers<[1], [1], [0], [0], [0, 0, 1, 0], [], []>} : vector<32x32xf32>, vector<32x32xf32>, vector<32x32xf32> -> vector<32x32xf32>
    %c1_68 = arith.constant 1 : index
    %c3_69 = arith.constant 3 : index
    %c0_70 = arith.constant 0 : index
    %c0_71 = arith.constant 0 : index
    %95 = vector.load %arg4[%c1_68, %c3_69, %c0_70, %c0_71] : memref<4x4x32x32xf32, #tpu.memory_space<vmem>>, vector<1x1x32x32xf32>
    %96 = vector.shape_cast %95 : vector<1x1x32x32xf32> to vector<32x32xf32>
    %97 = arith.addf %94, %96 : vector<32x32xf32>
    %cst_72 = arith.constant dense<0xFF800000> : vector<32xf32>
    %98 = vector.multi_reduction <maximumf>, %85, %cst_72 [1] : vector<32x32xf32> to vector<32xf32>
    %99 = vector.shape_cast %98 : vector<32xf32> to vector<32x1xf32>
    %cst_73 = arith.constant dense<0xFF800000> : vector<32xf32>
    %100 = vector.multi_reduction <maximumf>, %89, %cst_73 [1] : vector<32x32xf32> to vector<32xf32>
    %101 = vector.shape_cast %100 : vector<32xf32> to vector<32x1xf32>
    %102 = arith.maximumf %99, %101 : vector<32x1xf32>
    %cst_74 = arith.constant dense<0xFF800000> : vector<32xf32>
    %103 = vector.multi_reduction <maximumf>, %93, %cst_74 [1] : vector<32x32xf32> to vector<32xf32>
    %104 = vector.shape_cast %103 : vector<32xf32> to vector<32x1xf32>
    %105 = arith.maximumf %102, %104 : vector<32x1xf32>
    %cst_75 = arith.constant dense<0xFF800000> : vector<32xf32>
    %106 = vector.multi_reduction <maximumf>, %97, %cst_75 [1] : vector<32x32xf32> to vector<32xf32>
    %107 = vector.shape_cast %106 : vector<32xf32> to vector<32x1xf32>
    %108 = arith.maximumf %105, %107 : vector<32x1xf32>
    %109 = vector.broadcast %108 : vector<32x1xf32> to vector<32x32xf32>
    %110 = arith.subf %85, %109 : vector<32x32xf32>
    %111 = math.exp %110 : vector<32x32xf32>
    %112 = vector.broadcast %108 : vector<32x1xf32> to vector<32x32xf32>
    %113 = arith.subf %89, %112 : vector<32x32xf32>
    %114 = math.exp %113 : vector<32x32xf32>
    %115 = vector.broadcast %108 : vector<32x1xf32> to vector<32x32xf32>
    %116 = arith.subf %93, %115 : vector<32x32xf32>
    %117 = math.exp %116 : vector<32x32xf32>
    %118 = vector.broadcast %108 : vector<32x1xf32> to vector<32x32xf32>
    %119 = arith.subf %97, %118 : vector<32x32xf32>
    %120 = math.exp %119 : vector<32x32xf32>
    %cst_76 = arith.constant dense<0.000000e+00> : vector<32xf32>
    %121 = vector.multi_reduction <add>, %111, %cst_76 [1] : vector<32x32xf32> to vector<32xf32>
    %122 = vector.shape_cast %121 : vector<32xf32> to vector<32x1xf32>
    %cst_77 = arith.constant dense<0.000000e+00> : vector<32xf32>
    %123 = vector.multi_reduction <add>, %114, %cst_77 [1] : vector<32x32xf32> to vector<32xf32>
    %124 = vector.shape_cast %123 : vector<32xf32> to vector<32x1xf32>
    %125 = arith.addf %122, %124 : vector<32x1xf32>
    %cst_78 = arith.constant dense<0.000000e+00> : vector<32xf32>
    %126 = vector.multi_reduction <add>, %117, %cst_78 [1] : vector<32x32xf32> to vector<32xf32>
    %127 = vector.shape_cast %126 : vector<32xf32> to vector<32x1xf32>
    %128 = arith.addf %125, %127 : vector<32x1xf32>
    %cst_79 = arith.constant dense<0.000000e+00> : vector<32xf32>
    %129 = vector.multi_reduction <add>, %120, %cst_79 [1] : vector<32x32xf32> to vector<32xf32>
    %130 = vector.shape_cast %129 : vector<32xf32> to vector<32x1xf32>
    %131 = arith.addf %128, %130 : vector<32x1xf32>
    %cst_80 = arith.constant 1.000000e+00 : f32
    %132 = vector.broadcast %cst_80 : f32 to vector<32x1xf32>
    %133 = arith.divf %132, %131 : vector<32x1xf32>
    %cst_81 = arith.constant dense<0.000000e+00> : vector<32x32xf32>
    %134 = tpu.matmul %111, %11, %cst_81 {dimension_numbers = #tpu.dot_dimension_numbers<[1], [0], [0], [1], [0, 0, 1, 1], [], []>} : vector<32x32xf32>, vector<32x32xf32>, vector<32x32xf32> -> vector<32x32xf32>
    %cst_82 = arith.constant dense<0.000000e+00> : vector<32x32xf32>
    %135 = tpu.matmul %114, %12, %cst_82 {dimension_numbers = #tpu.dot_dimension_numbers<[1], [0], [0], [1], [0, 0, 1, 1], [], []>} : vector<32x32xf32>, vector<32x32xf32>, vector<32x32xf32> -> vector<32x32xf32>
    %136 = arith.addf %134, %135 : vector<32x32xf32>
    %cst_83 = arith.constant dense<0.000000e+00> : vector<32x32xf32>
    %137 = tpu.matmul %117, %13, %cst_83 {dimension_numbers = #tpu.dot_dimension_numbers<[1], [0], [0], [1], [0, 0, 1, 1], [], []>} : vector<32x32xf32>, vector<32x32xf32>, vector<32x32xf32> -> vector<32x32xf32>
    %138 = arith.addf %136, %137 : vector<32x32xf32>
    %cst_84 = arith.constant dense<0.000000e+00> : vector<32x32xf32>
    %139 = tpu.matmul %120, %14, %cst_84 {dimension_numbers = #tpu.dot_dimension_numbers<[1], [0], [0], [1], [0, 0, 1, 1], [], []>} : vector<32x32xf32>, vector<32x32xf32>, vector<32x32xf32> -> vector<32x32xf32>
    %140 = arith.addf %138, %139 : vector<32x32xf32>
    %141 = vector.broadcast %133 : vector<32x1xf32> to vector<32x32xf32>
    %142 = arith.mulf %140, %141 : vector<32x32xf32>
    %c32_85 = arith.constant 32 : index
    %c0_86 = arith.constant 0 : index
    %143 = vector.load %arg5[%c32_85, %c0_86] : memref<128x128xf32, #tpu.memory_space<vmem>>, vector<32x128xf32>
    %cst_87 = arith.constant dense<0.000000e+00> : vector<32x128xf32>
    %144 = tpu.matmul %142, %143, %cst_87 {dimension_numbers = #tpu.dot_dimension_numbers<[1], [0], [0], [1], [0, 0, 1, 1], [], []>} : vector<32x32xf32>, vector<32x128xf32>, vector<32x128xf32> -> vector<32x128xf32>
    %145 = arith.addf %80, %144 : vector<32x128xf32>
    %c0_88 = arith.constant 0 : index
    %c64 = arith.constant 64 : index
    %146 = vector.load %arg8[%c0_88, %c64] : memref<32x384xf32, #tpu.memory_space<vmem>>, vector<32x32xf32>
    %cst_89 = arith.constant dense<0.000000e+00> : vector<32x32xf32>
    %147 = tpu.matmul %146, %7, %cst_89 {dimension_numbers = #tpu.dot_dimension_numbers<[1], [1], [0], [0], [0, 0, 1, 0], [], []>} : vector<32x32xf32>, vector<32x32xf32>, vector<32x32xf32> -> vector<32x32xf32>
    %c2_90 = arith.constant 2 : index
    %c0_91 = arith.constant 0 : index
    %c0_92 = arith.constant 0 : index
    %c0_93 = arith.constant 0 : index
    %148 = vector.load %arg4[%c2_90, %c0_91, %c0_92, %c0_93] : memref<4x4x32x32xf32, #tpu.memory_space<vmem>>, vector<1x1x32x32xf32>
    %149 = vector.shape_cast %148 : vector<1x1x32x32xf32> to vector<32x32xf32>
    %150 = arith.addf %147, %149 : vector<32x32xf32>
    %cst_94 = arith.constant dense<0.000000e+00> : vector<32x32xf32>
    %151 = tpu.matmul %146, %8, %cst_94 {dimension_numbers = #tpu.dot_dimension_numbers<[1], [1], [0], [0], [0, 0, 1, 0], [], []>} : vector<32x32xf32>, vector<32x32xf32>, vector<32x32xf32> -> vector<32x32xf32>
    %c2_95 = arith.constant 2 : index
    %c1_96 = arith.constant 1 : index
    %c0_97 = arith.constant 0 : index
    %c0_98 = arith.constant 0 : index
    %152 = vector.load %arg4[%c2_95, %c1_96, %c0_97, %c0_98] : memref<4x4x32x32xf32, #tpu.memory_space<vmem>>, vector<1x1x32x32xf32>
    %153 = vector.shape_cast %152 : vector<1x1x32x32xf32> to vector<32x32xf32>
    %154 = arith.addf %151, %153 : vector<32x32xf32>
    %cst_99 = arith.constant dense<0.000000e+00> : vector<32x32xf32>
    %155 = tpu.matmul %146, %9, %cst_99 {dimension_numbers = #tpu.dot_dimension_numbers<[1], [1], [0], [0], [0, 0, 1, 0], [], []>} : vector<32x32xf32>, vector<32x32xf32>, vector<32x32xf32> -> vector<32x32xf32>
    %c2_100 = arith.constant 2 : index
    %c2_101 = arith.constant 2 : index
    %c0_102 = arith.constant 0 : index
    %c0_103 = arith.constant 0 : index
    %156 = vector.load %arg4[%c2_100, %c2_101, %c0_102, %c0_103] : memref<4x4x32x32xf32, #tpu.memory_space<vmem>>, vector<1x1x32x32xf32>
    %157 = vector.shape_cast %156 : vector<1x1x32x32xf32> to vector<32x32xf32>
    %158 = arith.addf %155, %157 : vector<32x32xf32>
    %cst_104 = arith.constant dense<0.000000e+00> : vector<32x32xf32>
    %159 = tpu.matmul %146, %10, %cst_104 {dimension_numbers = #tpu.dot_dimension_numbers<[1], [1], [0], [0], [0, 0, 1, 0], [], []>} : vector<32x32xf32>, vector<32x32xf32>, vector<32x32xf32> -> vector<32x32xf32>
    %c2_105 = arith.constant 2 : index
    %c3_106 = arith.constant 3 : index
    %c0_107 = arith.constant 0 : index
    %c0_108 = arith.constant 0 : index
    %160 = vector.load %arg4[%c2_105, %c3_106, %c0_107, %c0_108] : memref<4x4x32x32xf32, #tpu.memory_space<vmem>>, vector<1x1x32x32xf32>
    %161 = vector.shape_cast %160 : vector<1x1x32x32xf32> to vector<32x32xf32>
    %162 = arith.addf %159, %161 : vector<32x32xf32>
    %cst_109 = arith.constant dense<0xFF800000> : vector<32xf32>
    %163 = vector.multi_reduction <maximumf>, %150, %cst_109 [1] : vector<32x32xf32> to vector<32xf32>
    %164 = vector.shape_cast %163 : vector<32xf32> to vector<32x1xf32>
    %cst_110 = arith.constant dense<0xFF800000> : vector<32xf32>
    %165 = vector.multi_reduction <maximumf>, %154, %cst_110 [1] : vector<32x32xf32> to vector<32xf32>
    %166 = vector.shape_cast %165 : vector<32xf32> to vector<32x1xf32>
    %167 = arith.maximumf %164, %166 : vector<32x1xf32>
    %cst_111 = arith.constant dense<0xFF800000> : vector<32xf32>
    %168 = vector.multi_reduction <maximumf>, %158, %cst_111 [1] : vector<32x32xf32> to vector<32xf32>
    %169 = vector.shape_cast %168 : vector<32xf32> to vector<32x1xf32>
    %170 = arith.maximumf %167, %169 : vector<32x1xf32>
    %cst_112 = arith.constant dense<0xFF800000> : vector<32xf32>
    %171 = vector.multi_reduction <maximumf>, %162, %cst_112 [1] : vector<32x32xf32> to vector<32xf32>
    %172 = vector.shape_cast %171 : vector<32xf32> to vector<32x1xf32>
    %173 = arith.maximumf %170, %172 : vector<32x1xf32>
    %174 = vector.broadcast %173 : vector<32x1xf32> to vector<32x32xf32>
    %175 = arith.subf %150, %174 : vector<32x32xf32>
    %176 = math.exp %175 : vector<32x32xf32>
    %177 = vector.broadcast %173 : vector<32x1xf32> to vector<32x32xf32>
    %178 = arith.subf %154, %177 : vector<32x32xf32>
    %179 = math.exp %178 : vector<32x32xf32>
    %180 = vector.broadcast %173 : vector<32x1xf32> to vector<32x32xf32>
    %181 = arith.subf %158, %180 : vector<32x32xf32>
    %182 = math.exp %181 : vector<32x32xf32>
    %183 = vector.broadcast %173 : vector<32x1xf32> to vector<32x32xf32>
    %184 = arith.subf %162, %183 : vector<32x32xf32>
    %185 = math.exp %184 : vector<32x32xf32>
    %cst_113 = arith.constant dense<0.000000e+00> : vector<32xf32>
    %186 = vector.multi_reduction <add>, %176, %cst_113 [1] : vector<32x32xf32> to vector<32xf32>
    %187 = vector.shape_cast %186 : vector<32xf32> to vector<32x1xf32>
    %cst_114 = arith.constant dense<0.000000e+00> : vector<32xf32>
    %188 = vector.multi_reduction <add>, %179, %cst_114 [1] : vector<32x32xf32> to vector<32xf32>
    %189 = vector.shape_cast %188 : vector<32xf32> to vector<32x1xf32>
    %190 = arith.addf %187, %189 : vector<32x1xf32>
    %cst_115 = arith.constant dense<0.000000e+00> : vector<32xf32>
    %191 = vector.multi_reduction <add>, %182, %cst_115 [1] : vector<32x32xf32> to vector<32xf32>
    %192 = vector.shape_cast %191 : vector<32xf32> to vector<32x1xf32>
    %193 = arith.addf %190, %192 : vector<32x1xf32>
    %cst_116 = arith.constant dense<0.000000e+00> : vector<32xf32>
    %194 = vector.multi_reduction <add>, %185, %cst_116 [1] : vector<32x32xf32> to vector<32xf32>
    %195 = vector.shape_cast %194 : vector<32xf32> to vector<32x1xf32>
    %196 = arith.addf %193, %195 : vector<32x1xf32>
    %cst_117 = arith.constant 1.000000e+00 : f32
    %197 = vector.broadcast %cst_117 : f32 to vector<32x1xf32>
    %198 = arith.divf %197, %196 : vector<32x1xf32>
    %cst_118 = arith.constant dense<0.000000e+00> : vector<32x32xf32>
    %199 = tpu.matmul %176, %11, %cst_118 {dimension_numbers = #tpu.dot_dimension_numbers<[1], [0], [0], [1], [0, 0, 1, 1], [], []>} : vector<32x32xf32>, vector<32x32xf32>, vector<32x32xf32> -> vector<32x32xf32>
    %cst_119 = arith.constant dense<0.000000e+00> : vector<32x32xf32>
    %200 = tpu.matmul %179, %12, %cst_119 {dimension_numbers = #tpu.dot_dimension_numbers<[1], [0], [0], [1], [0, 0, 1, 1], [], []>} : vector<32x32xf32>, vector<32x32xf32>, vector<32x32xf32> -> vector<32x32xf32>
    %201 = arith.addf %199, %200 : vector<32x32xf32>
    %cst_120 = arith.constant dense<0.000000e+00> : vector<32x32xf32>
    %202 = tpu.matmul %182, %13, %cst_120 {dimension_numbers = #tpu.dot_dimension_numbers<[1], [0], [0], [1], [0, 0, 1, 1], [], []>} : vector<32x32xf32>, vector<32x32xf32>, vector<32x32xf32> -> vector<32x32xf32>
    %203 = arith.addf %201, %202 : vector<32x32xf32>
    %cst_121 = arith.constant dense<0.000000e+00> : vector<32x32xf32>
    %204 = tpu.matmul %185, %14, %cst_121 {dimension_numbers = #tpu.dot_dimension_numbers<[1], [0], [0], [1], [0, 0, 1, 1], [], []>} : vector<32x32xf32>, vector<32x32xf32>, vector<32x32xf32> -> vector<32x32xf32>
    %205 = arith.addf %203, %204 : vector<32x32xf32>
    %206 = vector.broadcast %198 : vector<32x1xf32> to vector<32x32xf32>
    %207 = arith.mulf %205, %206 : vector<32x32xf32>
    %c64_122 = arith.constant 64 : index
    %c0_123 = arith.constant 0 : index
    %208 = vector.load %arg5[%c64_122, %c0_123] : memref<128x128xf32, #tpu.memory_space<vmem>>, vector<32x128xf32>
    %cst_124 = arith.constant dense<0.000000e+00> : vector<32x128xf32>
    %209 = tpu.matmul %207, %208, %cst_124 {dimension_numbers = #tpu.dot_dimension_numbers<[1], [0], [0], [1], [0, 0, 1, 1], [], []>} : vector<32x32xf32>, vector<32x128xf32>, vector<32x128xf32> -> vector<32x128xf32>
    %210 = arith.addf %145, %209 : vector<32x128xf32>
    %c0_125 = arith.constant 0 : index
    %c96 = arith.constant 96 : index
    %211 = vector.load %arg8[%c0_125, %c96] : memref<32x384xf32, #tpu.memory_space<vmem>>, vector<32x32xf32>
    %cst_126 = arith.constant dense<0.000000e+00> : vector<32x32xf32>
    %212 = tpu.matmul %211, %7, %cst_126 {dimension_numbers = #tpu.dot_dimension_numbers<[1], [1], [0], [0], [0, 0, 1, 0], [], []>} : vector<32x32xf32>, vector<32x32xf32>, vector<32x32xf32> -> vector<32x32xf32>
    %c3_127 = arith.constant 3 : index
    %c0_128 = arith.constant 0 : index
    %c0_129 = arith.constant 0 : index
    %c0_130 = arith.constant 0 : index
    %213 = vector.load %arg4[%c3_127, %c0_128, %c0_129, %c0_130] : memref<4x4x32x32xf32, #tpu.memory_space<vmem>>, vector<1x1x32x32xf32>
    %214 = vector.shape_cast %213 : vector<1x1x32x32xf32> to vector<32x32xf32>
    %215 = arith.addf %212, %214 : vector<32x32xf32>
    %cst_131 = arith.constant dense<0.000000e+00> : vector<32x32xf32>
    %216 = tpu.matmul %211, %8, %cst_131 {dimension_numbers = #tpu.dot_dimension_numbers<[1], [1], [0], [0], [0, 0, 1, 0], [], []>} : vector<32x32xf32>, vector<32x32xf32>, vector<32x32xf32> -> vector<32x32xf32>
    %c3_132 = arith.constant 3 : index
    %c1_133 = arith.constant 1 : index
    %c0_134 = arith.constant 0 : index
    %c0_135 = arith.constant 0 : index
    %217 = vector.load %arg4[%c3_132, %c1_133, %c0_134, %c0_135] : memref<4x4x32x32xf32, #tpu.memory_space<vmem>>, vector<1x1x32x32xf32>
    %218 = vector.shape_cast %217 : vector<1x1x32x32xf32> to vector<32x32xf32>
    %219 = arith.addf %216, %218 : vector<32x32xf32>
    %cst_136 = arith.constant dense<0.000000e+00> : vector<32x32xf32>
    %220 = tpu.matmul %211, %9, %cst_136 {dimension_numbers = #tpu.dot_dimension_numbers<[1], [1], [0], [0], [0, 0, 1, 0], [], []>} : vector<32x32xf32>, vector<32x32xf32>, vector<32x32xf32> -> vector<32x32xf32>
    %c3_137 = arith.constant 3 : index
    %c2_138 = arith.constant 2 : index
    %c0_139 = arith.constant 0 : index
    %c0_140 = arith.constant 0 : index
    %221 = vector.load %arg4[%c3_137, %c2_138, %c0_139, %c0_140] : memref<4x4x32x32xf32, #tpu.memory_space<vmem>>, vector<1x1x32x32xf32>
    %222 = vector.shape_cast %221 : vector<1x1x32x32xf32> to vector<32x32xf32>
    %223 = arith.addf %220, %222 : vector<32x32xf32>
    %cst_141 = arith.constant dense<0.000000e+00> : vector<32x32xf32>
    %224 = tpu.matmul %211, %10, %cst_141 {dimension_numbers = #tpu.dot_dimension_numbers<[1], [1], [0], [0], [0, 0, 1, 0], [], []>} : vector<32x32xf32>, vector<32x32xf32>, vector<32x32xf32> -> vector<32x32xf32>
    %c3_142 = arith.constant 3 : index
    %c3_143 = arith.constant 3 : index
    %c0_144 = arith.constant 0 : index
    %c0_145 = arith.constant 0 : index
    %225 = vector.load %arg4[%c3_142, %c3_143, %c0_144, %c0_145] : memref<4x4x32x32xf32, #tpu.memory_space<vmem>>, vector<1x1x32x32xf32>
    %226 = vector.shape_cast %225 : vector<1x1x32x32xf32> to vector<32x32xf32>
    %227 = arith.addf %224, %226 : vector<32x32xf32>
    %cst_146 = arith.constant dense<0xFF800000> : vector<32xf32>
    %228 = vector.multi_reduction <maximumf>, %215, %cst_146 [1] : vector<32x32xf32> to vector<32xf32>
    %229 = vector.shape_cast %228 : vector<32xf32> to vector<32x1xf32>
    %cst_147 = arith.constant dense<0xFF800000> : vector<32xf32>
    %230 = vector.multi_reduction <maximumf>, %219, %cst_147 [1] : vector<32x32xf32> to vector<32xf32>
    %231 = vector.shape_cast %230 : vector<32xf32> to vector<32x1xf32>
    %232 = arith.maximumf %229, %231 : vector<32x1xf32>
    %cst_148 = arith.constant dense<0xFF800000> : vector<32xf32>
    %233 = vector.multi_reduction <maximumf>, %223, %cst_148 [1] : vector<32x32xf32> to vector<32xf32>
    %234 = vector.shape_cast %233 : vector<32xf32> to vector<32x1xf32>
    %235 = arith.maximumf %232, %234 : vector<32x1xf32>
    %cst_149 = arith.constant dense<0xFF800000> : vector<32xf32>
    %236 = vector.multi_reduction <maximumf>, %227, %cst_149 [1] : vector<32x32xf32> to vector<32xf32>
    %237 = vector.shape_cast %236 : vector<32xf32> to vector<32x1xf32>
    %238 = arith.maximumf %235, %237 : vector<32x1xf32>
    %239 = vector.broadcast %238 : vector<32x1xf32> to vector<32x32xf32>
    %240 = arith.subf %215, %239 : vector<32x32xf32>
    %241 = math.exp %240 : vector<32x32xf32>
    %242 = vector.broadcast %238 : vector<32x1xf32> to vector<32x32xf32>
    %243 = arith.subf %219, %242 : vector<32x32xf32>
    %244 = math.exp %243 : vector<32x32xf32>
    %245 = vector.broadcast %238 : vector<32x1xf32> to vector<32x32xf32>
    %246 = arith.subf %223, %245 : vector<32x32xf32>
    %247 = math.exp %246 : vector<32x32xf32>
    %248 = vector.broadcast %238 : vector<32x1xf32> to vector<32x32xf32>
    %249 = arith.subf %227, %248 : vector<32x32xf32>
    %250 = math.exp %249 : vector<32x32xf32>
    %cst_150 = arith.constant dense<0.000000e+00> : vector<32xf32>
    %251 = vector.multi_reduction <add>, %241, %cst_150 [1] : vector<32x32xf32> to vector<32xf32>
    %252 = vector.shape_cast %251 : vector<32xf32> to vector<32x1xf32>
    %cst_151 = arith.constant dense<0.000000e+00> : vector<32xf32>
    %253 = vector.multi_reduction <add>, %244, %cst_151 [1] : vector<32x32xf32> to vector<32xf32>
    %254 = vector.shape_cast %253 : vector<32xf32> to vector<32x1xf32>
    %255 = arith.addf %252, %254 : vector<32x1xf32>
    %cst_152 = arith.constant dense<0.000000e+00> : vector<32xf32>
    %256 = vector.multi_reduction <add>, %247, %cst_152 [1] : vector<32x32xf32> to vector<32xf32>
    %257 = vector.shape_cast %256 : vector<32xf32> to vector<32x1xf32>
    %258 = arith.addf %255, %257 : vector<32x1xf32>
    %cst_153 = arith.constant dense<0.000000e+00> : vector<32xf32>
    %259 = vector.multi_reduction <add>, %250, %cst_153 [1] : vector<32x32xf32> to vector<32xf32>
    %260 = vector.shape_cast %259 : vector<32xf32> to vector<32x1xf32>
    %261 = arith.addf %258, %260 : vector<32x1xf32>
    %cst_154 = arith.constant 1.000000e+00 : f32
    %262 = vector.broadcast %cst_154 : f32 to vector<32x1xf32>
    %263 = arith.divf %262, %261 : vector<32x1xf32>
    %cst_155 = arith.constant dense<0.000000e+00> : vector<32x32xf32>
    %264 = tpu.matmul %241, %11, %cst_155 {dimension_numbers = #tpu.dot_dimension_numbers<[1], [0], [0], [1], [0, 0, 1, 1], [], []>} : vector<32x32xf32>, vector<32x32xf32>, vector<32x32xf32> -> vector<32x32xf32>
    %cst_156 = arith.constant dense<0.000000e+00> : vector<32x32xf32>
    %265 = tpu.matmul %244, %12, %cst_156 {dimension_numbers = #tpu.dot_dimension_numbers<[1], [0], [0], [1], [0, 0, 1, 1], [], []>} : vector<32x32xf32>, vector<32x32xf32>, vector<32x32xf32> -> vector<32x32xf32>
    %266 = arith.addf %264, %265 : vector<32x32xf32>
    %cst_157 = arith.constant dense<0.000000e+00> : vector<32x32xf32>
    %267 = tpu.matmul %247, %13, %cst_157 {dimension_numbers = #tpu.dot_dimension_numbers<[1], [0], [0], [1], [0, 0, 1, 1], [], []>} : vector<32x32xf32>, vector<32x32xf32>, vector<32x32xf32> -> vector<32x32xf32>
    %268 = arith.addf %266, %267 : vector<32x32xf32>
    %cst_158 = arith.constant dense<0.000000e+00> : vector<32x32xf32>
    %269 = tpu.matmul %250, %14, %cst_158 {dimension_numbers = #tpu.dot_dimension_numbers<[1], [0], [0], [1], [0, 0, 1, 1], [], []>} : vector<32x32xf32>, vector<32x32xf32>, vector<32x32xf32> -> vector<32x32xf32>
    %270 = arith.addf %268, %269 : vector<32x32xf32>
    %271 = vector.broadcast %263 : vector<32x1xf32> to vector<32x32xf32>
    %272 = arith.mulf %270, %271 : vector<32x32xf32>
    %c96_159 = arith.constant 96 : index
    %c0_160 = arith.constant 0 : index
    %273 = vector.load %arg5[%c96_159, %c0_160] : memref<128x128xf32, #tpu.memory_space<vmem>>, vector<32x128xf32>
    %cst_161 = arith.constant dense<0.000000e+00> : vector<32x128xf32>
    %274 = tpu.matmul %272, %273, %cst_161 {dimension_numbers = #tpu.dot_dimension_numbers<[1], [0], [0], [1], [0, 0, 1, 1], [], []>} : vector<32x32xf32>, vector<32x128xf32>, vector<32x128xf32> -> vector<32x128xf32>
    %275 = arith.addf %210, %274 : vector<32x128xf32>
    %c0_162 = arith.constant 0 : index
    %c0_163 = arith.constant 0 : index
    %276 = vector.load %arg6[%c0_162, %c0_163] : memref<3x128xf32, #tpu.memory_space<vmem>>, vector<1x128xf32>
    %277 = vector.broadcast %276 : vector<1x128xf32> to vector<32x128xf32>
    %278 = arith.addf %275, %277 : vector<32x128xf32>
    %279 = arith.addf %278, %0 : vector<32x128xf32>
    %cst_164 = arith.constant dense<0.000000e+00> : vector<32xf32>
    %280 = vector.multi_reduction <add>, %279, %cst_164 [1] : vector<32x128xf32> to vector<32xf32>
    %281 = vector.shape_cast %280 : vector<32xf32> to vector<32x1xf32>
    %cst_165 = arith.constant 1.280000e+02 : f32
    %282 = vector.broadcast %cst_165 : f32 to vector<32x1xf32>
    %283 = arith.divf %281, %282 : vector<32x1xf32>
    %284 = vector.broadcast %283 : vector<32x1xf32> to vector<32x128xf32>
    %285 = arith.subf %279, %284 : vector<32x128xf32>
    %286 = arith.mulf %285, %285 : vector<32x128xf32>
    %cst_166 = arith.constant dense<0.000000e+00> : vector<32xf32>
    %287 = vector.multi_reduction <add>, %286, %cst_166 [1] : vector<32x128xf32> to vector<32xf32>
    %288 = vector.shape_cast %287 : vector<32xf32> to vector<32x1xf32>
    %cst_167 = arith.constant 1.280000e+02 : f32
    %289 = vector.broadcast %cst_167 : f32 to vector<32x1xf32>
    %290 = arith.divf %288, %289 : vector<32x1xf32>
    %cst_168 = arith.constant 9.99999974E-6 : f32
    %291 = vector.broadcast %cst_168 : f32 to vector<32x1xf32>
    %292 = arith.addf %290, %291 : vector<32x1xf32>
    %293 = math.rsqrt %292 : vector<32x1xf32>
    %294 = vector.broadcast %293 : vector<32x1xf32> to vector<32x128xf32>
    %295 = arith.mulf %285, %294 : vector<32x128xf32>
    %c1_169 = arith.constant 1 : index
    %c0_170 = arith.constant 0 : index
    %296 = vector.load %arg6[%c1_169, %c0_170] : memref<3x128xf32, #tpu.memory_space<vmem>>, vector<1x128xf32>
    %297 = vector.broadcast %296 : vector<1x128xf32> to vector<32x128xf32>
    %298 = arith.mulf %295, %297 : vector<32x128xf32>
    %c2_171 = arith.constant 2 : index
    %c0_172 = arith.constant 0 : index
    %299 = vector.load %arg6[%c2_171, %c0_172] : memref<3x128xf32, #tpu.memory_space<vmem>>, vector<1x128xf32>
    %300 = vector.broadcast %299 : vector<1x128xf32> to vector<32x128xf32>
    %301 = arith.addf %298, %300 : vector<32x128xf32>
    %c0_173 = arith.constant 0 : index
    %c0_174 = arith.constant 0 : index
    %302 = vector.load %arg7[%c0_173, %c0_174] : memref<32x128xf32, #tpu.memory_space<vmem>>, vector<32x128xf32>
    tpu.vector_store %arg7[%c0_173, %c0_174], %301 {strides = array<i32>} : memref<32x128xf32, #tpu.memory_space<vmem>>, vector<32x128xf32>,
    return
  }
  func.func @transform_0(%arg0: i32) -> (i32, i32) {
    %c0_i32 = arith.constant 0 : i32
    %c0_i32_0 = arith.constant 0 : i32
    return %arg0, %c0_i32 : i32, i32
  }
  func.func @transform_1(%arg0: i32) -> (i32, i32) {
    %c0_i32 = arith.constant 0 : i32
    %c0_i32_0 = arith.constant 0 : i32
    %c0_i32_1 = arith.constant 0 : i32
    return %c0_i32, %c0_i32_0 : i32, i32
  }
  func.func @transform_2(%arg0: i32) -> (i32, i32) {
    %c0_i32 = arith.constant 0 : i32
    %c0_i32_0 = arith.constant 0 : i32
    %c0_i32_1 = arith.constant 0 : i32
    return %c0_i32, %c0_i32_0 : i32, i32
  }
  func.func @transform_3(%arg0: i32) -> (i32, i32, i32, i32) {
    %c0_i32 = arith.constant 0 : i32
    %c0_i32_0 = arith.constant 0 : i32
    %c0_i32_1 = arith.constant 0 : i32
    %c0_i32_2 = arith.constant 0 : i32
    %c0_i32_3 = arith.constant 0 : i32
    return %c0_i32, %c0_i32_0, %c0_i32_1, %c0_i32_2 : i32, i32, i32, i32
  }
  func.func @transform_4(%arg0: i32) -> (i32, i32) {
    %c0_i32 = arith.constant 0 : i32
    %c0_i32_0 = arith.constant 0 : i32
    %c0_i32_1 = arith.constant 0 : i32
    return %c0_i32, %c0_i32_0 : i32, i32
  }
  func.func @transform_5(%arg0: i32) -> (i32, i32) {
    %c0_i32 = arith.constant 0 : i32
    %c0_i32_0 = arith.constant 0 : i32
    %c0_i32_1 = arith.constant 0 : i32
    return %c0_i32, %c0_i32_0 : i32, i32
  }
  func.func @transform_6(%arg0: i32) -> (i32, i32) {
    %c0_i32 = arith.constant 0 : i32
    %c0_i32_0 = arith.constant 0 : i32
    return %arg0, %c0_i32 : i32, i32
  }
}

</mosaic_0001>

<bundles_post_ra>
// kernel: tpu_custom_call.1
= control target key start
LH: loop header
LB: loop body
LE: loop exit
PB: predicated region body
PF: predicated region fallthrough
CT: control target
= control target key end

     0   :  { %11 = vsyncpa [#allocation4], 0  ;;  %s8163_s0 = inlined_call_operand.hbm [shape: f32[128,128], index: 0, kind: input, shape index: {}]   ;;  %s8164_s1 = inlined_call_operand.hbm [shape: f32[128,384], index: 1, kind: input, shape index: {}]   ;;  %s8165_s2 = inlined_call_operand.vmem [shape: f32[1,384], index: 2, kind: input, shape index: {}]   ;;  %s8166_s3 = inlined_call_operand.hbm [shape: f32[4,4,32,32], index: 3, kind: input, shape index: {}]   ;;  %s8167_s4 = inlined_call_operand.hbm [shape: f32[128,128], index: 4, kind: input, shape index: {}]   ;;  %s8168_s5 = inlined_call_operand.vmem [shape: f32[3,128], index: 5, kind: input, shape index: {}]   ;;  %s8169_s6 = inlined_call_operand.hbm [shape: f32[128,128], index: 6, kind: output, shape index: {}]  }
   0x1   :  { %13 = vsyncpa [#allocation4 + $0x1], 0 }
   0x2   :  { %14 = vsyncpa [#allocation7], 0 }
   0x3   :  { %15 = vsyncpa [#allocation10], 0 }
   0x4   :  { %16 = vsyncpa [#allocation5], 0 }
   0x5   :  { %18 = vsyncpa [#allocation5 + $0x1], 0  ;;  %s6667_s21 = smov 0   ;;  %s6669_s22 = smov 0  }
   0x6   :  { %s6671_s23 = smov 0   ;;  %s6673_s24 = smov 0  }
   0x7 LB: > { %s6688_s25 = sadd.s32 4294967295, %s6615_s24   ;;  %s5095_s26 = sadd.s32 4294967294, %s6615_s24   ;;  %s6615_s24 = sphi %s6673_s24, %s8332_s24   ;;  %s6611_s23 = sphi %s6671_s23, %s8331_s23   ;;  %s6607_s22 = sphi %s6669_s22, %s8330_s22   ;;  %s6603_s21 = sphi %s6667_s21, %s8329_s21  }
   0x8   : > { %p44_p0 = scmp.ne.s32.totalorder %s6607_s22, %s6603_s21  ;;  %p8170_p1 = scmp.eq.s32.totalorder %s6688_s25, 0 }
   0x9   : > { %p179_p3 = scmp.eq.s32.totalorder %s5095_s26, 3  ;;  %p5096_p5 = scmp.ge.s32.totalorder %s6615_s24, 1 }
   0xa   : > { %p6697_p4 = por %p8170_p1, %p44_p0  ;;  %p186_p7 = scmp.lt.s32.totalorder %s6615_s24, 5 }
   0xb   : > { %p6702_p6 = por %p179_p3, %p44_p0  ;;  %s6617_s30 = smov [#allocation6]  }
   0xc   : > { %s8239_s27 = scalar_select %p6697_p4, 1, 0 }
   0xd   : > { %s8240_s28 = scalar_select %p6702_p6, 1, 0 }
   0xe   : > { %p6707_p8 = pnand %p5096_p5, %p186_p7  ;;  %s198_s7 = sshll.u32 %s6617_s30, 4  ;;  %s199_s7 = int_to_ptr.vmem [resolvable:$true] %s198_s7 }
   0xf   : > { %s6618_s9 = smov [#allocation8]   ;;  %s6448_s11 = scalar_lea.vmem %s199_s7, 6144 }
  0x10   : > { %s8241_s29 = scalar_select %p6707_p8, 1, 0 }
  0x11   : > { %p6194_p9 = pneg %p6707_p8  ;;  %s214_s10 = sshll.u32 %s6618_s9, 4  ;;  %s215_s10 = int_to_ptr.vmem [resolvable:$true] %s214_s10 }
  0x12   : > { %p6449_p12 = scmp.ne.s32.totalorder %s199_s7, %s6448_s11  ;;  %p6456_p3 = scmp.lt.s32.totalorder %s199_s7, %s199_s7 }
  0x13   : > { %p6715_p10 = pnand %p6194_p9, %p8170_p1  ;;  %p6457_p5 = scmp.lt.s32.totalorder %s6448_s11, %s6448_s11 }
  0x15   : > { %p6439_p11 = pneg %p6715_p10  ;;  %p6458_p7 = por %p6457_p5, %p6456_p3 }
  0x17   : > { %p6451_p13 = pnand %p6449_p12, %p6439_p11 }
  0x19   : > { %p6452_p0 = pneg %p6451_p13 }
  0x1b   : > { %p6459_p9 = pnand %p6458_p7, %p6452_p0 }
  0x1d   : > { %6462 = shalt.err (!%p6459_p9)
}
  0x1e   : > { %s6619_s12 = smov 384   ;;  %s6620_s13 = smov 24  }
  0x1f   : > { %6197 = dma.hbm_to_vmem [thread:$0]  (!%p6715_p10), %s8164_s1, 6144, %s199_s7, [#allocation7], %s6619_s12, %s6619_s12, %s6620_s13  }
  0x20   : > { %s6474_s16 = scalar_lea.vmem %s215_s10, 8192  ;;  %p6482_p2 = scmp.lt.s32.totalorder %s215_s10, %s215_s10 }
  0x21   : > { %p6475_p1 = scmp.ne.s32.totalorder %s215_s10, %s6474_s16  ;;  %p6483_p6 = scmp.lt.s32.totalorder %s6474_s16, %s6474_s16 }
  0x23   : > { %p6477_p12 = pnand %p6475_p1, %p6439_p11  ;;  %p6484_p3 = por %p6483_p6, %p6482_p2 }
  0x25   : > { %p6478_p13 = pneg %p6477_p12 }
  0x27   : > { %p6485_p0 = pnand %p6484_p3, %p6478_p13 }
  0x29   : > { %6488 = shalt.err (!%p6485_p0)
}
  0x2a   : > { %s8171_s17 = smov 128   ;;  %s8172_s18 = smov 8  }
  0x2b   : > { %6200 = dma.hbm_to_vmem [thread:$0]  (!%p6715_p10), %s8166_s3, 8192, %s215_s10, [#allocation7], %s8171_s17, %s8171_s17, %s8172_s18  }
  0x2c   : > { %s6623_s26 = smov [#allocation9]   ;;  %s6741_s7 = sadd.s32 1, %s6615_s24  }
  0x2d   : > { %s227_s30 = sshll.u32 %s6623_s26, 4  ;;  %s228_s30 = int_to_ptr.vmem [resolvable:$true] %s227_s30 }
  0x2e   : > { %s6500_s9 = scalar_lea.vmem %s228_s30, 2048  ;;  %p6508_p5 = scmp.lt.s32.totalorder %s228_s30, %s228_s30 }
  0x2f   : > { %p6501_p1 = scmp.ne.s32.totalorder %s228_s30, %s6500_s9  ;;  %p6509_p7 = scmp.lt.s32.totalorder %s6500_s9, %s6500_s9 }
  0x31   : > { %p6503_p2 = pnand %p6501_p1, %p6439_p11  ;;  %p6510_p9 = por %p6509_p7, %p6508_p5 }
  0x33   : > { %p6504_p6 = pneg %p6503_p2 }
  0x35   : > { %p6511_p12 = pnand %p6510_p9, %p6504_p6 }
  0x37   : > { %6514 = shalt.err (!%p6511_p12)
}
  0x38   : > { %6203 = dma.hbm_to_vmem [thread:$0]  (!%p6715_p10), %s8167_s4, 2048, %s228_s30, [#allocation10], %s8171_s17, %s8171_s17, %s8172_s18  }
  0x39   : > { %s28_s12 = ssub.s32 %s6615_s24, %s6741_s7  ;;  %s31_s8 = sadd.s32 1, %s6611_s23 }
  0x3a   : > { %p29_p11 = scmp.eq.s32.totalorder %s28_s12, 0  ;;  %p38_p13 = scmp.ne.s32.totalorder %s6611_s23, %s6607_s22 }
  0x3b   : > { %p39_p3 = scmp.eq.s32.totalorder %s6615_s24, 0  ;;  %p6215_p0 = scmp.lt.s32.totalorder %s6615_s24, 4 }
  0x3c   : > { %s6762_s13 = scalar_select %p29_p11, %s6611_s23, %s31_s8  }
  0x3d   : > { %p40_p1 = por %p39_p3, %p38_p13  ;;  %p8243_p2 = scmp.eq.s32.totalorder %s6688_s25, 3 }
  0x3e   : > { %s244_s15 = sand.u32 1, %s6611_s23   ;;  %s5326_s16 = sshll.u32 %s6615_s24, 9 }
  0x3f   : > { %p6766_p6 = por %p8243_p2, %p38_p13  ;;  %s5101_s19 = sshll.u32 %s244_s15, 5 }
  0x40   : > { %s6775_s30 = scalar_lea.hbm %s8163_s0, %s5326_s16  ;;  %s248_s9 = scalar_lea.vmem [#allocation3], %s5101_s19 }
  0x41   : > { %s8244_s14 = scalar_select %p6766_p6, 1, 0 }
  0x42   : > { %s255_s10 = sshll.u32 %s248_s9, 4  ;;  %p6777_p10 = pnand %p6215_p0, %p40_p1  ;;  %s6781_s10 = int_to_ptr.vmem [resolvable:$true] %s255_s10 }
  0x43   : > { %s6783_s12 = scalar_lea.sflag [#allocation4], %s244_s15  ;;  %s6515_s8 = scalar_lea.hbm %s6775_s30, 512 }
  0x44   : > { %p6516_p5 = scmp.ne.s32.totalorder %s6775_s30, %s6515_s8  ;;  %p6517_p7 = pneg %p6777_p10 }
  0x45   : > { %s6520_s19 = scalar_lea.hbm %s8163_s0, 2048  ;;  %p6521_p11 = scmp.lt.s32.totalorder %s6775_s30, %s8163_s0 }
  0x46   : > { %p6518_p9 = pnand %p6517_p7, %p6516_p5  ;;  %p6522_p13 = scmp.lt.s32.totalorder %s6520_s19, %s6515_s8 }
  0x48   : > { %p6519_p12 = pneg %p6518_p9  ;;  %p6523_p3 = por %p6522_p13, %p6521_p11 }
  0x4a   : > { %p6524_p0 = pnand %p6523_p3, %p6519_p12 }
  0x4c   : > { %6527 = shalt.err (!%p6524_p0)
}
  0x4d   : > { %s6528_s15 = scalar_lea.vmem %s6781_s10, 512  ;;  %s6624_s17 = smov [#allocation3]  }
  0x4e   : > { %p6529_p1 = scmp.ne.s32.totalorder %s6781_s10, %s6528_s15  ;;  %s6533_s18 = sshll.u32 %s6624_s17, 4  ;;  %s6534_s18 = int_to_ptr.vmem [resolvable:$false] %s6533_s18 }
  0x4f   : > { %s6535_s16 = scalar_lea.vmem %s6534_s18, 1024  ;;  %p6536_p9 = scmp.lt.s32.totalorder %s6781_s10, %s6534_s18 }
  0x50   : > { %p6531_p2 = pnand %p6529_p1, %p6517_p7  ;;  %p6537_p6 = scmp.lt.s32.totalorder %s6535_s16, %s6528_s15 }
  0x52   : > { %p6532_p5 = pneg %p6531_p2  ;;  %p6538_p4 = por %p6537_p6, %p6536_p9 }
  0x54   : > { %p6539_p8 = pnand %p6538_p4, %p6532_p5 }
  0x56   : > { %6542 = shalt.err (!%p6539_p8)
}
  0x57   : > { %s8246_s8 = smov 8   ;;  %s8247_s20 = smov 128  }
  0x58   : > { %6207 = dma.hbm_to_vmem [thread:$0]  (!%p6777_p10), %s6775_s30, 512, %s6781_s10, %s6783_s12, %s8247_s20, %s8247_s20, %s8246_s8  }
  0x59   : > { %p8248_p7 = scmp.ne.s32.totalorder %s8241_s29, 0 }
  0x5b   : > { %267 = sbr.rel (%p8248_p7) target bundleno = 3267 (0xcc3), region = 44 }
  0x60   : > { %s6810_s17 = sand.u32 1, %s6607_s22   ;;  %p8249_p4 = scmp.ne.s32.totalorder %s8239_s27, 0 }
  0x61   : > { %s5105_s18 = sshll.u32 %s6810_s17, 5  ;;  %s270_s19 = scalar_lea.sflag [#allocation4], %s6810_s17 }
  0x62   : > { %s6816_s11 = scalar_lea.vmem [#allocation3], %s5105_s18 }
  0x63   : > { %6586 = dma.done.wait (%p8249_p4), %s270_s19, 512  }
  0x64   : > { %6588 = vsyncadd (%p8249_p4), %s270_s19, 4294966784  ;;  %p8250_p8 = scmp.eq.s32.totalorder %s6688_s25, 0 }
  0x66   : > { %6590 = dma.done.wait (%p8250_p8), [#allocation7], 14336   ;;  %p8251_p6 = pmov %p8250_p8 }
  0x68   : > { %6592 = vsyncadd (%p8251_p6), [#allocation7], 4294952960  ;;  %p8252_p10 = pmov %p8251_p6 }
  0x69   : > { %p8253_p12 = pmov %p8251_p6 }
  0x6a   : > { %6594 = dma.done.wait (%p8252_p10), [#allocation10], 2048  }
  0x6b   : > { %6596 = vsyncadd (%p8253_p12), [#allocation10], 4294965248  ;;  %v6625_v0 = vmov 0.0   ;;  %v366_v1 = vld [vmem:[#allocation6 + $0x170] sm:$0xff]  ;;  %v365_v2 = vld [vmem:[#allocation6 + $0x168] sm:$0xff]  ;;  %v370_v53 = vlaneseq  ;;  %vm587_vm0 = vcmask 261120  }
  0x6c   : > { %449 = vmatprep.mubr.f32.mxu0 %v6625_v0  ;;  %v363_v3 = vld [vmem:[#allocation6 + $0x158] sm:$0xff]  ;;  %385 = vmatprep.subr.mxu0 %v366_v1  ;;  %v362_v4 = vld [vmem:[#allocation6 + $0x150] sm:$0xff]  ;;  %v360_v5 = vld [vmem:[#allocation6 + $0x140] sm:$0xff]  ;;  %s6626_s30 = smov 96   ;;  %s6627_s10 = smov 32  }
  0x6d   : > { %386 = vmatpush1.msra.mxu0 %v365_v2  ;;  %v359_v6 = vld [vmem:[#allocation6 + $0x138] sm:$0xff]  ;;  %v357_v7 = vld [vmem:[#allocation6 + $0x128] sm:$0xff]  ;;  %v356_v8 = vld [vmem:[#allocation6 + $0x120] sm:$0xff]  ;;  %v371_v54 = vshrl.u32 %v370_v53, 7  ;;  %s6628_s12 = smov 64   ;;  %s313_s19 = scalar_lea.vmem [#allocation11], %s5105_s18 }
  0x6e   : > { %387 = vmatprep.subr.mxu0 %v363_v3  ;;  %v354_v9 = vld [vmem:[#allocation6 + $0x110] sm:$0xff]  ;;  %v353_v10 = vld [vmem:[#allocation6 + $0x108] sm:$0xff]  ;;  %v351_v11 = vld [vmem:[#allocation6 + $0xf8] sm:$0xff]  ;;  %s4993_s27 = sshll.u32 %s313_s19, 4  ;;  %s4980_s18 = scalar_lea.sflag [#allocation5], %s6810_s17  ;;  %s8121_s27 = int_to_ptr.vmem [resolvable:$true] %s4993_s27 }
  0x6f   : > { %388 = vmatpush1.msra.mxu0 %v362_v4  ;;  %v350_v12 = vld [vmem:[#allocation6 + $0xf0] sm:$0xff]  ;;  %v348_v13 = vld [vmem:[#allocation6 + $0xe0] sm:$0xff]  ;;  %v347_v15 = vld [vmem:[#allocation6 + $0xd8] sm:$0xff]  ;;  %v372_v55 = vsub.s32 0, %v371_v54  ;;  %v376_v60 = vsub.s32 1, %v371_v54  ;;  %p8327_p13 = scmp.ne.s32.totalorder %s8244_s14, 0 }
  0x70   : > { %389 = vmatprep.subr.mxu0 %v360_v5  ;;  %v6832_v14 = vld [vmem:[%s6816_s11] sm:$0xff]  ;;  %v345_v16 = vld [vmem:[#allocation6 + $0xc8] sm:$0xff]  ;;  %v367_v17 = vld [vmem:[#allocation6 + $0x178] sm:$0xff] }
  0x71   : > { %390 = vmatpush1.msra.mxu0 %v359_v6  ;;  %5668 = vmatprep.mubr.f32.mxu1 %v6832_v14  ;;  %v364_v18 = vld [vmem:[#allocation6 + $0x160] sm:$0xff]  ;;  %v342_v20 = vld [vmem:[#allocation6 + $0xb0] sm:$0xff]  ;;  %v361_v21 = vld [vmem:[#allocation6 + $0x148] sm:$0xff] }
  0x72   : > { %391 = vmatprep.subr.mxu0 %v357_v7  ;;  %v344_v19 = vld [vmem:[#allocation6 + $0xc0] sm:$0xff]  ;;  %5636 = vmatprep.subr.mxu1 %v367_v17  ;;  %v341_v22 = vld [vmem:[#allocation6 + $0xa8] sm:$0xff]  ;;  %v339_v23 = vld [vmem:[#allocation6 + $0x98] sm:$0xff] }
  0x73   : > { %392 = vmatpush1.msra.mxu0 %v356_v8  ;;  %5637 = vmatpush3.msra.mxu1 %v367_v17  ;;  %v358_v24 = vld [vmem:[#allocation6 + $0x130] sm:$0xff]  ;;  %v336_v26 = vld [vmem:[#allocation6 + $0x80] sm:$0xff]  ;;  %v355_v27 = vld [vmem:[#allocation6 + $0x118] sm:$0xff] }
  0x74   : > { %393 = vmatprep.subr.mxu0 %v354_v9  ;;  %5638 = vmatprep.subr.mxu1 %v364_v18  ;;  %v338_v25 = vld [vmem:[#allocation6 + $0x90] sm:$0xff]  ;;  %v335_v28 = vld [vmem:[#allocation6 + $0x78] sm:$0xff]  ;;  %v333_v29 = vld [vmem:[#allocation6 + $0x68] sm:$0xff] }
  0x75   : > { %394 = vmatpush1.msra.mxu0 %v353_v10  ;;  %5639 = vmatpush3.msra.mxu1 %v364_v18  ;;  %v352_v30 = vld [vmem:[#allocation6 + $0x100] sm:$0xff]  ;;  %v330_v32 = vld [vmem:[#allocation6 + $0x50] sm:$0xff]  ;;  %v349_v33 = vld [vmem:[#allocation6 + $0xe8] sm:$0xff] }
  0x76   : > { %395 = vmatprep.subr.mxu0 %v351_v11  ;;  %5640 = vmatprep.subr.mxu1 %v361_v21  ;;  %v332_v31 = vld [vmem:[#allocation6 + $0x60] sm:$0xff]  ;;  %v329_v34 = vld [vmem:[#allocation6 + $0x48] sm:$0xff]  ;;  %v327_v35 = vld [vmem:[#allocation6 + $0x38] sm:$0xff] }
  0x77   : > { %396 = vmatpush1.msra.mxu0 %v350_v12  ;;  %5641 = vmatpush3.msra.mxu1 %v361_v21  ;;  %v346_v36 = vld [vmem:[#allocation6 + $0xd0] sm:$0xff]  ;;  %v324_v38 = vld [vmem:[#allocation6 + $0x20] sm:$0xff]  ;;  %v343_v39 = vld [vmem:[#allocation6 + $0xb8] sm:$0xff]  ;;  %v380_v12 = vsub.s32 2, %v371_v54 }
  0x78   : > { %397 = vmatprep.subr.mxu0 %v348_v13  ;;  %5642 = vmatprep.subr.mxu1 %v358_v24  ;;  %v326_v37 = vld [vmem:[#allocation6 + $0x30] sm:$0xff]  ;;  %v323_v40 = vld [vmem:[#allocation6 + $0x18] sm:$0xff]  ;;  %v321_v41 = vld [vmem:[#allocation6 + $0x8] sm:$0xff] }
  0x79   : > { %398 = vmatpush1.msra.mxu0 %v347_v15  ;;  %5643 = vmatpush3.msra.mxu1 %v358_v24  ;;  %v340_v42 = vld [vmem:[#allocation6 + $0xa0] sm:$0xff]  ;;  %v337_v44 = vld [vmem:[#allocation6 + $0x88] sm:$0xff]  ;;  %v334_v45 = vld [vmem:[#allocation6 + $0x70] sm:$0xff] }
  0x7a   : > { %399 = vmatprep.subr.mxu0 %v345_v16  ;;  %5644 = vmatprep.subr.mxu1 %v355_v27  ;;  %v320_v43 = vld [vmem:[#allocation6] sm:$0xff]  ;;  %v317_v46 = vld [vmem:[%s6816_s11 + $0x8] sm:$0xff]  ;;  %v331_v47 = vld [vmem:[#allocation6 + $0x58] sm:$0xff] }
  0x7b   : > { %400 = vmatpush1.msra.mxu0 %v344_v19  ;;  %5645 = vmatpush3.msra.mxu1 %v355_v27  ;;  %v328_v48 = vld [vmem:[#allocation6 + $0x40] sm:$0xff]  ;;  %v318_v49 = vld [vmem:[%s6816_s11 + $0x10] sm:$0xff]  ;;  %v325_v50 = vld [vmem:[#allocation6 + $0x28] sm:$0xff] }
  0x7c   : > { %401 = vmatprep.subr.mxu0 %v342_v20  ;;  %5646 = vmatprep.subr.mxu1 %v352_v30  ;;  %v322_v51 = vld [vmem:[#allocation6 + $0x10] sm:$0xff]  ;;  %v319_v52 = vld [vmem:[%s6816_s11 + $0x18] sm:$0xff]  ;;  %v368_v56 = vld [vmem:[%s8165_s2] sm:$0x7] }
  0x7d   : > { %402 = vmatpush1.msra.mxu0 %v341_v22  ;;  %5647 = vmatpush3.msra.mxu1 %v352_v30  ;;  %v373_v57 = vrot.slane %v368_v56, %v372_v55  ;;  %v377_v63 = vrot.slane %v368_v56, %v376_v60 }
  0x7e   : > { %403 = vmatprep.subr.mxu0 %v339_v23  ;;  %5648 = vmatprep.subr.mxu1 %v349_v33 }
  0x7f   : > { %404 = vmatpush1.msra.mxu0 %v338_v25  ;;  %5649 = vmatpush3.msra.mxu1 %v349_v33 }
  0x80   : > { %405 = vmatprep.subr.mxu0 %v336_v26  ;;  %5650 = vmatprep.subr.mxu1 %v346_v36 }
  0x81   : > { %406 = vmatpush1.msra.mxu0 %v335_v28  ;;  %5651 = vmatpush3.msra.mxu1 %v346_v36 }
  0x82   : > { %407 = vmatprep.subr.mxu0 %v333_v29  ;;  %5652 = vmatprep.subr.mxu1 %v343_v39 }
  0x83   : > { %408 = vmatpush1.msra.mxu0 %v332_v31  ;;  %5653 = vmatpush3.msra.mxu1 %v343_v39 }
  0x84   : > { %409 = vmatprep.subr.mxu0 %v330_v32  ;;  %5654 = vmatprep.subr.mxu1 %v340_v42 }
  0x85   : > { %410 = vmatpush1.msra.mxu0 %v329_v34  ;;  %5655 = vmatpush3.msra.mxu1 %v340_v42  ;;  %v584_v34 = vld [vmem:[#allocation8 + $0x8] sm:$0xff] }
  0x86   : > { %411 = vmatprep.subr.mxu0 %v327_v35  ;;  %5656 = vmatprep.subr.mxu1 %v337_v44 }
  0x87   : > { %412 = vmatpush1.msra.mxu0 %v326_v37  ;;  %5657 = vmatpush3.msra.mxu1 %v337_v44  ;;  %v583_v37 = vld [vmem:[#allocation8] sm:$0xff]  ;;  %v586_v44 = vld [vmem:[#allocation8 + $0x18] sm:$0xff] }
  0x88   : > { %413 = vmatprep.subr.mxu0 %v324_v38  ;;  %5658 = vmatprep.subr.mxu1 %v334_v45 }
  0x89   : > { %414 = vmatpush1.msra.mxu0 %v323_v40  ;;  %5659 = vmatpush3.msra.mxu1 %v334_v45 }
  0x8a   : > { %415 = vmatprep.subr.mxu0 %v321_v41  ;;  %5660 = vmatprep.subr.mxu1 %v331_v47 }
  0x8b   : > { %416 = vmatpush1.msra.mxu0 %v320_v43  ;;  %5661 = vmatpush3.msra.mxu1 %v331_v47 }
  0x8c   : > { %450 = vmatmul.mubr.f32.vlgmr.msra.gmra.mxu0 %v6832_v14  ;;  %5662 = vmatprep.subr.mxu1 %v328_v48  ;;  %v381_v14 = vrot.slane %v368_v56, %v380_v12  ;;  %v699_v56 = vld [vmem:[#allocation8 + $0x28] sm:$0xff] }
  0x8d   : > { %455 = vmatprep.mubr.f32.mxu0 %v6625_v0  ;;  %5663 = vmatpush3.msra.mxu1 %v328_v48 }
  0x8e   : > { %5664 = vmatprep.subr.mxu1 %v325_v50 }
  0x8f   : > { %5665 = vmatpush3.msra.mxu1 %v325_v50 }
  0x90   : > { %456 = vmatmul.mubr.f32.gmra.mxu0 %v317_v46  ;;  %5666 = vmatprep.subr.mxu1 %v322_v51 }
  0x91   : > { %461 = vmatprep.mubr.f32.mxu0 %v6625_v0  ;;  %5667 = vmatpush3.msra.mxu1 %v322_v51 }
  0x92   : > { %5669 = vmatmul.mubr.f32.vlgmr.msra.gmra.mxu1 %v317_v46  ;;  %v585_v46 = vld [vmem:[#allocation8 + $0x10] sm:$0xff] }
  0x93   : > { %5671 = vmatprep.mubr.f32.mxu1 %v318_v49 }
  0x94   : > { %462 = vmatmul.mubr.f32.gmra.mxu0 %v318_v49 }
  0x95   : > { %467 = vmatprep.mubr.f32.mxu0 %v6625_v0 }
  0x96   : > { %5672 = vmatmul.mubr.f32.gmra.mxu1 %v319_v52 }
  0x98   : > { %468 = vmatmul.mubr.f32.gmra.mxu0 %v319_v52 }
 0x14c   : > { %v451_v58 = vpop.f32.mrf.mxu0 }
 0x14d   : > { %v6845_v59 = vadd.f32 %v451_v58, %v373_v57  ;;  %v698_v58 = vld [vmem:[#allocation8 + $0x20] sm:$0xff] }
 0x14e   : > { %v453_v61 = vpop.f32.mrf.mxu0 }
 0x14f   : > { %8254 = vst [vmem:[#allocation16_spill] sm:$0xff] %v6845_v59  ;;  %5682 = vmatprep.mubr.msk.f32.mxu0 %vm587_vm0, %v6845_v59  ;;  %5696 = vmatprep.mubr.msk.f32.mxu1 %vm587_vm0, %v6845_v59  ;;  %v6855_v4 = vadd.f32 %v453_v61, %v377_v63 }
 0x150   : > { %v457_v62 = vpop.f32.mrf.mxu0 }
 0x151   : > { %8255 = vst [vmem:[#allocation17_spill] sm:$0xff] %v6855_v4  ;;  %v6895_v9 = vadd.f32 %v457_v62, %v373_v57 }
 0x152   : > { %v459_v0 = vpop.f32.mrf.mxu0  ;;  %v5670_v13 = vpop.f32.mrf.mxu1 }
 0x153   : > { %v6851_v1 = vadd.f32 %v459_v0, %v377_v63  ;;  %8256 = vst [vmem:[#allocation18_spill] sm:$0xff] %v6895_v9  ;;  %v6915_v19 = vadd.f32 %v5670_v13, %v381_v14  ;;  %v701_v13 = vld [vmem:[#allocation8 + $0x38] sm:$0xff] }
 0x154   : > { %v463_v2 = vpop.f32.mrf.mxu0  ;;  %v540_v15 = vpop.f32.mrf.mxu1 }
 0x155   : > { %704 = vrot.lane.b32.xlu1 %v6851_v1, %s6626_s30  ;;  %v6897_v10 = vadd.f32 %v463_v2, %v373_v57  ;;  %8260 = vst [vmem:[#allocation22_spill] sm:$0xff] %v6915_v19  ;;  %v6923_v21 = vadd.f32 %v540_v15, %v381_v14  ;;  %v805_v2 = vld [vmem:[#allocation8 + $0x48] sm:$0xff]  ;;  %v807_v15 = vld [vmem:[#allocation8 + $0x58] sm:$0xff] }
 0x156   : > { %v465_v3 = vpop.f32.mrf.mxu0  ;;  %v5673_v16 = vpop.f32.mrf.mxu1 }
 0x157   : > { %v6861_v8 = vadd.f32 %v465_v3, %v377_v63  ;;  %8257 = vst [vmem:[#allocation19_spill] sm:$0xff] %v6897_v10  ;;  %v6913_v17 = vadd.f32 %v5673_v16, %v381_v14  ;;  %8262 = vst [vmem:[#allocation24_spill] sm:$0xff] %v6923_v21 }
 0x158   : > { %v469_v5 = vpop.f32.mrf.mxu0  ;;  %v550_v18 = vpop.f32.mrf.mxu1 }
 0x159   : > { %702 = vrot.lane.b32.xlu1 %v6855_v4, %s6626_s30  ;;  %v6905_v11 = vadd.f32 %v469_v5, %v373_v57  ;;  %8259 = vst [vmem:[#allocation21_spill] sm:$0xff] %v6913_v17  ;;  %v6919_v20 = vadd.f32 %v550_v18, %v381_v14 }
 0x15a   : > { %v471_v6 = vpop.f32.mrf.mxu0 }
 0x15b   : > { %v6859_v7 = vadd.f32 %v471_v6, %v377_v63  ;;  %8258 = vst [vmem:[#allocation20_spill] sm:$0xff] %v6905_v11  ;;  %8261 = vst [vmem:[#allocation23_spill] sm:$0xff] %v6919_v20  ;;  %v804_v6 = vld [vmem:[#allocation8 + $0x40] sm:$0xff] }
 0x15d   : > { %708 = vrot.lane.b32.xlu0 %v6859_v7, %s6626_s30  ;;  %5674 = vmatprep.subr.msk.mxu0 %vm587_vm0, %v6859_v7 }
 0x15e   : > { %920 = vrot.lane.b32.xlu1 %v6859_v7, %s6627_s10  ;;  %5675 = vmatpush3.xpose.msk.msra.mxu0 %vm587_vm0, %v6859_v7 }
 0x15f   : > { %5676 = vmatprep.subr.msk.mxu0 %vm587_vm0, %v6861_v8 }
 0x161   : > { %706 = vrot.lane.b32.xlu0 %v6861_v8, %s6626_s30 }
 0x162   : > { %918 = vrot.lane.b32.xlu1 %v6861_v8, %s6627_s10  ;;  %5677 = vmatpush3.xpose.msk.msra.mxu0 %vm587_vm0, %v6861_v8 }
 0x163   : > { %5678 = vmatprep.subr.msk.mxu0 %vm587_vm0, %v6851_v1 }
 0x165   : > { %814 = vrot.lane.b32.xlu0 %v6859_v7, %s6628_s12 }
 0x166   : > { %916 = vrot.lane.b32.xlu1 %v6851_v1, %s6627_s10  ;;  %5679 = vmatpush3.xpose.msk.msra.mxu0 %vm587_vm0, %v6851_v1 }
 0x167   : > { %5680 = vmatprep.subr.msk.mxu0 %vm587_vm0, %v6855_v4 }
 0x169   : > { %812 = vrot.lane.b32.xlu0 %v6861_v8, %s6628_s12 }
 0x16a   : > { %914 = vrot.lane.b32.xlu1 %v6855_v4, %s6627_s10  ;;  %5681 = vmatpush3.xpose.msk.msra.mxu0 %vm587_vm0, %v6855_v4 }
 0x16d   : > { %810 = vrot.lane.b32.xlu0 %v6851_v1, %s6628_s12  ;;  %5683 = vmatmul.mubr.msk.f32.vlgmr.msra.gmra.mxu0 %vm587_vm0, %v6895_v9 }
 0x16e   : > { %5685 = vmatprep.mubr.msk.f32.mxu0 %vm587_vm0, %v6897_v10  ;;  %1201 = vrot.lane.b32.xlu1 %v6913_v17, %s6626_s30 }
 0x171   : > { %808 = vrot.lane.b32.xlu0 %v6855_v4, %s6628_s12  ;;  %5686 = vmatmul.mubr.msk.f32.gmra.mxu0 %vm587_vm0, %v6905_v11 }
 0x172   : > { %5710 = vmatprep.mubr.msk.f32.mxu0 %vm587_vm0, %v6845_v59  ;;  %1197 = vrot.lane.b32.xlu1 %v6915_v19, %s6626_s30 }
 0x175   : > { %1199 = vrot.lane.b32.xlu0 %v6919_v20, %s6626_s30 }
 0x176   : > { %1195 = vrot.lane.b32.xlu1 %v6923_v21, %s6626_s30 }
 0x179   : > { %1407 = vrot.lane.b32.xlu0 %v6913_v17, %s6628_s12 }
 0x17a   : > { %1405 = vrot.lane.b32.xlu1 %v6919_v20, %s6628_s12 }
 0x17d   : > { %1520 = vrot.lane.b32.xlu0 %v6913_v17, %s6627_s10 }
 0x17e   : > { %1403 = vrot.lane.b32.xlu1 %v6915_v19, %s6628_s12 }
 0x1c7   : > { %v6937_v22 = vpop.permute.xlu1 %704 }
 0x1c8   : > { %8263 = vst [vmem:[#allocation25_spill] sm:$0xff] %v6937_v22 }
 0x1cb   : > { %v6945_v24 = vpop.permute.xlu1 %702 }
 0x1cc   : > { %8264 = vst [vmem:[#allocation26_spill] sm:$0xff] %v6945_v24 }
 0x1cf   : > { %v6939_v23 = vpop.permute.xlu0 %708 }
 0x1d0   : > { %5688 = vmatprep.subr.msk.mxu1 %vm587_vm0, %v6939_v23  ;;  %v6957_v27 = vpop.permute.xlu1 %920 }
 0x1d1   : > { %5689 = vmatpush3.xpose.msk.msra.mxu1 %vm587_vm0, %v6939_v23  ;;  %8267 = vst [vmem:[#allocation29_spill] sm:$0xff] %v6957_v27 }
 0x1d3   : > { %v6947_v25 = vpop.permute.xlu0 %706 }
 0x1d4   : > { %8265 = vst [vmem:[#allocation27_spill] sm:$0xff] %v6947_v25  ;;  %5690 = vmatprep.subr.msk.mxu1 %vm587_vm0, %v6947_v25  ;;  %v6975_v29 = vpop.permute.xlu1 %918 }
 0x1d5   : > { %5691 = vmatpush3.xpose.msk.msra.mxu1 %vm587_vm0, %v6947_v25  ;;  %8269 = vst [vmem:[#allocation31_spill] sm:$0xff] %v6975_v29 }
 0x1d6   : > { %5692 = vmatprep.subr.msk.mxu1 %vm587_vm0, %v6937_v22 }
 0x1d7   : > { %v6955_v26 = vpop.permute.xlu0 %814 }
 0x1d8   : > { %8266 = vst [vmem:[#allocation28_spill] sm:$0xff] %v6955_v26  ;;  %5702 = vmatprep.subr.msk.mxu0 %vm587_vm0, %v6955_v26  ;;  %v6995_v32 = vpop.permute.xlu1 %916 }
 0x1d9   : > { %5693 = vmatpush3.xpose.msk.msra.mxu1 %vm587_vm0, %v6937_v22  ;;  %5703 = vmatpush3.xpose.msk.msra.mxu0 %vm587_vm0, %v6955_v26  ;;  %8272 = vst [vmem:[#allocation34_spill] sm:$0xff] %v6995_v32 }
 0x1da   : > { %5694 = vmatprep.subr.msk.mxu1 %vm587_vm0, %v6945_v24 }
 0x1db   : > { %v6967_v28 = vpop.permute.xlu0 %812 }
 0x1dc   : > { %8268 = vst [vmem:[#allocation30_spill] sm:$0xff] %v6967_v28  ;;  %5704 = vmatprep.subr.msk.mxu0 %vm587_vm0, %v6967_v28  ;;  %v7013_v33 = vpop.permute.xlu1 %914 }
 0x1dd   : > { %5695 = vmatpush3.xpose.msk.msra.mxu1 %vm587_vm0, %v6945_v24  ;;  %5705 = vmatpush3.xpose.msk.msra.mxu0 %vm587_vm0, %v6967_v28  ;;  %8273 = vst [vmem:[#allocation35_spill] sm:$0xff] %v7013_v33 }
 0x1de   : > { %5716 = vmatprep.subr.msk.mxu1 %vm587_vm0, %v6957_v27 }
 0x1df   : > { %v6979_v30 = vpop.permute.xlu0 %810 }
 0x1e0   : > { %8270 = vst [vmem:[#allocation32_spill] sm:$0xff] %v6979_v30  ;;  %5697 = vmatmul.mubr.msk.f32.vlgmr.msra.gmra.mxu1 %vm587_vm0, %v6895_v9  ;;  %5706 = vmatprep.subr.msk.mxu0 %vm587_vm0, %v6979_v30  ;;  %v7037_v35 = vpop.permute.xlu1 %1201 }
 0x1e1   : > { %5699 = vmatprep.mubr.msk.f32.mxu1 %vm587_vm0, %v6897_v10  ;;  %5707 = vmatpush3.xpose.msk.msra.mxu0 %vm587_vm0, %v6979_v30  ;;  %8274 = vst [vmem:[#allocation36_spill] sm:$0xff] %v7037_v35 }
 0x1e2   : > { %5717 = vmatpush3.xpose.msk.msra.mxu1 %vm587_vm0, %v6957_v27 }
 0x1e3   : > { %5718 = vmatprep.subr.msk.mxu1 %vm587_vm0, %v6975_v29  ;;  %v6993_v31 = vpop.permute.xlu0 %808 }
 0x1e4   : > { %8271 = vst [vmem:[#allocation33_spill] sm:$0xff] %v6993_v31  ;;  %5700 = vmatmul.mubr.msk.f32.gmra.mxu1 %vm587_vm0, %v6905_v11  ;;  %5708 = vmatprep.subr.msk.mxu0 %vm587_vm0, %v6993_v31  ;;  %v7046_v41 = vpop.permute.xlu1 %1197 }
 0x1e5   : > { %5709 = vmatpush3.xpose.msk.msra.mxu0 %vm587_vm0, %v6993_v31  ;;  %5724 = vmatprep.mubr.msk.f32.mxu1 %vm587_vm0, %v6845_v59  ;;  %8276 = vst [vmem:[#allocation38_spill] sm:$0xff] %v7046_v41 }
 0x1e6   : > { %5719 = vmatpush3.xpose.msk.msra.mxu1 %vm587_vm0, %v6975_v29  ;;  %5730 = vmatprep.subr.mxu0 %v7037_v35 }
 0x1e7   : > { %5720 = vmatprep.subr.msk.mxu1 %vm587_vm0, %v6995_v32  ;;  %v7040_v38 = vpop.permute.xlu0 %1199 }
 0x1e8   : > { %5711 = vmatmul.mubr.msk.f32.vlgmr.msra.gmra.mxu0 %vm587_vm0, %v6895_v9  ;;  %8275 = vst [vmem:[#allocation37_spill] sm:$0xff] %v7040_v38  ;;  %v7063_v52 = vpop.permute.xlu1 %1195 }
 0x1e9   : > { %5713 = vmatprep.mubr.msk.f32.mxu0 %vm587_vm0, %v6897_v10  ;;  %5731 = vmatpush3.msra.mxu0 %v7037_v35  ;;  %8277 = vst [vmem:[#allocation39_spill] sm:$0xff] %v7063_v52 }
 0x1ea   : > { %5721 = vmatpush3.xpose.msk.msra.mxu1 %vm587_vm0, %v6995_v32  ;;  %5732 = vmatprep.subr.mxu0 %v7040_v38 }
 0x1eb   : > { %5722 = vmatprep.subr.msk.mxu1 %vm587_vm0, %v7013_v33  ;;  %5733 = vmatpush3.msra.mxu0 %v7040_v38  ;;  %v7055_v47 = vpop.permute.xlu0 %1407 }
 0x1ec   : > { %5714 = vmatmul.mubr.msk.f32.gmra.mxu0 %vm587_vm0, %v6905_v11  ;;  %5734 = vmatprep.subr.mxu0 %v7046_v41 }
 0x1ed   : > { %5735 = vmatpush3.msra.mxu0 %v7046_v41 }
 0x1ee   : > { %5723 = vmatpush3.xpose.msk.msra.mxu1 %vm587_vm0, %v7013_v33  ;;  %5736 = vmatprep.subr.mxu0 %v7063_v52 }
 0x1ef   : > { %5744 = vmatprep.subr.mxu1 %v6913_v17  ;;  %5737 = vmatpush3.msra.mxu0 %v7063_v52  ;;  %v7069_v54 = vpop.permute.xlu0 %1520 }
 0x1f0   : > { %5758 = vmatprep.subr.mxu0 %v7055_v47 }
 0x1f1   : > { %5725 = vmatmul.mubr.msk.f32.vlgmr.msra.gmra.mxu1 %vm587_vm0, %v6895_v9 }
 0x1f2   : > { %5727 = vmatprep.mubr.msk.f32.mxu1 %vm587_vm0, %v6897_v10  ;;  %5745 = vmatpush3.msra.mxu1 %v6913_v17 }
 0x1f3   : > { %5746 = vmatprep.subr.mxu1 %v6919_v20 }
 0x1f4   : > { %5747 = vmatpush3.msra.mxu1 %v6919_v20 }
 0x1f5   : > { %5728 = vmatmul.mubr.msk.f32.gmra.mxu1 %vm587_vm0, %v6905_v11  ;;  %5748 = vmatprep.subr.mxu1 %v6915_v19 }
 0x1f6   : > { %5749 = vmatpush3.msra.mxu1 %v6915_v19 }
 0x1f7   : > { %5750 = vmatprep.subr.mxu1 %v6923_v21 }
 0x1f8   : > { %5751 = vmatpush3.msra.mxu1 %v6923_v21 }
 0x1f9   : > { %5772 = vmatprep.subr.mxu1 %v7069_v54 }
 0x22d   : > { %v5684_v36 = vpop.f32.mrf.mxu0 }
 0x22e   : > { %v7043_v39 = vadd.f32 %v5684_v36, %v584_v34  ;;  %v700_v36 = vld [vmem:[#allocation8 + $0x30] sm:$0xff] }
 0x22f   : > { %v678_v40 = vpop.f32.mrf.mxu0 }
 0x230   : > { %v7049_v42 = vadd.f32 %v678_v40, %v583_v37  ;;  %v1018_v43 = vsel %vm587_vm0, %v7043_v39, -inf }
 0x231   : > { %1019 = vmax.xlane.f32.xlu0 %v1018_v43  ;;  %v5687_v45 = vpop.f32.mrf.mxu0 }
 0x232   : > { %v7057_v49 = vadd.f32 %v5687_v45, %v586_v44  ;;  %v1015_v51 = vsel %vm587_vm0, %v7049_v42, -inf }
 0x233   : > { %v688_v48 = vpop.f32.mrf.mxu0 }
 0x234   : > { %v7059_v50 = vadd.f32 %v688_v48, %v585_v46  ;;  %v1024_v55 = vsel %vm587_vm0, %v7057_v49, -inf  ;;  %v806_v46 = vld [vmem:[#allocation8 + $0x50] sm:$0xff] }
 0x235   : > { %1016 = vmax.xlane.f32.xlu0 %v1015_v51 }
 0x236   : > { %v1021_v53 = vsel %vm587_vm0, %v7059_v50, -inf }
 0x237   : > { %1022 = vmax.xlane.f32.xlu1 %v1021_v53  ;;  %v911_v53 = vld [vmem:[#allocation8 + $0x68] sm:$0xff] }
 0x239   : > { %1025 = vmax.xlane.f32.xlu0 %v1024_v55 }
 0x2a0   : > { %v5698_v57 = vpop.f32.mrf.mxu1 }
 0x2a1   : > { %v7075_v60 = vadd.f32 %v5698_v57, %v699_v56 }
 0x2a2   : > { %v784_v61 = vpop.f32.mrf.mxu1 }
 0x2a3   : > { %v7077_v62 = vadd.f32 %v784_v61, %v698_v58  ;;  %v1030_v63 = vsel %vm587_vm0, %v7075_v60, -inf  ;;  %v910_v58 = vld [vmem:[#allocation8 + $0x60] sm:$0xff] }
 0x2a4   : > { %1031 = vmax.xlane.f32.xlu0 %v1030_v63  ;;  %v5701_v3 = vpop.f32.mrf.mxu1 }
 0x2a5   : > { %v1027_v0 = vsel %vm587_vm0, %v7077_v62, -inf  ;;  %v7089_v40 = vadd.f32 %v5701_v3, %v701_v13 }
 0x2a6   : > { %1028 = vmax.xlane.f32.xlu1 %v1027_v0  ;;  %v794_v34 = vpop.f32.mrf.mxu1 }
 0x2a7   : > { %v7095_v48 = vadd.f32 %v794_v34, %v700_v36  ;;  %v1036_v57 = vsel %vm587_vm0, %v7089_v40, -inf  ;;  %v912_v36 = vld [vmem:[#allocation8 + $0x70] sm:$0xff] }
 0x2a8   : > { %v5712_v5 = vpop.f32.mrf.mxu0 }
 0x2a9   : > { %v7083_v12 = vadd.f32 %v5712_v5, %v805_v2  ;;  %v1033_v0 = vsel %vm587_vm0, %v7095_v48, -inf  ;;  %v913_v2 = vld [vmem:[#allocation8 + $0x78] sm:$0xff] }
 0x2aa   : > { %v890_v14 = vpop.f32.mrf.mxu0 }
 0x2ab   : > { %v7085_v16 = vadd.f32 %v890_v14, %v804_v6  ;;  %v1046_v18 = vsel %vm587_vm0, %v7083_v12, -inf }
 0x2ac   : > { %v5715_v37 = vpop.f32.mrf.mxu0  ;;  %1047 = vmax.xlane.f32.xlu0 %v1046_v18 }
 0x2ad   : > { %v7091_v43 = vadd.f32 %v5715_v37, %v807_v15  ;;  %v1043_v44 = vsel %vm587_vm0, %v7085_v16, -inf }
 0x2ae   : > { %v900_v45 = vpop.f32.mrf.mxu0  ;;  %1044 = vmax.xlane.f32.xlu1 %v1043_v44 }
 0x2af   : > { %v1052_v51 = vsel %vm587_vm0, %v7091_v43, -inf  ;;  %v7099_v55 = vadd.f32 %v900_v45, %v806_v46  ;;  %v7139_v46 = vpop.permute.xlu1 %1405 }
 0x2b0   : > { %1053 = vmax.xlane.f32.xlu0 %v1052_v51 }
 0x2b1   : > { %v5726_v56 = vpop.f32.mrf.mxu1  ;;  %v1049_v6 = vsel %vm587_vm0, %v7099_v55, -inf }
 0x2b2   : > { %1037 = vmax.xlane.f32.xlu1 %v1036_v57  ;;  %v7103_v61 = vadd.f32 %v5726_v56, %v911_v53 }
 0x2b3   : > { %v996_v63 = vpop.f32.mrf.mxu1  ;;  %v7141_v53 = vpop.permute.xlu1 %1403 }
 0x2b4   : > { %1034 = vmax.xlane.f32.xlu0 %v1033_v0  ;;  %v7107_v3 = vadd.f32 %v996_v63, %v910_v58  ;;  %v1062_v14 = vsel %vm587_vm0, %v7103_v61, -inf }
 0x2b5   : > { %v5729_v5 = vpop.f32.mrf.mxu1 }
 0x2b6   : > { %1050 = vmax.xlane.f32.xlu1 %v1049_v6  ;;  %v7111_v13 = vadd.f32 %v5729_v5, %v913_v2  ;;  %v1059_v15 = vsel %vm587_vm0, %v7107_v3, -inf }
 0x2b7   : > { %v1006_v34 = vpop.f32.mrf.mxu1 }
 0x2b8   : > { %1063 = vmax.xlane.f32.xlu0 %v1062_v14  ;;  %v1068_v18 = vsel %vm587_vm0, %v7111_v13, -inf  ;;  %v7129_v37 = vadd.f32 %v1006_v34, %v912_v36 }
 0x2ba   : > { %1060 = vmax.xlane.f32.xlu1 %v1059_v15  ;;  %v1065_v44 = vsel %vm587_vm0, %v7129_v37, -inf  ;;  %v1020_v45 = vpop.xlane.xlu0 %1019 }
 0x2bc   : > { %1069 = vmax.xlane.f32.xlu0 %v1068_v18 }
 0x2be   : > { %v1017_v51 = vpop.xlane.xlu0 %1016 }
 0x2c0   : > { %v1023_v57 = vpop.xlane.xlu1 %1022 }
 0x2c2   : > { %v1026_v56 = vpop.xlane.xlu0 %1025 }
 0x2cb   : > { %1401 = vrot.lane.b32.xlu1 %v6923_v21, %s6628_s12 }
 0x2d2   : > { %1518 = vrot.lane.b32.xlu0 %v6919_v20, %s6627_s10 }
 0x2d6   : > { %1516 = vrot.lane.b32.xlu0 %v6915_v19, %s6627_s10 }
 0x2da   : > { %1640 = vrot.lane.b32.xlu0 %v6845_v59, %s6626_s30 }
 0x2de   : > { %1644 = vrot.lane.b32.xlu0 %v6897_v10, %s6626_s30 }
 0x2ef   : > { %1066 = vmax.xlane.f32.xlu1 %v1065_v44 }
 0x300   : > { %1514 = vrot.lane.b32.xlu1 %v6923_v21, %s6627_s10 }
 0x304   : > { %1642 = vrot.lane.b32.xlu1 %v6895_v9, %s6626_s30 }
 0x308   : > { %1646 = vrot.lane.b32.xlu1 %v6905_v11, %s6626_s30 }
 0x32d   : > { %v1032_v58 = vpop.xlane.xlu0 %1031 }
 0x32e   : > { %v1040_v15 = vmax.f32 %v1020_v45, %v1032_v58 }
 0x32f   : > { %v1029_v63 = vpop.xlane.xlu1 %1028 }
 0x330   : > { %v1039_v36 = vmax.f32 %v1017_v51, %v1029_v63 }
 0x335   : > { %v1048_v0 = vpop.xlane.xlu0 %1047 }
 0x336   : > { %v1056_v34 = vmax.f32 %v1040_v15, %v1048_v0 }
 0x337   : > { %v1045_v2 = vpop.xlane.xlu1 %1044 }
 0x338   : > { %v1055_v11 = vmax.f32 %v1039_v36, %v1045_v2 }
 0x339   : > { %v1054_v5 = vpop.xlane.xlu0 %1053 }
 0x33b   : > { %v1038_v6 = vpop.xlane.xlu1 %1037 }
 0x33d   : > { %v1035_v14 = vpop.xlane.xlu0 %1034 }
 0x33f   : > { %v1051_v18 = vpop.xlane.xlu1 %1050 }
 0x341   : > { %v1064_v44 = vpop.xlane.xlu0 %1063 }
 0x342   : > { %v7143_v9 = vmax.f32 %v1056_v34, %v1064_v44 }
 0x343   : > { %v1061_v10 = vpop.xlane.xlu1 %1060 }
 0x344   : > { %v1076_v59 = vsub.f32 %v7043_v39, %v7143_v9  ;;  %v1071_v21 = vmax.f32 %v1055_v11, %v1061_v10  ;;  %v1088_v52 = vsub.f32 %v7075_v60, %v7143_v9 }
 0x345   : > { %v1070_v63 = vpop.xlane.xlu0 %1069 }
 0x346   : > { %v1081_v19 = vmul.f32 1.442695, %v1076_v59  ;;  %v1075_v41 = vsub.f32 %v7049_v42, %v1071_v21  ;;  %v1087_v45 = vsub.f32 %v7077_v62, %v1071_v21  ;;  %v1093_v51 = vmul.f32 1.442695, %v1088_v52 }
 0x347   : > { %v1042_v42 = vmax.f32 %v1026_v56, %v1038_v6  ;;  %v1041_v62 = vmax.f32 %v1023_v57, %v1035_v14  ;;  %v1111_v15 = vsub.f32 %v7107_v3, %v1071_v21  ;;  %v1100_v57 = vsub.f32 %v7083_v12, %v7143_v9 }
 0x348   : > { %v1079_v58 = vmul.f32 1.442695, %v1075_v41  ;;  %v1091_v0 = vmul.f32 1.442695, %v1087_v45  ;;  %6265 = vpow2.f32 %v1081_v19  ;;  %v7180_v41 = vpop.permute.xlu1 %1401  ;;  %v1112_v3 = vsub.f32 %v7103_v61, %v7143_v9 }
 0x349   : > { %v7153_v39 = vpop.permute.xlu0 %1518  ;;  %8279 = vst [vmem:[#allocation41_spill] sm:$0xff] %v7180_v41  ;;  %v1058_v52 = vmax.f32 %v1042_v42, %v1054_v5  ;;  %v1057_v36 = vmax.f32 %v1041_v62, %v1051_v18  ;;  %v1115_v45 = vmul.f32 1.442695, %v1111_v15 }
 0x34a   : > { %6267 = vpow2.f32 %v1079_v58  ;;  %v1117_v9 = vmul.f32 1.442695, %v1112_v3  ;;  %v8283_v3 = vld [vmem:[#allocation24_spill] sm:$0xff] }
 0x34b   : > { %6269 = vpow2.f32 %v1091_v0  ;;  %v1074_v60 = vmax.f32 %v1058_v52, %v1070_v63 }
 0x34c   : > { %6271 = vpow2.f32 %v1093_v51  ;;  %v1099_v51 = vsub.f32 %v7085_v16, %v1071_v21 }
 0x34d   : > { %v7172_v19 = vpop.permute.xlu0 %1516  ;;  %v1078_v34 = vsub.f32 %v7057_v49, %v1074_v60  ;;  %v1090_v58 = vsub.f32 %v7089_v40, %v1074_v60  ;;  %6273 = vpow2.f32 %v1115_v45  ;;  %v1114_v16 = vsub.f32 %v7111_v13, %v1074_v60 }
 0x34e   : > { %8278 = vst [vmem:[#allocation40_spill] sm:$0xff] %v7172_v19  ;;  %v1103_v21 = vmul.f32 1.442695, %v1099_v51  ;;  %v1102_v61 = vsub.f32 %v7091_v43, %v1074_v60  ;;  %v8280_v51 = vld [vmem:[#allocation38_spill] sm:$0xff] }
 0x34f   : > { %v1097_v5 = vmul.f32 1.442695, %v1090_v58 }
 0x350   : > { %v1109_v63 = vmul.f32 1.442695, %v1102_v61 }
 0x355   : > { %v7151_v2 = vpop.eup %6265 }
 0x357   : > { %v7155_v10 = vpop.eup %6267 }
 0x358   : > { %v7157_v11 = vpop.eup %6269  ;;  %5752 = vmatprep.mubr.msk.f32.mxu1 %vm587_vm0, %v7155_v10 }
 0x359   : > { %v7161_v59 = vpop.eup %6271  ;;  %5738 = vmatprep.mubr.msk.f32.mxu0 %vm587_vm0, %v7157_v11  ;;  %5753 = vmatmul.mubr.msk.f32.vlgmr.msra.gmra.mxu1 %vm587_vm0, %v7151_v2 }
 0x35a   : > { %5739 = vmatmul.mubr.msk.f32.vlgmr.msra.gmra.mxu0 %vm587_vm0, %v7161_v59  ;;  %5773 = vmatpush3.msra.mxu1 %v7069_v54 }
 0x35b   : > { %5759 = vmatpush3.msra.mxu0 %v7055_v47  ;;  %5774 = vmatprep.subr.mxu1 %v7153_v39 }
 0x35c   : > { %5760 = vmatprep.subr.mxu0 %v7139_v46  ;;  %5775 = vmatpush3.msra.mxu1 %v7153_v39 }
 0x35d   : > { %5761 = vmatpush3.msra.mxu0 %v7139_v46  ;;  %5776 = vmatprep.subr.mxu1 %v7172_v19 }
 0x35e   : > { %5762 = vmatprep.subr.mxu0 %v7141_v53  ;;  %5777 = vmatpush3.msra.mxu1 %v7172_v19 }
 0x35f   : > { %5763 = vmatpush3.msra.mxu0 %v7141_v53 }
 0x360   : > { %5764 = vmatprep.subr.mxu0 %v7180_v41 }
 0x361   : > { %5765 = vmatpush3.msra.mxu0 %v7180_v41  ;;  %v1085_v41 = vmul.f32 1.442695, %v1078_v34 }
 0x362   : > { %5786 = vmatprep.subr.msk.mxu0 %vm587_vm0, %v6859_v7 }
 0x363   : > { %6275 = vpow2.f32 %v1085_v41 }
 0x378   : > { %v1067_v44 = vpop.xlane.xlu1 %1066 }
 0x379   : > { %v1073_v0 = vmax.f32 %v1057_v36, %v1067_v44  ;;  %v1641_v44 = vpop.permute.xlu0 %1640 }
 0x37b   : > { %v1077_v19 = vsub.f32 %v7059_v50, %v1073_v0  ;;  %v1089_v56 = vsub.f32 %v7095_v48, %v1073_v0  ;;  %v1101_v50 = vsub.f32 %v7099_v55, %v1073_v0  ;;  %v1113_v12 = vsub.f32 %v7129_v37, %v1073_v0  ;;  %v7207_v37 = vpop.eup %6273 }
 0x37c   : > { %v7197_v49 = vpop.permute.xlu1 %1514  ;;  %v1105_v48 = vmul.f32 1.442695, %v1100_v57  ;;  %v1121_v55 = vmul.f32 1.442695, %v1114_v16  ;;  %v8282_v57 = vld [vmem:[#allocation39_spill] sm:$0xff] }
 0x37d   : > { %v1083_v6 = vmul.f32 1.442695, %v1077_v19  ;;  %v1095_v40 = vmul.f32 1.442695, %v1089_v56  ;;  %5778 = vmatprep.subr.mxu1 %v7197_v49  ;;  %v1107_v14 = vmul.f32 1.442695, %v1101_v50  ;;  %v7209_v19 = vpop.eup %6275  ;;  %v1645_v58 = vpop.permute.xlu0 %1644 }
 0x37e   : > { %5779 = vmatpush3.msra.mxu1 %v7197_v49  ;;  %v1119_v18 = vmul.f32 1.442695, %v1113_v12  ;;  %v8281_v56 = vld [vmem:[#allocation22_spill] sm:$0xff] }
 0x37f   : > { %6277 = vpow2.f32 %v1083_v6  ;;  %5800 = vmatprep.subr.msk.mxu1 %vm587_vm0, %v6939_v23 }
 0x380   : > { %6279 = vpow2.f32 %v1095_v40  ;;  %v1643_v45 = vpop.permute.xlu1 %1642 }
 0x381   : > { %6281 = vpow2.f32 %v1097_v5 }
 0x382   : > { %6283 = vpow2.f32 %v1103_v21 }
 0x383   : > { %6285 = vpow2.f32 %v1117_v9 }
 0x384   : > { %6287 = vpow2.f32 %v1105_v48  ;;  %v1647_v0 = vpop.permute.xlu1 %1646 }
 0x385   : > { %6289 = vpow2.f32 %v1107_v14 }
 0x386   : > { %6291 = vpow2.f32 %v1119_v18 }
 0x387   : > { %6293 = vpow2.f32 %v1121_v55 }
 0x388   : > { %6295 = vpow2.f32 %v1109_v63 }
 0x38c   : > { %v7211_v13 = vpop.eup %6277 }
 0x38d   : > { %v7213_v41 = vpop.eup %6279  ;;  %5755 = vmatprep.mubr.msk.f32.mxu1 %vm587_vm0, %v7211_v13 }
 0x38e   : > { %v7217_v43 = vpop.eup %6281  ;;  %5741 = vmatprep.mubr.msk.f32.mxu0 %vm587_vm0, %v7213_v41  ;;  %5756 = vmatmul.mubr.msk.f32.gmra.mxu1 %vm587_vm0, %v7209_v19 }
 0x38f   : > { %v7223_v42 = vpop.eup %6283  ;;  %5742 = vmatmul.mubr.msk.f32.gmra.mxu0 %vm587_vm0, %v7217_v43  ;;  %5780 = vmatprep.mubr.msk.f32.mxu1 %vm587_vm0, %v7207_v37 }
 0x390   : > { %5766 = vmatprep.mubr.msk.f32.mxu0 %vm587_vm0, %v7223_v42  ;;  %v7231_v52 = vpop.eup %6285 }
 0x391   : > { %v7233_v60 = vpop.eup %6287 }
 0x392   : > { %5781 = vmatmul.mubr.msk.f32.vlgmr.msra.gmra.mxu1 %vm587_vm0, %v7231_v52  ;;  %v7237_v62 = vpop.eup %6289 }
 0x393   : > { %5767 = vmatmul.mubr.msk.f32.vlgmr.msra.gmra.mxu0 %vm587_vm0, %v7233_v60  ;;  %5801 = vmatpush3.xpose.msk.msra.mxu1 %vm587_vm0, %v6939_v23  ;;  %v7243_v15 = vpop.eup %6291 }
 0x394   : > { %5787 = vmatpush3.xpose.msk.msra.mxu0 %vm587_vm0, %v6859_v7  ;;  %5769 = vmatprep.mubr.msk.f32.mxu0 %vm587_vm0, %v7237_v62  ;;  %v7249_v34 = vpop.eup %6293 }
 0x395   : > { %5783 = vmatprep.mubr.msk.f32.mxu1 %vm587_vm0, %v7243_v15  ;;  %5788 = vmatprep.subr.msk.mxu0 %vm587_vm0, %v6861_v8  ;;  %v7255_v36 = vpop.eup %6295 }
 0x396   : > { %5802 = vmatprep.subr.msk.mxu1 %vm587_vm0, %v6947_v25  ;;  %5784 = vmatmul.mubr.msk.f32.gmra.mxu1 %vm587_vm0, %v7249_v34 }
 0x397   : > { %5770 = vmatmul.mubr.msk.f32.gmra.mxu0 %vm587_vm0, %v7255_v36  ;;  %5803 = vmatpush3.xpose.msk.msra.mxu1 %vm587_vm0, %v6947_v25 }
 0x398   : > { %5789 = vmatpush3.xpose.msk.msra.mxu0 %vm587_vm0, %v6861_v8  ;;  %5794 = vmatprep.mubr.msk.f32.mxu0 %vm587_vm0, %v1641_v44 }
 0x399   : > { %5790 = vmatprep.subr.msk.mxu0 %vm587_vm0, %v6851_v1  ;;  %5804 = vmatprep.subr.msk.mxu1 %vm587_vm0, %v6937_v22 }
 0x39a   : > { %5808 = vmatprep.mubr.msk.f32.mxu1 %vm587_vm0, %v1641_v44 }
 0x39b   : > { %5805 = vmatpush3.xpose.msk.msra.mxu1 %vm587_vm0, %v6937_v22 }
 0x39c   : > { %5791 = vmatpush3.xpose.msk.msra.mxu0 %vm587_vm0, %v6851_v1  ;;  %5806 = vmatprep.subr.msk.mxu1 %vm587_vm0, %v6945_v24 }
 0x39d   : > { %5792 = vmatprep.subr.msk.mxu0 %vm587_vm0, %v6855_v4 }
 0x39f   : > { %5807 = vmatpush3.xpose.msk.msra.mxu1 %vm587_vm0, %v6945_v24 }
 0x3a0   : > { %5793 = vmatpush3.xpose.msk.msra.mxu0 %vm587_vm0, %v6855_v4  ;;  %5828 = vmatprep.subr.msk.mxu1 %vm587_vm0, %v6957_v27  ;;  %v1834_v4 = vld [vmem:[#allocation8 + $0xd0] sm:$0xff] }
 0x3a1   : > { %5814 = vmatprep.subr.msk.mxu0 %vm587_vm0, %v6955_v26 }
 0x3a2   : > { %5809 = vmatmul.mubr.msk.f32.vlgmr.msra.gmra.mxu1 %vm587_vm0, %v1643_v45 }
 0x3a3   : > { %5795 = vmatmul.mubr.msk.f32.vlgmr.msra.gmra.mxu0 %vm587_vm0, %v1643_v45  ;;  %5811 = vmatprep.mubr.msk.f32.mxu1 %vm587_vm0, %v1645_v58 }
 0x3a4   : > { %5797 = vmatprep.mubr.msk.f32.mxu0 %vm587_vm0, %v1645_v58  ;;  %5815 = vmatpush3.xpose.msk.msra.mxu0 %vm587_vm0, %v6955_v26 }
 0x3a5   : > { %5829 = vmatpush3.xpose.msk.msra.mxu1 %vm587_vm0, %v6957_v27  ;;  %5816 = vmatprep.subr.msk.mxu0 %vm587_vm0, %v6967_v28 }
 0x3a6   : > { %5830 = vmatprep.subr.msk.mxu1 %vm587_vm0, %v6975_v29  ;;  %5812 = vmatmul.mubr.msk.f32.gmra.mxu1 %vm587_vm0, %v1647_v0 }
 0x3a7   : > { %5798 = vmatmul.mubr.msk.f32.gmra.mxu0 %vm587_vm0, %v1647_v0  ;;  %5836 = vmatprep.mubr.msk.f32.mxu1 %vm587_vm0, %v1641_v44 }
 0x3a8   : > { %5817 = vmatpush3.xpose.msk.msra.mxu0 %vm587_vm0, %v6967_v28  ;;  %5822 = vmatprep.mubr.msk.f32.mxu0 %vm587_vm0, %v1641_v44 }
 0x3a9   : > { %5831 = vmatpush3.xpose.msk.msra.mxu1 %vm587_vm0, %v6975_v29  ;;  %5818 = vmatprep.subr.msk.mxu0 %vm587_vm0, %v6979_v30 }
 0x3aa   : > { %5832 = vmatprep.subr.msk.mxu1 %vm587_vm0, %v6995_v32 }
 0x3ac   : > { %5819 = vmatpush3.xpose.msk.msra.mxu0 %vm587_vm0, %v6979_v30 }
 0x3ad   : > { %5833 = vmatpush3.xpose.msk.msra.mxu1 %vm587_vm0, %v6995_v32  ;;  %5820 = vmatprep.subr.msk.mxu0 %vm587_vm0, %v6993_v31 }
 0x3ae   : > { %5834 = vmatprep.subr.msk.mxu1 %vm587_vm0, %v7013_v33 }
 0x3b0   : > { %5821 = vmatpush3.xpose.msk.msra.mxu0 %vm587_vm0, %v6993_v31  ;;  %v1743_v31 = vld [vmem:[#allocation8 + $0xa8] sm:$0xff] }
 0x3b1   : > { %5835 = vmatpush3.xpose.msk.msra.mxu1 %vm587_vm0, %v7013_v33  ;;  %5842 = vmatprep.subr.mxu0 %v7037_v35 }
 0x3b2   : > { %5856 = vmatprep.subr.mxu1 %v6913_v17 }
 0x3b3   : > { %5823 = vmatmul.mubr.msk.f32.vlgmr.msra.gmra.mxu0 %vm587_vm0, %v1643_v45 }
 0x3b4   : > { %5837 = vmatmul.mubr.msk.f32.vlgmr.msra.gmra.mxu1 %vm587_vm0, %v1643_v45  ;;  %5825 = vmatprep.mubr.msk.f32.mxu0 %vm587_vm0, %v1645_v58 }
 0x3b5   : > { %5839 = vmatprep.mubr.msk.f32.mxu1 %vm587_vm0, %v1645_v58  ;;  %5843 = vmatpush3.msra.mxu0 %v7037_v35 }
 0x3b6   : > { %5857 = vmatpush3.msra.mxu1 %v6913_v17  ;;  %5844 = vmatprep.subr.mxu0 %v7040_v38 }
 0x3b7   : > { %5858 = vmatprep.subr.mxu1 %v6919_v20  ;;  %5845 = vmatpush3.msra.mxu0 %v7040_v38 }
 0x3b8   : > { %5859 = vmatpush3.msra.mxu1 %v6919_v20  ;;  %5826 = vmatmul.mubr.msk.f32.gmra.mxu0 %vm587_vm0, %v1647_v0 }
 0x3b9   : > { %5840 = vmatmul.mubr.msk.f32.gmra.mxu1 %vm587_vm0, %v1647_v0  ;;  %5846 = vmatprep.subr.mxu0 %v8280_v51 }
 0x3ba   : > { %5860 = vmatprep.subr.mxu1 %v8281_v56  ;;  %5847 = vmatpush3.msra.mxu0 %v8280_v51 }
 0x3bb   : > { %5861 = vmatpush3.msra.mxu1 %v8281_v56  ;;  %5848 = vmatprep.subr.mxu0 %v8282_v57 }
 0x3bc   : > { %5862 = vmatprep.subr.mxu1 %v8283_v3  ;;  %5849 = vmatpush3.msra.mxu0 %v8282_v57 }
 0x3bd   : > { %5863 = vmatpush3.msra.mxu1 %v8283_v3  ;;  %5870 = vmatprep.subr.mxu0 %v7055_v47 }
 0x3be   : > { %5884 = vmatprep.subr.mxu1 %v7069_v54 }
 0x419   : > { %v5754_v5 = vpop.f32.mrf.mxu1 }
 0x41a   : > { %v5740_v6 = vpop.f32.mrf.mxu0 }
 0x41b   : > { %v1388_v40 = vadd.f32 %v5754_v5, %v5740_v6  ;;  %v1382_v21 = vpop.f32.mrf.mxu1 }
 0x41c   : > { %v1285_v50 = vpop.f32.mrf.mxu0 }
 0x41d   : > { %v1383_v12 = vadd.f32 %v1382_v21, %v1285_v50 }
 0x44e   : > { %v5757_v9 = vpop.f32.mrf.mxu1 }
 0x44f   : > { %v5743_v16 = vpop.f32.mrf.mxu0 }
 0x450   : > { %v1398_v48 = vadd.f32 %v5757_v9, %v5743_v16  ;;  %v1392_v61 = vpop.f32.mrf.mxu1 }
 0x451   : > { %v1295_v14 = vpop.f32.mrf.mxu0 }
 0x452   : > { %v1393_v18 = vadd.f32 %v1392_v61, %v1295_v14  ;;  %v5782_v55 = vpop.f32.mrf.mxu1  ;;  %v1637_v61 = vld [vmem:[#allocation8 + $0x88] sm:$0xff] }
 0x453   : > { %v5768_v63 = vpop.f32.mrf.mxu0 }
 0x454   : > { %v1511_v44 = vadd.f32 %v5768_v63, %v1388_v40  ;;  %v1604_v45 = vpop.f32.mrf.mxu1  ;;  %v1742_v40 = vld [vmem:[#allocation8 + $0xa0] sm:$0xff] }
 0x455   : > { %v1491_v58 = vpop.f32.mrf.mxu0 }
 0x456   : > { %v7349_v0 = vadd.f32 %v5782_v55, %v1511_v44  ;;  %v1510_v57 = vadd.f32 %v1491_v58, %v1383_v12  ;;  %v5785_v38 = vpop.f32.mrf.mxu1  ;;  %v1745_v44 = vld [vmem:[#allocation8 + $0xb8] sm:$0xff] }
 0x457   : > { %v5771_v51 = vpop.f32.mrf.mxu0 }
 0x458   : > { %v7351_v5 = vadd.f32 %v1604_v45, %v1510_v57  ;;  %v1513_v6 = vadd.f32 %v5771_v51, %v1398_v48  ;;  %v1614_v16 = vpop.f32.mrf.mxu1 }
 0x459   : > { %v1501_v21 = vpop.f32.mrf.mxu0 }
 0x45a   : > { %v7353_v50 = vadd.f32 %v5785_v38, %v1513_v6  ;;  %v1512_v9 = vadd.f32 %v1501_v21, %v1393_v18  ;;  %v1636_v18 = vld [vmem:[#allocation8 + $0x80] sm:$0xff] }
 0x45c   : > { %v7355_v35 = vadd.f32 %v1614_v16, %v1512_v9  ;;  %v1638_v9 = vld [vmem:[#allocation8 + $0x90] sm:$0xff] }
 0x462   : > { %v5810_v14 = vpop.f32.mrf.mxu1 }
 0x463   : > { %v5796_v63 = vpop.f32.mrf.mxu0  ;;  %v7361_v51 = vadd.f32 %v5810_v14, %v1743_v31  ;;  %v1639_v14 = vld [vmem:[#allocation8 + $0x98] sm:$0xff] }
 0x464   : > { %v7357_v55 = vadd.f32 %v5796_v63, %v1637_v61  ;;  %v1812_v12 = vpop.f32.mrf.mxu1 }
 0x465   : > { %v1722_v58 = vpop.f32.mrf.mxu0  ;;  %v7359_v57 = vadd.f32 %v1812_v12, %v1742_v40  ;;  %v2026_v31 = vsel %vm587_vm0, %v7361_v51, -inf }
 0x466   : > { %v2014_v38 = vsel %vm587_vm0, %v7357_v55, -inf  ;;  %v5813_v48 = vpop.f32.mrf.mxu1  ;;  %v7369_v61 = vadd.f32 %v1722_v58, %v1636_v18 }
 0x467   : > { %2015 = vmax.xlane.f32.xlu0 %v2014_v38  ;;  %v5799_v45 = vpop.f32.mrf.mxu0  ;;  %v7365_v6 = vadd.f32 %v5813_v48, %v1745_v44  ;;  %v2023_v21 = vsel %vm587_vm0, %v7359_v57, -inf  ;;  %v1744_v48 = vld [vmem:[#allocation8 + $0xb0] sm:$0xff] }
 0x468   : > { %2024 = vmax.xlane.f32.xlu1 %v2023_v21  ;;  %v7377_v12 = vadd.f32 %v5799_v45, %v1639_v14  ;;  %v2011_v44 = vsel %vm587_vm0, %v7369_v61, -inf  ;;  %v1822_v38 = vpop.f32.mrf.mxu1  ;;  %v1832_v45 = vld [vmem:[#allocation8 + $0xc0] sm:$0xff] }
 0x469   : > { %v1732_v16 = vpop.f32.mrf.mxu0  ;;  %v2032_v63 = vsel %vm587_vm0, %v7365_v6, -inf  ;;  %v7383_v18 = vadd.f32 %v1822_v38, %v1744_v48  ;;  %v1923_v38 = vld [vmem:[#allocation8 + $0xe8] sm:$0xff] }
 0x46a   : > { %v7373_v40 = vadd.f32 %v1732_v16, %v1638_v9  ;;  %v2020_v21 = vsel %vm587_vm0, %v7377_v12, -inf  ;;  %v1833_v9 = vld [vmem:[#allocation8 + $0xc8] sm:$0xff] }
 0x46b   : > { %2027 = vmax.xlane.f32.xlu0 %v2026_v31 }
 0x46c   : > { %2033 = vmax.xlane.f32.xlu1 %v2032_v63  ;;  %v2017_v58 = vsel %vm587_vm0, %v7373_v40, -inf  ;;  %v1922_v63 = vld [vmem:[#allocation8 + $0xe0] sm:$0xff] }
 0x46f   : > { %2012 = vmax.xlane.f32.xlu0 %v2011_v44 }
 0x470   : > { %2018 = vmax.xlane.f32.xlu1 %v2017_v58  ;;  %v2029_v58 = vsel %vm587_vm0, %v7383_v18, -inf }
 0x473   : > { %2021 = vmax.xlane.f32.xlu0 %v2020_v21  ;;  %v5824_v16 = vpop.f32.mrf.mxu0 }
 0x474   : > { %v5838_v31 = vpop.f32.mrf.mxu1  ;;  %v7387_v30 = vadd.f32 %v5824_v16, %v1833_v9 }
 0x475   : > { %v1902_v14 = vpop.f32.mrf.mxu0  ;;  %v7397_v56 = vadd.f32 %v5838_v31, %v1923_v38  ;;  %v1925_v38 = vld [vmem:[#allocation8 + $0xf8] sm:$0xff] }
 0x476   : > { %v7389_v28 = vadd.f32 %v1902_v14, %v1832_v45  ;;  %v1992_v44 = vpop.f32.mrf.mxu1  ;;  %v2042_v16 = vsel %vm587_vm0, %v7387_v30, -inf  ;;  %v1835_v45 = vld [vmem:[#allocation8 + $0xd8] sm:$0xff] }
 0x477   : > { %2030 = vmax.xlane.f32.xlu0 %v2029_v58  ;;  %v7393_v48 = vadd.f32 %v1992_v44, %v1922_v63  ;;  %v1924_v58 = vld [vmem:[#allocation8 + $0xf0] sm:$0xff]  ;;  %v2058_v31 = vsel %vm587_vm0, %v7397_v56, -inf }
 0x478   : > { %v5827_v26 = vpop.f32.mrf.mxu0  ;;  %v2039_v21 = vsel %vm587_vm0, %v7389_v28, -inf }
 0x479   : > { %v5841_v3 = vpop.f32.mrf.mxu1  ;;  %2040 = vmax.xlane.f32.xlu1 %v2039_v21  ;;  %v2055_v63 = vsel %vm587_vm0, %v7393_v48, -inf  ;;  %v7405_v20 = vadd.f32 %v5827_v26, %v1835_v45 }
 0x47a   : > { %v1912_v9 = vpop.f32.mrf.mxu0 }
 0x47b   : > { %2043 = vmax.xlane.f32.xlu0 %v2042_v16  ;;  %v7401_v14 = vadd.f32 %v1912_v9, %v1834_v4  ;;  %v2002_v44 = vpop.f32.mrf.mxu1  ;;  %v7413_v4 = vadd.f32 %v5841_v3, %v1925_v38  ;;  %v2048_v9 = vsel %vm587_vm0, %v7405_v20, -inf  ;;  %v1135_v3 = vsel %vm587_vm0, %v7157_v11, 0.0 }
 0x47c   : > { %v7409_v21 = vadd.f32 %v2002_v44, %v1924_v58  ;;  %v1138_v44 = vsel %vm587_vm0, %v7161_v59, 0.0  ;;  %v1126_v58 = vsel %vm587_vm0, %v7151_v2, 0.0  ;;  %v1154_v11 = vsel %vm587_vm0, %v7233_v60, 0.0 }
 0x47d   : > { %2056 = vmax.xlane.f32.xlu1 %v2055_v63  ;;  %v2045_v16 = vsel %vm587_vm0, %v7401_v14, -inf  ;;  %v2064_v45 = vsel %vm587_vm0, %v7413_v4, -inf  ;;  %v1123_v63 = vsel %vm587_vm0, %v7155_v10, 0.0  ;;  %v1170_v10 = vsel %vm587_vm0, %v7231_v52, 0.0 }
 0x47e   : > { %v2061_v26 = vsel %vm587_vm0, %v7409_v21, -inf  ;;  %v1141_v59 = vsel %vm587_vm0, %v7213_v41, 0.0  ;;  %v1167_v2 = vsel %vm587_vm0, %v7207_v37, 0.0  ;;  %v1129_v52 = vsel %vm587_vm0, %v7211_v13, 0.0 }
 0x47f   : > { %2059 = vmax.xlane.f32.xlu0 %v2058_v31  ;;  %v1151_v31 = vsel %vm587_vm0, %v7223_v42, 0.0  ;;  %v1132_v42 = vsel %vm587_vm0, %v7209_v19, 0.0  ;;  %v1144_v60 = vsel %vm587_vm0, %v7217_v43, 0.0  ;;  %v1157_v41 = vsel %vm587_vm0, %v7237_v62, 0.0 }
 0x480   : > { %v1160_v37 = vsel %vm587_vm0, %v7255_v36, 0.0  ;;  %v1173_v19 = vsel %vm587_vm0, %v7243_v15, 0.0 }
 0x481   : > { %2046 = vmax.xlane.f32.xlu1 %v2045_v16 }
 0x483   : > { %2049 = vmax.xlane.f32.xlu0 %v2048_v9 }
 0x485   : > { %2062 = vmax.xlane.f32.xlu1 %v2061_v26 }
 0x487   : > { %2065 = vmax.xlane.f32.xlu0 %v2064_v45 }
 0x489   : > { %1124 = vadd.xlane.f32.xlu1 %v1123_v63 }
 0x48b   : > { %1136 = vadd.xlane.f32.xlu0 %v1135_v3 }
 0x48d   : > { %1139 = vadd.xlane.f32.xlu1 %v1138_v44 }
 0x48f   : > { %1127 = vadd.xlane.f32.xlu0 %v1126_v58 }
 0x491   : > { %1152 = vadd.xlane.f32.xlu1 %v1151_v31 }
 0x493   : > { %1171 = vadd.xlane.f32.xlu0 %v1170_v10 }
 0x495   : > { %1155 = vadd.xlane.f32.xlu1 %v1154_v11 }
 0x497   : > { %1142 = vadd.xlane.f32.xlu0 %v1141_v59 }
 0x499   : > { %1168 = vadd.xlane.f32.xlu1 %v1167_v2 }
 0x49b   : > { %1133 = vadd.xlane.f32.xlu0 %v1132_v42 }
 0x49d   : > { %1130 = vadd.xlane.f32.xlu1 %v1129_v52 }
 0x4a1   : > { %1145 = vadd.xlane.f32.xlu1 %v1144_v60 }
 0x4a5   : > { %1158 = vadd.xlane.f32.xlu1 %v1157_v41 }
 0x4a9   : > { %1161 = vadd.xlane.f32.xlu1 %v1160_v37 }
 0x4ad   : > { %1174 = vadd.xlane.f32.xlu1 %v1173_v19 }
 0x4f0   : > { %v2016_v38 = vpop.xlane.xlu0 %2015 }
 0x4f1   : > { %v2025_v16 = vpop.xlane.xlu1 %2024 }
 0x4f4   : > { %v2028_v13 = vpop.xlane.xlu0 %2027 }
 0x4f5   : > { %v2034_v9 = vpop.xlane.xlu1 %2033  ;;  %v2036_v31 = vmax.f32 %v2016_v38, %v2028_v13 }
 0x4f8   : > { %v2013_v26 = vpop.xlane.xlu0 %2012 }
 0x4f9   : > { %v2019_v43 = vpop.xlane.xlu1 %2018  ;;  %v2035_v44 = vmax.f32 %v2013_v26, %v2025_v16 }
 0x4fc   : > { %v2022_v45 = vpop.xlane.xlu0 %2021 }
 0x500   : > { %v2031_v63 = vpop.xlane.xlu0 %2030 }
 0x501   : > { %v2037_v60 = vmax.f32 %v2019_v43, %v2031_v63 }
 0x502   : > { %v2041_v3 = vpop.xlane.xlu1 %2040 }
 0x503   : > { %v2051_v58 = vmax.f32 %v2035_v44, %v2041_v3  ;;  %v2038_v3 = vmax.f32 %v2022_v45, %v2034_v9 }
 0x504   : > { %v2044_v62 = vpop.xlane.xlu0 %2043 }
 0x505   : > { %v2052_v11 = vmax.f32 %v2036_v31, %v2044_v62 }
 0x506   : > { %v2057_v10 = vpop.xlane.xlu1 %2056 }
 0x507   : > { %v2067_v36 = vmax.f32 %v2051_v58, %v2057_v10 }
 0x508   : > { %v2060_v59 = vpop.xlane.xlu0 %2059 }
 0x509   : > { %v2071_v15 = vsub.f32 %v7369_v61, %v2067_v36  ;;  %v2083_v2 = vsub.f32 %v7359_v57, %v2067_v36  ;;  %v2068_v42 = vmax.f32 %v2052_v11, %v2060_v59  ;;  %v2095_v38 = vsub.f32 %v7389_v28, %v2067_v36 }
 0x50a   : > { %v2047_v52 = vpop.xlane.xlu1 %2046 }
 0x50b   : > { %v2075_v41 = vmul.f32 1.442695, %v2071_v15  ;;  %v2087_v37 = vmul.f32 1.442695, %v2083_v2  ;;  %v2072_v19 = vsub.f32 %v7357_v55, %v2068_v42  ;;  %v2084_v16 = vsub.f32 %v7361_v51, %v2068_v42 }
 0x50c   : > { %v2050_v26 = vpop.xlane.xlu0 %2049  ;;  %v2053_v13 = vmax.f32 %v2037_v60, %v2047_v52  ;;  %v2096_v57 = vsub.f32 %v7387_v30, %v2068_v42  ;;  %v2108_v43 = vsub.f32 %v7397_v56, %v2068_v42  ;;  %v2099_v55 = vmul.f32 1.442695, %v2095_v38 }
 0x50d   : > { %6297 = vpow2.f32 %v2075_v41  ;;  %v2077_v44 = vmul.f32 1.442695, %v2072_v19  ;;  %v2089_v61 = vmul.f32 1.442695, %v2084_v16  ;;  %v2054_v58 = vmax.f32 %v2038_v3, %v2050_v26 }
 0x50e   : > { %6299 = vpow2.f32 %v2087_v37  ;;  %v2063_v62 = vpop.xlane.xlu1 %2062  ;;  %v2101_v28 = vmul.f32 1.442695, %v2096_v57  ;;  %v2113_v11 = vmul.f32 1.442695, %v2108_v43  ;;  %v2107_v52 = vsub.f32 %v7393_v48, %v2067_v36 }
 0x50f   : > { %v2069_v63 = vmax.f32 %v2053_v13, %v2063_v62  ;;  %6301 = vpow2.f32 %v2077_v44 }
 0x510   : > { %v2066_v31 = vpop.xlane.xlu0 %2065  ;;  %6303 = vpow2.f32 %v2089_v61 }
 0x511   : > { %v2073_v51 = vsub.f32 %v7373_v40, %v2069_v63  ;;  %v2085_v9 = vsub.f32 %v7383_v18, %v2069_v63  ;;  %v2070_v45 = vmax.f32 %v2054_v58, %v2066_v31  ;;  %6305 = vpow2.f32 %v2099_v55 }
 0x512   : > { %v1125_v10 = vpop.xlane.xlu1 %1124  ;;  %6307 = vpow2.f32 %v2101_v28  ;;  %v2097_v41 = vsub.f32 %v7401_v14, %v2069_v63  ;;  %v2109_v19 = vsub.f32 %v7409_v21, %v2069_v63  ;;  %v8284_v28 = vld [vmem:[#allocation40_spill] sm:$0xff] }
 0x513   : > { %v2091_v59 = vmul.f32 1.442695, %v2085_v9  ;;  %v2074_v30 = vsub.f32 %v7377_v12, %v2070_v45  ;;  %v2086_v15 = vsub.f32 %v7365_v6, %v2070_v45  ;;  %v2079_v56 = vmul.f32 1.442695, %v2073_v51 }
 0x514   : > { %6309 = vpow2.f32 %v2113_v11  ;;  %v1137_v18 = vpop.xlane.xlu0 %1136  ;;  %v2111_v6 = vmul.f32 1.442695, %v2107_v52  ;;  %v2103_v36 = vmul.f32 1.442695, %v2097_v41  ;;  %v2098_v16 = vsub.f32 %v7405_v20, %v2070_v45  ;;  %v8285_v11 = vld [vmem:[#allocation41_spill] sm:$0xff]  ;;  %v1634_v41 = vld [vmem:[#allocation9 + $0x18] sm:$0xff] }
 0x515   : > { %v2093_v2 = vmul.f32 1.442695, %v2086_v15  ;;  %v2081_v40 = vmul.f32 1.442695, %v2074_v30  ;;  %6311 = vpow2.f32 %v2091_v59  ;;  %v2115_v38 = vmul.f32 1.442695, %v2109_v19 }
 0x516   : > { %v1140_v42 = vpop.xlane.xlu1 %1139  ;;  %6313 = vpow2.f32 %v2079_v56  ;;  %v2110_v13 = vsub.f32 %v7413_v4, %v2070_v45  ;;  %v1147_v21 = vadd.f32 %v1137_v18, %v1125_v10  ;;  %v2105_v62 = vmul.f32 1.442695, %v2098_v16  ;;  %v1633_v16 = vld [vmem:[#allocation9 + $0x10] sm:$0xff] }
 0x517   : > { %6315 = vpow2.f32 %v2093_v2 }
 0x518   : > { %6317 = vpow2.f32 %v2081_v40  ;;  %v1128_v26 = vpop.xlane.xlu0 %1127  ;;  %v2117_v58 = vmul.f32 1.442695, %v2110_v13  ;;  %v2590_v40 = vld [vmem:[#allocation9 + $0x38] sm:$0xff]  ;;  %v1632_v13 = vld [vmem:[#allocation9 + $0x8] sm:$0xff] }
 0x519   : > { %6319 = vpow2.f32 %v2111_v6  ;;  %v1148_v57 = vadd.f32 %v1140_v42, %v1128_v26 }
 0x51a   : > { %v6298_v60 = vpop.eup %6297  ;;  %v1153_v37 = vpop.xlane.xlu1 %1152  ;;  %6321 = vpow2.f32 %v2103_v36  ;;  %v2589_v36 = vld [vmem:[#allocation9 + $0x30] sm:$0xff] }
 0x51b   : > { %v7464_v12 = vpop.eup %6299  ;;  %5864 = vmatprep.mubr.msk.f32.mxu1 %vm587_vm0, %v6298_v60  ;;  %v1163_v43 = vadd.f32 %v1153_v37, %v1147_v21  ;;  %6323 = vpow2.f32 %v2115_v38  ;;  %v2119_v2 = vsel %vm587_vm0, %v6298_v60, 0.0 }
 0x51c   : > { %5850 = vmatprep.mubr.msk.f32.mxu0 %vm587_vm0, %v7464_v12  ;;  %v6302_v48 = vpop.eup %6301  ;;  %6325 = vpow2.f32 %v2105_v62  ;;  %v1172_v10 = vpop.xlane.xlu0 %1171  ;;  %v2587_v62 = vld [vmem:[#allocation9 + $0x20] sm:$0xff] }
 0x51d   : > { %v6304_v14 = vpop.eup %6303  ;;  %5865 = vmatmul.mubr.msk.f32.vlgmr.msra.gmra.mxu1 %vm587_vm0, %v6302_v48  ;;  %v2122_v61 = vsel %vm587_vm0, %v6302_v48, 0.0  ;;  %6327 = vpow2.f32 %v2117_v58  ;;  %v2131_v48 = vsel %vm587_vm0, %v7464_v12, 0.0 }
 0x51e   : > { %v1156_v3 = vpop.xlane.xlu1 %1155  ;;  %5851 = vmatmul.mubr.msk.f32.vlgmr.msra.gmra.mxu0 %vm587_vm0, %v6304_v14  ;;  %5885 = vmatpush3.msra.mxu1 %v7069_v54  ;;  %v2134_v44 = vsel %vm587_vm0, %v6304_v14, 0.0  ;;  %v6306_v20 = vpop.eup %6305 }
 0x51f   : > { %5871 = vmatpush3.msra.mxu0 %v7055_v47  ;;  %2135 = vadd.xlane.f32.xlu0 %v2134_v44  ;;  %v6308_v63 = vpop.eup %6307  ;;  %v1164_v31 = vadd.f32 %v1156_v3, %v1148_v57  ;;  %v2147_v60 = vsel %vm587_vm0, %v6306_v20, 0.0  ;;  %v2588_v3 = vld [vmem:[#allocation9 + $0x28] sm:$0xff] }
 0x520   : > { %5872 = vmatprep.subr.mxu0 %v7139_v46  ;;  %5886 = vmatprep.subr.mxu1 %v7153_v39  ;;  %v2150_v59 = vsel %vm587_vm0, %v6308_v63, 0.0  ;;  %v1143_v14 = vpop.xlane.xlu0 %1142 }
 0x521   : > { %2123 = vadd.xlane.f32.xlu1 %v2122_v61  ;;  %5873 = vmatpush3.msra.mxu0 %v7139_v46  ;;  %v6310_v55 = vpop.eup %6309  ;;  %v1180_v56 = vadd.f32 %v1172_v10, %v1164_v31 }
 0x522   : > { %v1169_v4 = vpop.xlane.xlu1 %1168  ;;  %5887 = vmatpush3.msra.mxu1 %v7153_v39  ;;  %5874 = vmatprep.subr.mxu0 %v7141_v53  ;;  %v7483_v9 = vpop.eup %6311  ;;  %v2166_v52 = vsel %vm587_vm0, %v6310_v55, 0.0 }
 0x523   : > { %v1179_v51 = vadd.f32 %v1169_v4, %v1163_v43  ;;  %5888 = vmatprep.subr.mxu1 %v8284_v28  ;;  %5875 = vmatpush3.msra.mxu0 %v7141_v53  ;;  %v7487_v45 = vpop.eup %6313  ;;  %v1631_v43 = vld [vmem:[#allocation9] sm:$0xff] }
 0x524   : > { %5889 = vmatpush3.msra.mxu1 %v8284_v28  ;;  %5876 = vmatprep.subr.mxu0 %v8285_v11  ;;  %v7492_v15 = vpop.eup %6315 }
 0x525   : > { %2151 = vadd.xlane.f32.xlu0 %v2150_v59  ;;  %5890 = vmatprep.subr.mxu1 %v7197_v49  ;;  %v6318_v42 = vpop.eup %6317  ;;  %6329 = vrcp.f32 %v1179_v51  ;;  %v2140_v10 = vsel %vm587_vm0, %v7492_v15, 0.0 }
 0x526   : > { %v1131_v30 = vpop.xlane.xlu1 %1130  ;;  %2120 = vadd.xlane.f32.xlu1 %v2119_v2  ;;  %5853 = vmatprep.mubr.msk.f32.mxu0 %vm587_vm0, %v7483_v9  ;;  %6331 = vrcp.f32 %v1180_v56  ;;  %v6320_v37 = vpop.eup %6319  ;;  %v2128_v38 = vsel %vm587_vm0, %v6318_v42, 0.0 }
 0x527   : > { %5867 = vmatprep.mubr.msk.f32.mxu1 %vm587_vm0, %v7487_v45  ;;  %5877 = vmatpush3.msra.mxu0 %v8285_v11  ;;  %v6322_v19 = vpop.eup %6321  ;;  %v1149_v44 = vadd.f32 %v1143_v14, %v1131_v30  ;;  %v2163_v4 = vsel %vm587_vm0, %v6320_v37, 0.0 }
 0x528   : > { %5891 = vmatpush3.msra.mxu1 %v7197_v49  ;;  %5854 = vmatmul.mubr.msk.f32.gmra.mxu0 %vm587_vm0, %v7492_v15  ;;  %v7515_v26 = vpop.eup %6323  ;;  %v2137_v15 = vsel %vm587_vm0, %v7483_v9, 0.0  ;;  %v8286_v9 = vld [vmem:[#allocation16_spill] sm:$0xff] }
 0x529   : > { %5868 = vmatmul.mubr.msk.f32.gmra.mxu1 %vm587_vm0, %v6318_v42  ;;  %2167 = vadd.xlane.f32.xlu0 %v2166_v52  ;;  %v6326_v12 = vpop.eup %6325  ;;  %v2169_v2 = vsel %vm587_vm0, %v7515_v26, 0.0  ;;  %v1176_v42 = vsel %vm587_vm0, %v7249_v34, 0.0  ;;  %v8288_v52 = vld [vmem:[#allocation20_spill] sm:$0xff] }
 0x52a   : > { %v7505_v18 = vpop.xlane.xlu1 %1145  ;;  %2148 = vadd.xlane.f32.xlu1 %v2147_v60  ;;  %5878 = vmatprep.mubr.msk.f32.mxu0 %vm587_vm0, %v6306_v20  ;;  %v6328_v61 = vpop.eup %6327 }
 0x52b   : > { %5892 = vmatprep.mubr.msk.f32.mxu1 %vm587_vm0, %v6320_v37  ;;  %5898 = vmatprep.subr.mxu0 %v2590_v40  ;;  %v2172_v30 = vsel %vm587_vm0, %v6328_v61, 0.0  ;;  %v1134_v60 = vpop.xlane.xlu0 %1133 }
 0x52c   : > { %5912 = vmatprep.subr.mxu1 %v1634_v41  ;;  %5879 = vmatmul.mubr.msk.f32.vlgmr.msra.gmra.mxu0 %vm587_vm0, %v6308_v63 }
 0x52d   : > { %5893 = vmatmul.mubr.msk.f32.vlgmr.msra.gmra.mxu1 %vm587_vm0, %v6310_v55  ;;  %5899 = vmatpush3.msra.mxu0 %v2590_v40  ;;  %v2125_v55 = vsel %vm587_vm0, %v7487_v45, 0.0  ;;  %v2153_v45 = vsel %vm587_vm0, %v6322_v19, 0.0  ;;  %v8289_v40 = vld [vmem:[#allocation18_spill] sm:$0xff] }
 0x52e   : > { %v1159_v6 = vpop.xlane.xlu1 %1158  ;;  %5913 = vmatpush3.msra.mxu1 %v1634_v41  ;;  %2132 = vadd.xlane.f32.xlu0 %v2131_v48 }
 0x52f   : > { %5881 = vmatprep.mubr.msk.f32.mxu0 %vm587_vm0, %v6322_v19  ;;  %5895 = vmatprep.mubr.msk.f32.mxu1 %vm587_vm0, %v7515_v26  ;;  %v1165_v20 = vadd.f32 %v1159_v6, %v1149_v44  ;;  %v1150_v44 = vadd.f32 %v7505_v18, %v1134_v60 }
 0x530   : > { %5900 = vmatprep.subr.mxu0 %v2589_v36  ;;  %5914 = vmatprep.subr.mxu1 %v1633_v16 }
 0x531   : > { %2129 = vadd.xlane.f32.xlu1 %v2128_v38  ;;  %5901 = vmatpush3.msra.mxu0 %v2589_v36 }
 0x532   : > { %v7521_v21 = vpop.xlane.xlu1 %1161  ;;  %5915 = vmatpush3.msra.mxu1 %v1633_v16  ;;  %5902 = vmatprep.subr.mxu0 %v2588_v3  ;;  %v6330_v57 = vpop.eup %6329 }
 0x533   : > { %5916 = vmatprep.subr.mxu1 %v1632_v13  ;;  %5882 = vmatmul.mubr.msk.f32.gmra.mxu0 %vm587_vm0, %v6326_v12  ;;  %v6332_v31 = vpop.eup %6331  ;;  %v1627_v51 = vmul.f32 %v6330_v57, %v7351_v5  ;;  %v2156_v5 = vsel %vm587_vm0, %v6326_v12, 0.0 }
 0x534   : > { %5896 = vmatmul.mubr.msk.f32.gmra.mxu1 %vm587_vm0, %v6328_v61  ;;  %5903 = vmatpush3.msra.mxu0 %v2588_v3  ;;  %v1628_v59 = vmul.f32 %v6332_v31, %v7349_v0  ;;  %v1166_v61 = vadd.f32 %v7521_v21, %v1150_v44 }
 0x535   : > { %5917 = vmatpush3.msra.mxu1 %v1632_v13  ;;  %2164 = vadd.xlane.f32.xlu0 %v2163_v4 }
 0x536   : > { %v1175_v63 = vpop.xlane.xlu1 %1174  ;;  %5904 = vmatprep.subr.mxu0 %v2587_v62  ;;  %5918 = vmatprep.subr.mxu1 %v1631_v43 }
 0x537   : > { %v1181_v58 = vadd.f32 %v1175_v63, %v1165_v20  ;;  %2126 = vadd.xlane.f32.xlu1 %v2125_v55  ;;  %5905 = vmatpush3.msra.mxu0 %v2587_v62 }
 0x538   : > { %5919 = vmatpush3.msra.mxu1 %v1631_v43  ;;  %5926 = vmatprep.subr.msk.mxu0 %vm587_vm0, %v6859_v7 }
 0x539   : > { %6333 = vrcp.f32 %v1181_v58  ;;  %5940 = vmatprep.subr.msk.mxu1 %vm587_vm0, %v6939_v23  ;;  %2141 = vadd.xlane.f32.xlu0 %v2140_v10 }
 0x53a   : > { %5920 = vmatprep.mubr.msk.f32.mxu1 %vm587_vm0, %v1627_v51 }
 0x53b   : > { %2154 = vadd.xlane.f32.xlu1 %v2153_v45  ;;  %5921 = vmatmul.mubr.msk.f32.vlgmr.msra.gmra.mxu1 %vm587_vm0, %v1628_v59 }
 0x53c   : > { %5941 = vmatpush3.xpose.msk.msra.mxu1 %vm587_vm0, %v6939_v23 }
 0x53d   : > { %2157 = vadd.xlane.f32.xlu0 %v2156_v5  ;;  %5942 = vmatprep.subr.msk.mxu1 %vm587_vm0, %v6947_v25 }
 0x540   : > { %5943 = vmatpush3.xpose.msk.msra.mxu1 %vm587_vm0, %v6947_v25 }
 0x541   : > { %2173 = vadd.xlane.f32.xlu0 %v2172_v30  ;;  %5944 = vmatprep.subr.msk.mxu1 %vm587_vm0, %v6937_v22 }
 0x544   : > { %5945 = vmatpush3.xpose.msk.msra.mxu1 %vm587_vm0, %v6937_v22 }
 0x545   : > { %2138 = vadd.xlane.f32.xlu0 %v2137_v15  ;;  %5946 = vmatprep.subr.msk.mxu1 %vm587_vm0, %v6945_v24 }
 0x546   : > { %v6334_v0 = vpop.eup %6333 }
 0x547   : > { %v1629_v56 = vmul.f32 %v6334_v0, %v7355_v35  ;;  %v8287_v35 = vld [vmem:[#allocation19_spill] sm:$0xff] }
 0x548   : > { %5947 = vmatpush3.xpose.msk.msra.mxu1 %vm587_vm0, %v6945_v24 }
 0x549   : > { %5923 = vmatprep.mubr.msk.f32.mxu1 %vm587_vm0, %v1629_v56  ;;  %2170 = vadd.xlane.f32.xlu0 %v2169_v2 }
 0x54a   : > { %5968 = vmatprep.subr.msk.mxu1 %vm587_vm0, %v6957_v27 }
 0x54c   : > { %2790 = vrot.lane.b32.xlu1 %v8286_v9, %s6628_s12 }
 0x54d   : > { %1177 = vadd.xlane.f32.xlu0 %v1176_v42 }
 0x550   : > { %2794 = vrot.lane.b32.xlu1 %v8287_v35, %s6628_s12 }
 0x554   : > { %2796 = vrot.lane.b32.xlu1 %v8288_v52, %s6628_s12 }
 0x563   : > { %2792 = vrot.lane.b32.xlu0 %v8289_v40, %s6628_s12  ;;  %s6543_s12 = scalar_lea.vmem %s8121_s27, 512 }
 0x564   : > { %p6544_p11 = scmp.ne.s32.totalorder %s8121_s27, %s6543_s12 }
 0x566   : > { %p6545_p3 = pnand %p6544_p11, %p8327_p13 }
 0x568   : > { %p6546_p0 = pneg %p6545_p3 }
 0x5a8   : > { %v2136_v41 = vpop.xlane.xlu0 %2135 }
 0x5aa   : > { %v2124_v36 = vpop.xlane.xlu1 %2123 }
 0x5ab   : > { %v2144_v63 = vadd.f32 %v2136_v41, %v2124_v36 }
 0x5ae   : > { %v2152_v37 = vpop.xlane.xlu0 %2151 }
 0x5af   : > { %v2121_v26 = vpop.xlane.xlu1 %2120  ;;  %v2160_v31 = vadd.f32 %v2152_v37, %v2144_v63 }
 0x5b2   : > { %v2168_v6 = vpop.xlane.xlu0 %2167 }
 0x5b3   : > { %v2149_v14 = vpop.xlane.xlu1 %2148  ;;  %v2176_v10 = vadd.f32 %v2168_v6, %v2160_v31 }
 0x5b7   : > { %v2133_v19 = vpop.xlane.xlu0 %2132 }
 0x5b8   : > { %v2143_v43 = vadd.f32 %v2133_v19, %v2121_v26 }
 0x5ba   : > { %v2130_v13 = vpop.xlane.xlu1 %2129  ;;  %v2159_v4 = vadd.f32 %v2149_v14, %v2143_v43 }
 0x5be   : > { %v2165_v48 = vpop.xlane.xlu0 %2164 }
 0x5bf   : > { %v2175_v51 = vadd.f32 %v2165_v48, %v2159_v4 }
 0x5c0   : > { %v2127_v62 = vpop.xlane.xlu1 %2126 }
 0x5c2   : > { %v2142_v16 = vpop.xlane.xlu0 %2141 }
 0x5c3   : > { %v2146_v18 = vadd.f32 %v2142_v16, %v2130_v13 }
 0x5c4   : > { %v2155_v58 = vpop.xlane.xlu1 %2154 }
 0x5c6   : > { %v2158_v34 = vpop.xlane.xlu0 %2157 }
 0x5c7   : > { %v2162_v15 = vadd.f32 %v2158_v34, %v2146_v18 }
 0x5c8   : > { %v7575_v5 = vpop.permute.xlu1 %2790 }
 0x5ca   : > { %v2174_v3 = vpop.xlane.xlu0 %2173 }
 0x5cb   : > { %v2178_v41 = vadd.f32 %v2174_v3, %v2162_v15 }
 0x5cc   : > { %v7579_v6 = vpop.permute.xlu1 %2794 }
 0x5ce   : > { %v2139_v38 = vpop.xlane.xlu0 %2138 }
 0x5cf   : > { %v2145_v55 = vadd.f32 %v2139_v38, %v2127_v62 }
 0x5d0   : > { %v7593_v13 = vpop.permute.xlu1 %2796 }
 0x5d1   : > { %v2161_v30 = vadd.f32 %v2155_v58, %v2145_v55 }
 0x5d2   : > { %v2171_v12 = vpop.xlane.xlu0 %2170 }
 0x5d3   : > { %v2177_v42 = vadd.f32 %v2171_v12, %v2161_v30 }
 0x5d6   : > { %v1178_v57 = vpop.xlane.xlu0 %1177 }
 0x5d7   : > { %v1182_v20 = vadd.f32 %v1178_v57, %v1166_v61 }
 0x5d9   : > { %6335 = vrcp.f32 %v1182_v20 }
 0x5da   : > { %6337 = vrcp.f32 %v2175_v51  ;;  %v7583_v16 = vpop.permute.xlu0 %2792 }
 0x5db   : > { %6339 = vrcp.f32 %v2176_v10 }
 0x5dc   : > { %6341 = vrcp.f32 %v2177_v42  ;;  %v8292_v42 = vld [vmem:[#allocation17_spill] sm:$0xff] }
 0x5dd   : > { %v5866_v45 = vpop.f32.mrf.mxu1  ;;  %6343 = vrcp.f32 %v2178_v41  ;;  %v8294_v41 = vld [vmem:[#allocation28_spill] sm:$0xff] }
 0x5de   : > { %v5852_v59 = vpop.f32.mrf.mxu0 }
 0x5df   : > { %v2362_v56 = vpop.f32.mrf.mxu1  ;;  %v2368_v48 = vadd.f32 %v5866_v45, %v5852_v59 }
 0x5e0   : > { %v2265_v0 = vpop.f32.mrf.mxu0 }
 0x5e6   : > { %v6336_v21 = vpop.eup %6335 }
 0x5e7   : > { %v1630_v2 = vmul.f32 %v6336_v21, %v7353_v50  ;;  %v2363_v50 = vadd.f32 %v2362_v56, %v2265_v0  ;;  %v6338_v57 = vpop.eup %6337  ;;  %v8290_v56 = vld [vmem:[#allocation23_spill] sm:$0xff] }
 0x5e8   : > { %v5855_v60 = vpop.f32.mrf.mxu0  ;;  %v6340_v62 = vpop.eup %6339 }
 0x5e9   : > { %5924 = vmatmul.mubr.msk.f32.gmra.mxu1 %vm587_vm0, %v1630_v2  ;;  %v5869_v37 = vpop.f32.mrf.mxu1  ;;  %v6342_v18 = vpop.eup %6341  ;;  %v8291_v2 = vld [vmem:[#allocation22_spill] sm:$0xff] }
 0x5ea   : > { %5948 = vmatprep.mubr.msk.f32.mxu1 %vm587_vm0, %v7575_v5  ;;  %v2275_v19 = vpop.f32.mrf.mxu0  ;;  %v2378_v20 = vadd.f32 %v5869_v37, %v5855_v60  ;;  %v6344_v21 = vpop.eup %6343  ;;  %v8293_v60 = vld [vmem:[#allocation24_spill] sm:$0xff]  ;;  %v8295_v37 = vld [vmem:[#allocation30_spill] sm:$0xff] }
 0x5eb   : > { %v2372_v36 = vpop.f32.mrf.mxu1 }
 0x5ec   : > { %v5880_v26 = vpop.f32.mrf.mxu0  ;;  %v2373_v63 = vadd.f32 %v2372_v36, %v2275_v19  ;;  %v8296_v19 = vld [vmem:[#allocation32_spill] sm:$0xff] }
 0x5ed   : > { %5949 = vmatmul.mubr.msk.f32.vlgmr.msra.gmra.mxu1 %vm587_vm0, %v7583_v16  ;;  %v2479_v34 = vadd.f32 %v5880_v26, %v2368_v48  ;;  %v5894_v3 = vpop.f32.mrf.mxu1  ;;  %v8297_v48 = vld [vmem:[#allocation33_spill] sm:$0xff]  ;;  %v8298_v36 = vld [vmem:[#allocation36_spill] sm:$0xff]  ;;  %v8300_v26 = vld [vmem:[#allocation38_spill] sm:$0xff] }
 0x5ee   : > { %5969 = vmatpush3.xpose.msk.msra.mxu1 %vm587_vm0, %v6957_v27  ;;  %5951 = vmatprep.mubr.msk.f32.mxu1 %vm587_vm0, %v7579_v6  ;;  %v2459_v14 = vpop.f32.mrf.mxu0 }
 0x5ef   : > { %5970 = vmatprep.subr.msk.mxu1 %vm587_vm0, %v6975_v29  ;;  %v2478_v38 = vadd.f32 %v2459_v14, %v2363_v50  ;;  %v2580_v12 = vadd.f32 %v5894_v3, %v2479_v34  ;;  %v2560_v44 = vpop.f32.mrf.mxu1  ;;  %v8301_v50 = vld [vmem:[#allocation39_spill] sm:$0xff]  ;;  %v2893_v14 = vld [vmem:[#allocation8 + $0x128] sm:$0xff] }
 0x5f1   : > { %5952 = vmatmul.mubr.msk.f32.gmra.mxu1 %vm587_vm0, %v7593_v13  ;;  %v2579_v61 = vadd.f32 %v2560_v44, %v2478_v38  ;;  %v2584_v58 = vmul.f32 %v6340_v62, %v2580_v12  ;;  %v2892_v12 = vld [vmem:[#allocation8 + $0x120] sm:$0xff] }
 0x5f2   : > { %5971 = vmatpush3.xpose.msk.msra.mxu1 %vm587_vm0, %v6975_v29  ;;  %5976 = vmatprep.mubr.msk.f32.mxu1 %vm587_vm0, %v7575_v5 }
 0x5f3   : > { %v2583_v43 = vmul.f32 %v6338_v57, %v2579_v61  ;;  %5972 = vmatprep.subr.msk.mxu1 %vm587_vm0, %v6995_v32  ;;  %v5883_v4 = vpop.f32.mrf.mxu0  ;;  %v2895_v61 = vld [vmem:[#allocation8 + $0x138] sm:$0xff] }
 0x5f4   : > { %v2481_v31 = vadd.f32 %v5883_v4, %v2378_v20  ;;  %v5897_v55 = vpop.f32.mrf.mxu1 }
 0x5f5   : > { %v2469_v51 = vpop.f32.mrf.mxu0  ;;  %5906 = vmatprep.mubr.msk.f32.mxu0 %vm587_vm0, %v2583_v43  ;;  %v2894_v43 = vld [vmem:[#allocation8 + $0x130] sm:$0xff] }
 0x5f6   : > { %5973 = vmatpush3.xpose.msk.msra.mxu1 %vm587_vm0, %v6995_v32  ;;  %v2480_v10 = vadd.f32 %v2469_v51, %v2373_v63  ;;  %5907 = vmatmul.mubr.msk.f32.vlgmr.msra.gmra.mxu0 %vm587_vm0, %v2584_v58  ;;  %v2582_v59 = vadd.f32 %v5897_v55, %v2481_v31  ;;  %v2570_v45 = vpop.f32.mrf.mxu1 }
 0x5f7   : > { %5974 = vmatprep.subr.msk.mxu1 %vm587_vm0, %v7013_v33  ;;  %5927 = vmatpush3.xpose.msk.msra.mxu0 %vm587_vm0, %v6859_v7 }
 0x5f8   : > { %v2581_v30 = vadd.f32 %v2570_v45, %v2480_v10  ;;  %5928 = vmatprep.subr.msk.mxu0 %vm587_vm0, %v6861_v8  ;;  %v2586_v15 = vmul.f32 %v6344_v21, %v2582_v59 }
 0x5fa   : > { %v2585_v0 = vmul.f32 %v6342_v18, %v2581_v30  ;;  %5975 = vmatpush3.xpose.msk.msra.mxu1 %vm587_vm0, %v7013_v33  ;;  %v3073_v30 = vld [vmem:[#allocation8 + $0x168] sm:$0xff] }
 0x5fb   : > { %5996 = vmatprep.subr.mxu1 %v6913_v17  ;;  %5929 = vmatpush3.xpose.msk.msra.mxu0 %vm587_vm0, %v6861_v8 }
 0x5fc   : > { %5909 = vmatprep.mubr.msk.f32.mxu0 %vm587_vm0, %v2585_v0  ;;  %5930 = vmatprep.subr.msk.mxu0 %vm587_vm0, %v6851_v1  ;;  %v3072_v0 = vld [vmem:[#allocation8 + $0x160] sm:$0xff] }
 0x5fd   : > { %5977 = vmatmul.mubr.msk.f32.vlgmr.msra.gmra.mxu1 %vm587_vm0, %v7583_v16  ;;  %5910 = vmatmul.mubr.msk.f32.gmra.mxu0 %vm587_vm0, %v2586_v15 }
 0x5fe   : > { %5979 = vmatprep.mubr.msk.f32.mxu1 %vm587_vm0, %v7579_v6  ;;  %5997 = vmatpush3.msra.mxu1 %v6913_v17 }
 0x5ff   : > { %5998 = vmatprep.subr.mxu1 %v8290_v56  ;;  %5934 = vmatprep.mubr.msk.f32.mxu0 %vm587_vm0, %v7575_v5 }
 0x600   : > { %5999 = vmatpush3.msra.mxu1 %v8290_v56  ;;  %5931 = vmatpush3.xpose.msk.msra.mxu0 %vm587_vm0, %v6851_v1 }
 0x601   : > { %5980 = vmatmul.mubr.msk.f32.gmra.mxu1 %vm587_vm0, %v7593_v13  ;;  %6000 = vmatprep.subr.mxu1 %v8291_v2 }
 0x602   : > { %6001 = vmatpush3.msra.mxu1 %v8291_v2  ;;  %5932 = vmatprep.subr.msk.mxu0 %vm587_vm0, %v8292_v42 }
 0x603   : > { %6002 = vmatprep.subr.mxu1 %v8293_v60 }
 0x604   : > { %6003 = vmatpush3.msra.mxu1 %v8293_v60  ;;  %5933 = vmatpush3.xpose.msk.msra.mxu0 %vm587_vm0, %v8292_v42 }
 0x605   : > { %6024 = vmatprep.subr.mxu1 %v7069_v54  ;;  %5954 = vmatprep.subr.msk.mxu0 %vm587_vm0, %v8294_v41 }
 0x607   : > { %5935 = vmatmul.mubr.msk.f32.vlgmr.msra.gmra.mxu0 %vm587_vm0, %v7583_v16 }
 0x608   : > { %5937 = vmatprep.mubr.msk.f32.mxu0 %vm587_vm0, %v7579_v6  ;;  %5955 = vmatpush3.xpose.msk.msra.mxu0 %vm587_vm0, %v8294_v41 }
 0x609   : > { %5956 = vmatprep.subr.msk.mxu0 %vm587_vm0, %v8295_v37 }
 0x60b   : > { %5938 = vmatmul.mubr.msk.f32.gmra.mxu0 %vm587_vm0, %v7593_v13 }
 0x60c   : > { %5957 = vmatpush3.xpose.msk.msra.mxu0 %vm587_vm0, %v8295_v37  ;;  %5962 = vmatprep.mubr.msk.f32.mxu0 %vm587_vm0, %v7575_v5  ;;  %v8299_v5 = vld [vmem:[#allocation37_spill] sm:$0xff] }
 0x60d   : > { %5958 = vmatprep.subr.msk.mxu0 %vm587_vm0, %v8296_v19 }
 0x610   : > { %5959 = vmatpush3.xpose.msk.msra.mxu0 %vm587_vm0, %v8296_v19 }
 0x611   : > { %5960 = vmatprep.subr.msk.mxu0 %vm587_vm0, %v8297_v48 }
 0x614   : > { %5961 = vmatpush3.xpose.msk.msra.mxu0 %vm587_vm0, %v8297_v48 }
 0x615   : > { %5982 = vmatprep.subr.mxu0 %v8298_v36 }
 0x617   : > { %5963 = vmatmul.mubr.msk.f32.vlgmr.msra.gmra.mxu0 %vm587_vm0, %v7583_v16 }
 0x618   : > { %5965 = vmatprep.mubr.msk.f32.mxu0 %vm587_vm0, %v7579_v6  ;;  %5983 = vmatpush3.msra.mxu0 %v8298_v36  ;;  %v7683_v6 = vpop.f32.mrf.mxu1 }
 0x619   : > { %5984 = vmatprep.subr.mxu0 %v8299_v5  ;;  %8302 = vst [vmem:[#allocation40_spill] sm:$0xff] %v7683_v6 }
 0x61a   : > { %5985 = vmatpush3.msra.mxu0 %v8299_v5  ;;  %v2766_v16 = vpop.f32.mrf.mxu1 }
 0x61b   : > { %5966 = vmatmul.mubr.msk.f32.gmra.mxu0 %vm587_vm0, %v7593_v13  ;;  %5986 = vmatprep.subr.mxu0 %v8300_v26 }
 0x61c   : > { %5987 = vmatpush3.msra.mxu0 %v8300_v26 }
 0x61d   : > { %5988 = vmatprep.subr.mxu0 %v8301_v50 }
 0x61e   : > { %5989 = vmatpush3.msra.mxu0 %v8301_v50 }
 0x61f   : > { %6010 = vmatprep.subr.mxu0 %v7055_v47 }
 0x6a9   : > { %v5925_v34 = vpop.f32.mrf.mxu1 }
 0x6ab   : > { %v2776_v3 = vpop.f32.mrf.mxu1 }
 0x6ad   : > { %v5950_v38 = vpop.f32.mrf.mxu1 }
 0x6ae   : > { %v7685_v44 = vadd.f32 %v5950_v38, %v2893_v14 }
 0x6af   : > { %v2962_v13 = vpop.f32.mrf.mxu1 }
 0x6b0   : > { %v7687_v57 = vadd.f32 %v2962_v13, %v2892_v12  ;;  %v3176_v20 = vsel %vm587_vm0, %v7685_v44, -inf }
 0x6b1   : > { %3177 = vmax.xlane.f32.xlu0 %v3176_v20  ;;  %v5953_v62 = vpop.f32.mrf.mxu1 }
 0x6b2   : > { %v7691_v4 = vadd.f32 %v5953_v62, %v2895_v61  ;;  %v3173_v63 = vsel %vm587_vm0, %v7687_v57, -inf  ;;  %v2787_v62 = vld [vmem:[#allocation8 + $0x108] sm:$0xff] }
 0x6b3   : > { %v2972_v58 = vpop.f32.mrf.mxu1  ;;  %3174 = vmax.xlane.f32.xlu1 %v3173_v63  ;;  %v2786_v63 = vld [vmem:[#allocation8 + $0x100] sm:$0xff] }
 0x6b4   : > { %v7695_v31 = vadd.f32 %v2972_v58, %v2894_v43  ;;  %v3182_v51 = vsel %vm587_vm0, %v7691_v4, -inf }
 0x6b6   : > { %v3179_v55 = vsel %vm587_vm0, %v7695_v31, -inf  ;;  %v7701_v10 = vpop.f32.mrf.mxu0 }
 0x6b7   : > { %8303 = vst [vmem:[#allocation41_spill] sm:$0xff] %v7701_v10  ;;  %3180 = vmax.xlane.f32.xlu0 %v3179_v55  ;;  %3183 = vmax.xlane.f32.xlu1 %v3182_v51  ;;  %v2789_v51 = vld [vmem:[#allocation8 + $0x118] sm:$0xff] }
 0x6b8   : > { %v2669_v59 = vpop.f32.mrf.mxu0 }
 0x6b9   : > { %v7703_v45 = vadd.f32 %v2766_v16, %v2669_v59 }
 0x6bb   : > { %8304 = vst [vmem:[#allocation16_spill] sm:$0xff] %v7703_v45  ;;  %v3074_v45 = vld [vmem:[#allocation8 + $0x170] sm:$0xff] }
 0x6bd   : > { %v5978_v18 = vpop.f32.mrf.mxu1  ;;  %v5911_v21 = vpop.f32.mrf.mxu0 }
 0x6be   : > { %v7705_v15 = vadd.f32 %v5978_v18, %v3073_v30  ;;  %v7707_v14 = vadd.f32 %v5925_v34, %v5911_v21  ;;  %v2788_v30 = vld [vmem:[#allocation8 + $0x110] sm:$0xff] }
 0x6bf   : > { %v3142_v38 = vpop.f32.mrf.mxu1  ;;  %v2679_v12 = vpop.f32.mrf.mxu0 }
 0x6c0   : > { %8305 = vst [vmem:[#allocation19_spill] sm:$0xff] %v7707_v14  ;;  %v7709_v13 = vadd.f32 %v3142_v38, %v3072_v0  ;;  %v7711_v61 = vadd.f32 %v2776_v3, %v2679_v12  ;;  %v3208_v20 = vsel %vm587_vm0, %v7705_v15, -inf }
 0x6c1   : > { %3209 = vmax.xlane.f32.xlu0 %v3208_v20 }
 0x6c2   : > { %8306 = vst [vmem:[#allocation20_spill] sm:$0xff] %v7711_v61  ;;  %v3205_v16 = vsel %vm587_vm0, %v7709_v13, -inf  ;;  %v2984_v61 = vld [vmem:[#allocation8 + $0x150] sm:$0xff] }
 0x6c3   : > { %3206 = vmax.xlane.f32.xlu1 %v3205_v16  ;;  %v2983_v16 = vld [vmem:[#allocation8 + $0x148] sm:$0xff] }
 0x6c7   : > { %v5936_v43 = vpop.f32.mrf.mxu0 }
 0x6c8   : > { %v7717_v58 = vadd.f32 %v5936_v43, %v2787_v62  ;;  %v2982_v43 = vld [vmem:[#allocation8 + $0x140] sm:$0xff] }
 0x6c9   : > { %v2872_v34 = vpop.f32.mrf.mxu0 }
 0x6ca   : > { %v7719_v55 = vadd.f32 %v2872_v34, %v2786_v63  ;;  %v3164_v3 = vsel %vm587_vm0, %v7717_v58, -inf  ;;  %v5981_v34 = vpop.f32.mrf.mxu1 }
 0x6cb   : > { %3165 = vmax.xlane.f32.xlu0 %v3164_v3  ;;  %v5939_v59 = vpop.f32.mrf.mxu0 }
 0x6cc   : > { %v7723_v21 = vadd.f32 %v5939_v59, %v2789_v51  ;;  %v3161_v38 = vsel %vm587_vm0, %v7719_v55, -inf  ;;  %v2985_v51 = vld [vmem:[#allocation8 + $0x158] sm:$0xff]  ;;  %v3152_v14 = vpop.f32.mrf.mxu1 }
 0x6cd   : > { %v2882_v18 = vpop.f32.mrf.mxu0 }
 0x6ce   : > { %v7725_v0 = vadd.f32 %v2882_v18, %v2788_v30  ;;  %v3170_v20 = vsel %vm587_vm0, %v7723_v21, -inf  ;;  %v3075_v18 = vld [vmem:[#allocation8 + $0x178] sm:$0xff] }
 0x6cf   : > { %3162 = vmax.xlane.f32.xlu0 %v3161_v38 }
 0x6d0   : > { %v3167_v12 = vsel %vm587_vm0, %v7725_v0, -inf }
 0x6d1   : > { %3168 = vmax.xlane.f32.xlu1 %v3167_v12 }
 0x6d3   : > { %3171 = vmax.xlane.f32.xlu0 %v3170_v20 }
 0x6d7   : > { %v5964_v62 = vpop.f32.mrf.mxu0 }
 0x6d8   : > { %v3058_v63 = vadd.f32 %v5964_v62, %v2983_v16  ;;  %v7740_v16 = vadd.f32 %v5981_v34, %v3075_v18 }
 0x6d9   : > { %v3052_v3 = vpop.f32.mrf.mxu0 }
 0x6da   : > { %v7733_v59 = vadd.f32 %v3052_v3, %v2982_v43  ;;  %v3192_v30 = vsel %vm587_vm0, %v3058_v63, -inf  ;;  %v7746_v3 = vadd.f32 %v3152_v14, %v3074_v45 }
 0x6db   : > { %v5967_v38 = vpop.f32.mrf.mxu0  ;;  %3193 = vmax.xlane.f32.xlu0 %v3192_v30  ;;  %v3214_v30 = vsel %vm587_vm0, %v7740_v16, -inf }
 0x6dc   : > { %v7736_v12 = vadd.f32 %v5967_v38, %v2985_v51  ;;  %v3189_v20 = vsel %vm587_vm0, %v7733_v59, -inf  ;;  %v3211_v34 = vsel %vm587_vm0, %v7746_v3, -inf }
 0x6dd   : > { %v3062_v6 = vpop.f32.mrf.mxu0  ;;  %3190 = vmax.xlane.f32.xlu1 %v3189_v20 }
 0x6de   : > { %v7742_v62 = vadd.f32 %v3062_v6, %v2984_v61  ;;  %v3198_v43 = vsel %vm587_vm0, %v7736_v12, -inf }
 0x6df   : > { %3199 = vmax.xlane.f32.xlu0 %v3198_v43 }
 0x6e0   : > { %v3195_v51 = vsel %vm587_vm0, %v7742_v62, -inf }
 0x6e1   : > { %3196 = vmax.xlane.f32.xlu1 %v3195_v51 }
 0x6e3   : > { %3215 = vmax.xlane.f32.xlu0 %v3214_v30 }
 0x6e5   : > { %3212 = vmax.xlane.f32.xlu1 %v3211_v34 }
 0x73a   : > { %v3178_v6 = vpop.xlane.xlu0 %3177 }
 0x73c   : > { %v3175_v38 = vpop.xlane.xlu1 %3174 }
 0x740   : > { %v3181_v61 = vpop.xlane.xlu0 %3180  ;;  %v3184_v43 = vpop.xlane.xlu1 %3183 }
 0x74a   : > { %v3210_v18 = vpop.xlane.xlu0 %3209 }
 0x74c   : > { %v3207_v14 = vpop.xlane.xlu1 %3206 }
 0x754   : > { %v3166_v20 = vpop.xlane.xlu0 %3165 }
 0x755   : > { %v3186_v2 = vmax.f32 %v3166_v20, %v3178_v6 }
 0x758   : > { %v3163_v45 = vpop.xlane.xlu0 %3162 }
 0x759   : > { %v3185_v56 = vmax.f32 %v3163_v45, %v3175_v38 }
 0x75a   : > { %v3169_v60 = vpop.xlane.xlu1 %3168 }
 0x75b   : > { %v3187_v5 = vmax.f32 %v3169_v60, %v3181_v61 }
 0x75c   : > { %v3172_v10 = vpop.xlane.xlu0 %3171 }
 0x764   : > { %v3194_v51 = vpop.xlane.xlu0 %3193 }
 0x765   : > { %v3202_v17 = vmax.f32 %v3186_v2, %v3194_v51  ;;  %v3188_v2 = vmax.f32 %v3172_v10, %v3184_v43 }
 0x766   : > { %v3191_v33 = vpop.xlane.xlu1 %3190 }
 0x767   : > { %v3218_v30 = vmax.f32 %v3202_v17, %v3210_v18  ;;  %v3201_v32 = vmax.f32 %v3185_v56, %v3191_v33 }
 0x768   : > { %v3200_v29 = vpop.xlane.xlu0 %3199 }
 0x769   : > { %v3222_v34 = vsub.f32 %v7717_v58, %v3218_v30  ;;  %v3234_v27 = vsub.f32 %v7685_v44, %v3218_v30  ;;  %v3246_v24 = vsub.f32 %v3058_v63, %v3218_v30  ;;  %v3217_v22 = vmax.f32 %v3201_v32, %v3207_v14 }
 0x76a   : > { %v3197_v25 = vpop.xlane.xlu1 %3196  ;;  %v3204_v44 = vmax.f32 %v3188_v2, %v3200_v29  ;;  %v3258_v60 = vsub.f32 %v7705_v15, %v3218_v30 }
 0x76b   : > { %v3227_v50 = vmul.f32 1.442695, %v3222_v34  ;;  %v3239_v26 = vmul.f32 1.442695, %v3234_v27  ;;  %v3251_v36 = vmul.f32 1.442695, %v3246_v24  ;;  %v3221_v6 = vsub.f32 %v7719_v55, %v3217_v22 }
 0x76c   : > { %v3233_v38 = vsub.f32 %v7687_v57, %v3217_v22  ;;  %v3203_v56 = vmax.f32 %v3187_v5, %v3197_v25  ;;  %v3216_v58 = vpop.xlane.xlu0 %3215  ;;  %v3245_v32 = vsub.f32 %v7733_v59, %v3217_v22  ;;  %v3257_v57 = vsub.f32 %v7709_v13, %v3217_v22 }
 0x76d   : > { %6345 = vpow2.f32 %v3227_v50  ;;  %v3225_v17 = vmul.f32 1.442695, %v3221_v6  ;;  %v3220_v27 = vmax.f32 %v3204_v44, %v3216_v58  ;;  %v3263_v10 = vmul.f32 1.442695, %v3258_v60  ;;  %v3740_v44 = vld [vmem:[#allocation9 + $0x58] sm:$0xff] }
 0x76e   : > { %6347 = vpow2.f32 %v3239_v26  ;;  %v3237_v33 = vmul.f32 1.442695, %v3233_v38  ;;  %v3213_v18 = vpop.xlane.xlu1 %3212  ;;  %v3249_v26 = vmul.f32 1.442695, %v3245_v32  ;;  %v3261_v55 = vmul.f32 1.442695, %v3257_v57 }
 0x76f   : > { %6349 = vpow2.f32 %v3251_v36  ;;  %v3219_v63 = vmax.f32 %v3203_v56, %v3213_v18  ;;  %v3236_v25 = vsub.f32 %v7691_v4, %v3220_v27  ;;  %v3224_v29 = vsub.f32 %v7723_v21, %v3220_v27 }
 0x770   : > { %6351 = vpow2.f32 %v3225_v17  ;;  %v3248_v43 = vsub.f32 %v7736_v12, %v3220_v27 }
 0x771   : > { %6353 = vpow2.f32 %v3237_v33  ;;  %v3223_v24 = vsub.f32 %v7725_v0, %v3219_v63  ;;  %v3235_v50 = vsub.f32 %v7695_v31, %v3219_v63  ;;  %v3243_v59 = vmul.f32 1.442695, %v3236_v25  ;;  %v3737_v25 = vld [vmem:[#allocation9 + $0x40] sm:$0xff] }
 0x772   : > { %6355 = vpow2.f32 %v3249_v26  ;;  %v3231_v0 = vmul.f32 1.442695, %v3224_v29  ;;  %v3247_v31 = vsub.f32 %v7742_v62, %v3219_v63  ;;  %v3259_v4 = vsub.f32 %v7746_v3, %v3219_v63 }
 0x773   : > { %v3229_v5 = vmul.f32 1.442695, %v3223_v24  ;;  %v3241_v36 = vmul.f32 1.442695, %v3235_v50  ;;  %v3260_v62 = vsub.f32 %v7740_v16, %v3220_v27  ;;  %v3255_v3 = vmul.f32 1.442695, %v3248_v43 }
 0x774   : > { %v3253_v14 = vmul.f32 1.442695, %v3247_v31  ;;  %v3265_v51 = vmul.f32 1.442695, %v3259_v4  ;;  %v3739_v27 = vld [vmem:[#allocation9 + $0x50] sm:$0xff]  ;;  %v3738_v50 = vld [vmem:[#allocation9 + $0x48] sm:$0xff] }
 0x775   : > { %6357 = vpow2.f32 %v3229_v5  ;;  %v3267_v16 = vmul.f32 1.442695, %v3260_v62 }
 0x776   : > { %6359 = vpow2.f32 %v3241_v36 }
 0x777   : > { %6361 = vpow2.f32 %v3263_v10 }
 0x778   : > { %6363 = vpow2.f32 %v3261_v55 }
 0x779   : > { %6365 = vpow2.f32 %v3243_v59 }
 0x77a   : > { %v6346_v61 = vpop.eup %6345  ;;  %6367 = vpow2.f32 %v3231_v0 }
 0x77b   : > { %v6348_v15 = vpop.eup %6347  ;;  %v3272_v22 = vsel %vm587_vm0, %v6346_v61, 0.0  ;;  %6369 = vpow2.f32 %v3253_v14 }
 0x77c   : > { %v3284_v13 = vsel %vm587_vm0, %v6348_v15, 0.0  ;;  %3273 = vadd.xlane.f32.xlu1 %v3272_v22  ;;  %v6350_v21 = vpop.eup %6349  ;;  %6371 = vpow2.f32 %v3265_v51 }
 0x77d   : > { %3285 = vadd.xlane.f32.xlu0 %v3284_v13  ;;  %v6352_v20 = vpop.eup %6351  ;;  %v3300_v12 = vsel %vm587_vm0, %v6350_v21, 0.0  ;;  %6373 = vpow2.f32 %v3255_v3 }
 0x77e   : > { %v6354_v45 = vpop.eup %6353  ;;  %6004 = vmatprep.mubr.msk.f32.mxu1 %vm587_vm0, %v6352_v20  ;;  %v3269_v30 = vsel %vm587_vm0, %v6352_v20, 0.0  ;;  %6375 = vpow2.f32 %v3267_v16  ;;  %v8308_v16 = vld [vmem:[#allocation37_spill] sm:$0xff] }
 0x77f   : > { %5990 = vmatprep.mubr.msk.f32.mxu0 %vm587_vm0, %v6354_v45  ;;  %6005 = vmatmul.mubr.msk.f32.vlgmr.msra.gmra.mxu1 %vm587_vm0, %v6346_v61  ;;  %v6356_v34 = vpop.eup %6355  ;;  %v3281_v33 = vsel %vm587_vm0, %v6354_v45, 0.0 }
 0x780   : > { %5991 = vmatmul.mubr.msk.f32.vlgmr.msra.gmra.mxu0 %vm587_vm0, %v6348_v15  ;;  %6025 = vmatpush3.msra.mxu1 %v7069_v54  ;;  %v3297_v58 = vsel %vm587_vm0, %v6356_v34, 0.0 }
 0x781   : > { %6011 = vmatpush3.msra.mxu0 %v7055_v47  ;;  %6026 = vmatprep.subr.mxu1 %v7153_v39 }
 0x782   : > { %6012 = vmatprep.subr.mxu0 %v7139_v46  ;;  %3301 = vadd.xlane.f32.xlu0 %v3300_v12  ;;  %v7784_v6 = vpop.eup %6357 }
 0x783   : > { %6013 = vmatpush3.msra.mxu0 %v7139_v46  ;;  %6027 = vmatpush3.msra.mxu1 %v7153_v39  ;;  %v6360_v38 = vpop.eup %6359  ;;  %v3275_v36 = vsel %vm587_vm0, %v7784_v6, 0.0 }
 0x784   : > { %3270 = vadd.xlane.f32.xlu1 %v3269_v30  ;;  %6014 = vmatprep.subr.mxu0 %v7141_v53  ;;  %v6362_v2 = vpop.eup %6361  ;;  %v3287_v29 = vsel %vm587_vm0, %v6360_v38, 0.0 }
 0x785   : > { %6028 = vmatprep.subr.mxu1 %v8284_v28  ;;  %6015 = vmatpush3.msra.mxu0 %v7141_v53  ;;  %v6364_v17 = vpop.eup %6363  ;;  %v3316_v32 = vsel %vm587_vm0, %v6362_v2, 0.0 }
 0x786   : > { %6029 = vmatpush3.msra.mxu1 %v8284_v28  ;;  %6007 = vmatprep.mubr.msk.f32.mxu1 %vm587_vm0, %v7784_v6  ;;  %v6366_v56 = vpop.eup %6365  ;;  %v3313_v63 = vsel %vm587_vm0, %v6364_v17, 0.0  ;;  %v8309_v6 = vld [vmem:[#allocation38_spill] sm:$0xff] }
 0x787   : > { %5993 = vmatprep.mubr.msk.f32.mxu0 %vm587_vm0, %v6360_v38  ;;  %6016 = vmatprep.subr.mxu0 %v8285_v11  ;;  %v6368_v18 = vpop.eup %6367  ;;  %v3290_v57 = vsel %vm587_vm0, %v6366_v56, 0.0 }
 0x788   : > { %6030 = vmatprep.subr.mxu1 %v7197_v49  ;;  %6017 = vmatpush3.msra.mxu0 %v8285_v11  ;;  %v6370_v24 = vpop.eup %6369 }
 0x789   : > { %3282 = vadd.xlane.f32.xlu0 %v3281_v33  ;;  %6031 = vmatpush3.msra.mxu1 %v7197_v49  ;;  %v6372_v60 = vpop.eup %6371  ;;  %v3303_v10 = vsel %vm587_vm0, %v6370_v24, 0.0 }
 0x78a   : > { %3298 = vadd.xlane.f32.xlu1 %v3297_v58  ;;  %5994 = vmatmul.mubr.msk.f32.gmra.mxu0 %vm587_vm0, %v6366_v56  ;;  %v6374_v26 = vpop.eup %6373  ;;  %v8310_v56 = vld [vmem:[#allocation39_spill] sm:$0xff] }
 0x78b   : > { %6008 = vmatmul.mubr.msk.f32.gmra.mxu1 %vm587_vm0, %v6368_v18  ;;  %6018 = vmatprep.mubr.msk.f32.mxu0 %vm587_vm0, %v6356_v34  ;;  %v6376_v5 = vpop.eup %6375 }
 0x78c   : > { %6032 = vmatprep.mubr.msk.f32.mxu1 %vm587_vm0, %v6364_v17  ;;  %6052 = vmatprep.subr.msk.mxu1 %vm587_vm0, %v6859_v7  ;;  %v3322_v55 = vsel %vm587_vm0, %v6376_v5, 0.0 }
 0x78d   : > { %6038 = vmatprep.subr.mxu0 %v3740_v44  ;;  %3317 = vadd.xlane.f32.xlu0 %v3316_v32 }
 0x78e   : > { %3314 = vadd.xlane.f32.xlu1 %v3313_v63  ;;  %6019 = vmatmul.mubr.msk.f32.vlgmr.msra.gmra.mxu0 %vm587_vm0, %v6350_v21 }
 0x78f   : > { %6033 = vmatmul.mubr.msk.f32.vlgmr.msra.gmra.mxu1 %vm587_vm0, %v6362_v2  ;;  %6039 = vmatpush3.msra.mxu0 %v3740_v44 }
 0x790   : > { %6053 = vmatpush3.xpose.msk.msra.mxu1 %vm587_vm0, %v6859_v7  ;;  %6021 = vmatprep.mubr.msk.f32.mxu0 %vm587_vm0, %v6370_v24  ;;  %v3278_v7 = vsel %vm587_vm0, %v6368_v18, 0.0 }
 0x791   : > { %6035 = vmatprep.mubr.msk.f32.mxu1 %vm587_vm0, %v6372_v60  ;;  %6040 = vmatprep.subr.mxu0 %v3739_v27 }
 0x792   : > { %6054 = vmatprep.subr.msk.mxu1 %vm587_vm0, %v6861_v8  ;;  %6041 = vmatpush3.msra.mxu0 %v3739_v27 }
 0x793   : > { %6042 = vmatprep.subr.mxu0 %v3738_v50  ;;  %6022 = vmatmul.mubr.msk.f32.gmra.mxu0 %vm587_vm0, %v6374_v26 }
 0x794   : > { %6043 = vmatpush3.msra.mxu0 %v3738_v50  ;;  %3291 = vadd.xlane.f32.xlu0 %v3290_v57 }
 0x795   : > { %6036 = vmatmul.mubr.msk.f32.gmra.mxu1 %vm587_vm0, %v6376_v5  ;;  %3279 = vadd.xlane.f32.xlu1 %v3278_v7 }
 0x796   : > { %6055 = vmatpush3.xpose.msk.msra.mxu1 %vm587_vm0, %v6861_v8  ;;  %6044 = vmatprep.subr.mxu0 %v3737_v25  ;;  %v3306_v8 = vsel %vm587_vm0, %v6374_v26, 0.0 }
 0x797   : > { %6056 = vmatprep.subr.msk.mxu1 %vm587_vm0, %v6851_v1  ;;  %6045 = vmatpush3.msra.mxu0 %v3737_v25 }
 0x798   : > { %6066 = vmatprep.subr.msk.mxu0 %vm587_vm0, %v6939_v23  ;;  %3288 = vadd.xlane.f32.xlu0 %v3287_v29 }
 0x799   : > { %3276 = vadd.xlane.f32.xlu1 %v3275_v36 }
 0x79a   : > { %6057 = vmatpush3.xpose.msk.msra.mxu1 %vm587_vm0, %v6851_v1  ;;  %v3319_v1 = vsel %vm587_vm0, %v6372_v60, 0.0 }
 0x79b   : > { %6058 = vmatprep.subr.msk.mxu1 %vm587_vm0, %v8292_v42 }
 0x79c   : > { %3307 = vadd.xlane.f32.xlu0 %v3306_v8 }
 0x79d   : > { %3304 = vadd.xlane.f32.xlu1 %v3303_v10 }
 0x79e   : > { %6059 = vmatpush3.xpose.msk.msra.mxu1 %vm587_vm0, %v8292_v42 }
 0x79f   : > { %6080 = vmatprep.subr.msk.mxu1 %vm587_vm0, %v8294_v41 }
 0x7a0   : > { %3323 = vadd.xlane.f32.xlu0 %v3322_v55 }
 0x7a1   : > { %3320 = vadd.xlane.f32.xlu1 %v3319_v1 }
 0x7b2   : > { %3847 = vrot.lane.b32.xlu1 %v8286_v9, %s6627_s10 }
 0x7b6   : > { %3851 = vrot.lane.b32.xlu1 %v8287_v35, %s6627_s10  ;;  %3849 = vrot.lane.b32.xlu0 %v8289_v40, %s6627_s10 }
 0x7ba   : > { %3853 = vrot.lane.b32.xlu1 %v8288_v52, %s6627_s10 }
 0x805   : > { %v3274_v59 = vpop.xlane.xlu1 %3273 }
 0x806   : > { %v3286_v42 = vpop.xlane.xlu0 %3285 }
 0x807   : > { %v3294_v12 = vadd.f32 %v3286_v42, %v3274_v59 }
 0x80b   : > { %v3302_v61 = vpop.xlane.xlu0 %3301 }
 0x80d   : > { %v3271_v0 = vpop.xlane.xlu1 %3270 }
 0x812   : > { %v3283_v15 = vpop.xlane.xlu0 %3282 }
 0x813   : > { %v3299_v31 = vpop.xlane.xlu1 %3298 }
 0x816   : > { %v3318_v22 = vpop.xlane.xlu0 %3317 }
 0x817   : > { %v3315_v4 = vpop.xlane.xlu1 %3314 }
 0x81d   : > { %v3292_v13 = vpop.xlane.xlu0 %3291 }
 0x81e   : > { %v3280_v21 = vpop.xlane.xlu1 %3279 }
 0x81f   : > { %v3296_v2 = vadd.f32 %v3292_v13, %v3280_v21 }
 0x821   : > { %v3289_v9 = vpop.xlane.xlu0 %3288 }
 0x822   : > { %v3277_v20 = vpop.xlane.xlu1 %3276 }
 0x825   : > { %v3308_v43 = vpop.xlane.xlu0 %3307 }
 0x826   : > { %v3305_v35 = vpop.xlane.xlu1 %3304  ;;  %v3312_v58 = vadd.f32 %v3308_v43, %v3296_v2 }
 0x829   : > { %v3324_v45 = vpop.xlane.xlu0 %3323 }
 0x82a   : > { %v3321_v14 = vpop.xlane.xlu1 %3320  ;;  %v3328_v32 = vadd.f32 %v3324_v45, %v3312_v58 }
 0x82d   : > { %v7847_v40 = vpop.permute.xlu0 %3849 }
 0x82e   : > { %v7849_v62 = vpop.permute.xlu1 %3847 }
 0x82f   : > { %6060 = vmatprep.mubr.msk.f32.mxu1 %vm587_vm0, %v7849_v62 }
 0x830   : > { %6061 = vmatmul.mubr.msk.f32.vlgmr.msra.gmra.mxu1 %vm587_vm0, %v7847_v40 }
 0x831   : > { %6081 = vmatpush3.xpose.msk.msra.mxu1 %vm587_vm0, %v8294_v41  ;;  %v3293_v41 = vadd.f32 %v3283_v15, %v3271_v0 }
 0x832   : > { %6082 = vmatprep.subr.msk.mxu1 %vm587_vm0, %v8295_v37  ;;  %v7859_v52 = vpop.permute.xlu1 %3851 }
 0x833   : > { %6063 = vmatprep.mubr.msk.f32.mxu1 %vm587_vm0, %v7859_v52  ;;  %v3309_v3 = vadd.f32 %v3299_v31, %v3293_v41  ;;  %v8311_v41 = vld [vmem:[#allocation27_spill] sm:$0xff] }
 0x835   : > { %6083 = vmatpush3.xpose.msk.msra.mxu1 %vm587_vm0, %v8295_v37  ;;  %v8307_v37 = vld [vmem:[#allocation36_spill] sm:$0xff]  ;;  %v3325_v30 = vadd.f32 %v3315_v4, %v3309_v3  ;;  %v8312_v3 = vld [vmem:[#allocation25_spill] sm:$0xff] }
 0x836   : > { %6084 = vmatprep.subr.msk.mxu1 %vm587_vm0, %v8296_v19  ;;  %v7867_v51 = vpop.permute.xlu1 %3853 }
 0x837   : > { %6064 = vmatmul.mubr.msk.f32.gmra.mxu1 %vm587_vm0, %v7867_v51  ;;  %6377 = vrcp.f32 %v3325_v30  ;;  %v8317_v30 = vld [vmem:[#allocation35_spill] sm:$0xff] }
 0x838   : > { %6088 = vmatprep.mubr.msk.f32.mxu1 %vm587_vm0, %v7849_v62 }
 0x839   : > { %6085 = vmatpush3.xpose.msk.msra.mxu1 %vm587_vm0, %v8296_v19  ;;  %v3310_v19 = vadd.f32 %v3302_v61, %v3294_v12  ;;  %v8314_v12 = vld [vmem:[#allocation29_spill] sm:$0xff] }
 0x83a   : > { %6086 = vmatprep.subr.msk.mxu1 %vm587_vm0, %v8297_v48 }
 0x83b   : > { %v3326_v34 = vadd.f32 %v3318_v22, %v3310_v19  ;;  %v8315_v19 = vld [vmem:[#allocation31_spill] sm:$0xff] }
 0x83d   : > { %6087 = vmatpush3.xpose.msk.msra.mxu1 %vm587_vm0, %v8297_v48  ;;  %v3295_v48 = vadd.f32 %v3289_v9, %v3277_v20  ;;  %6379 = vrcp.f32 %v3326_v34  ;;  %v8318_v34 = vld [vmem:[#allocation21_spill] sm:$0xff] }
 0x83e   : > { %6108 = vmatprep.subr.mxu1 %v8307_v37 }
 0x83f   : > { %v6006_v17 = vpop.f32.mrf.mxu1  ;;  %v3311_v33 = vadd.f32 %v3305_v35, %v3295_v48  ;;  %v8320_v48 = vld [vmem:[#allocation22_spill] sm:$0xff] }
 0x840   : > { %6089 = vmatmul.mubr.msk.f32.vlgmr.msra.gmra.mxu1 %vm587_vm0, %v7847_v40  ;;  %v5992_v38 = vpop.f32.mrf.mxu0 }
 0x841   : > { %6091 = vmatprep.mubr.msk.f32.mxu1 %vm587_vm0, %v7859_v52  ;;  %6109 = vmatpush3.msra.mxu1 %v8307_v37  ;;  %v3327_v18 = vadd.f32 %v3321_v14, %v3311_v33  ;;  %v3512_v63 = vpop.f32.mrf.mxu1  ;;  %v3518_v50 = vadd.f32 %v6006_v17, %v5992_v38  ;;  %v3843_v38 = vld [vmem:[#allocation8 + $0x180] sm:$0xff] }
 0x842   : > { %6110 = vmatprep.subr.mxu1 %v8308_v16  ;;  %v3415_v44 = vpop.f32.mrf.mxu0 }
 0x843   : > { %6111 = vmatpush3.msra.mxu1 %v8308_v16  ;;  %6381 = vrcp.f32 %v3327_v18  ;;  %v3513_v25 = vadd.f32 %v3512_v63, %v3415_v44  ;;  %v8316_v16 = vld [vmem:[#allocation34_spill] sm:$0xff] }
 0x844   : > { %6092 = vmatmul.mubr.msk.f32.gmra.mxu1 %vm587_vm0, %v7867_v51  ;;  %6112 = vmatprep.subr.mxu1 %v8309_v6  ;;  %6383 = vrcp.f32 %v3328_v32  ;;  %v6378_v59 = vpop.eup %6377  ;;  %v3845_v44 = vld [vmem:[#allocation8 + $0x190] sm:$0xff] }
 0x845   : > { %6113 = vmatpush3.msra.mxu1 %v8309_v6  ;;  %v8321_v6 = vld [vmem:[#allocation24_spill] sm:$0xff] }
 0x846   : > { %6114 = vmatprep.subr.mxu1 %v8310_v56 }
 0x847   : > { %6115 = vmatpush3.msra.mxu1 %v8310_v56  ;;  %v3846_v56 = vld [vmem:[#allocation8 + $0x198] sm:$0xff] }
 0x848   : > { %6136 = vmatprep.subr.mxu1 %v7055_v47 }
 0x84a   : > { %v5995_v27 = vpop.f32.mrf.mxu0  ;;  %v6380_v15 = vpop.eup %6379 }
 0x84b   : > { %v6009_v24 = vpop.f32.mrf.mxu1 }
 0x84c   : > { %v3425_v60 = vpop.f32.mrf.mxu0  ;;  %v3528_v10 = vadd.f32 %v6009_v24, %v5995_v27 }
 0x84d   : > { %v3522_v26 = vpop.f32.mrf.mxu1 }
 0x84e   : > { %v6020_v57 = vpop.f32.mrf.mxu0  ;;  %v3523_v61 = vadd.f32 %v3522_v26, %v3425_v60 }
 0x84f   : > { %v3629_v5 = vadd.f32 %v6020_v57, %v3518_v50  ;;  %v6034_v7 = vpop.f32.mrf.mxu1  ;;  %v4040_v50 = vld [vmem:[#allocation8 + $0x1c8] sm:$0xff]  ;;  %v4039_v57 = vld [vmem:[#allocation8 + $0x1c0] sm:$0xff] }
 0x850   : > { %v3609_v29 = vpop.f32.mrf.mxu0  ;;  %v6382_v35 = vpop.eup %6381 }
 0x851   : > { %v3628_v36 = vadd.f32 %v3609_v29, %v3513_v25  ;;  %v3710_v8 = vpop.f32.mrf.mxu1  ;;  %v3730_v55 = vadd.f32 %v6034_v7, %v3629_v5  ;;  %v6384_v45 = vpop.eup %6383  ;;  %v4042_v7 = vld [vmem:[#allocation8 + $0x1d8] sm:$0xff] }
 0x853   : > { %v3729_v1 = vadd.f32 %v3710_v8, %v3628_v36  ;;  %v6023_v42 = vpop.f32.mrf.mxu0  ;;  %v3734_v13 = vmul.f32 %v6380_v15, %v3730_v55  ;;  %v8322_v15 = vld [vmem:[#allocation41_spill] sm:$0xff] }
 0x854   : > { %v3631_v0 = vadd.f32 %v6023_v42, %v3528_v10  ;;  %v4041_v10 = vld [vmem:[#allocation8 + $0x1d0] sm:$0xff] }
 0x855   : > { %v3733_v31 = vmul.f32 %v6378_v59, %v3729_v1  ;;  %v6037_v22 = vpop.f32.mrf.mxu1  ;;  %v3619_v4 = vpop.f32.mrf.mxu0 }
 0x856   : > { %v3630_v21 = vadd.f32 %v3619_v4, %v3523_v61  ;;  %v3732_v9 = vadd.f32 %v6037_v22, %v3631_v0 }
 0x857   : > { %v3720_v20 = vpop.f32.mrf.mxu1  ;;  %6046 = vmatprep.mubr.msk.f32.mxu0 %vm587_vm0, %v3733_v31  ;;  %v8323_v31 = vld [vmem:[#allocation40_spill] sm:$0xff] }
 0x858   : > { %v3731_v43 = vadd.f32 %v3720_v20, %v3630_v21  ;;  %6047 = vmatmul.mubr.msk.f32.vlgmr.msra.gmra.mxu0 %vm587_vm0, %v3734_v13  ;;  %v3736_v37 = vmul.f32 %v6384_v45, %v3732_v9  ;;  %v2772_v22 = vadd.f32 %v8323_v31, %v8322_v15  ;;  %v8324_v9 = vld [vmem:[#allocation16_spill] sm:$0xff] }
 0x859   : > { %6067 = vmatpush3.xpose.msk.msra.mxu0 %vm587_vm0, %v6939_v23  ;;  %v8313_v23 = vld [vmem:[#allocation26_spill] sm:$0xff] }
 0x85a   : > { %v3735_v14 = vmul.f32 %v6382_v35, %v3731_v43  ;;  %6068 = vmatprep.subr.msk.mxu0 %vm587_vm0, %v8311_v41  ;;  %v8325_v35 = vld [vmem:[#allocation19_spill] sm:$0xff] }
 0x85c   : > { %6049 = vmatprep.mubr.msk.f32.mxu0 %vm587_vm0, %v3735_v14 }
 0x85d   : > { %6050 = vmatmul.mubr.msk.f32.gmra.mxu0 %vm587_vm0, %v3736_v37 }
 0x85e   : > { %6069 = vmatpush3.xpose.msk.msra.mxu0 %vm587_vm0, %v8311_v41  ;;  %6074 = vmatprep.mubr.msk.f32.mxu0 %vm587_vm0, %v7849_v62  ;;  %v8326_v41 = vld [vmem:[#allocation20_spill] sm:$0xff] }
 0x85f   : > { %6070 = vmatprep.subr.msk.mxu0 %vm587_vm0, %v8312_v3 }
 0x862   : > { %6071 = vmatpush3.xpose.msk.msra.mxu0 %vm587_vm0, %v8312_v3  ;;  %v3950_v3 = vld [vmem:[#allocation8 + $0x1a8] sm:$0xff] }
 0x863   : > { %6072 = vmatprep.subr.msk.mxu0 %vm587_vm0, %v8313_v23 }
 0x866   : > { %6073 = vmatpush3.xpose.msk.msra.mxu0 %vm587_vm0, %v8313_v23 }
 0x867   : > { %6094 = vmatprep.subr.msk.mxu0 %vm587_vm0, %v8314_v12 }
 0x869   : > { %6075 = vmatmul.mubr.msk.f32.vlgmr.msra.gmra.mxu0 %vm587_vm0, %v7847_v40 }
 0x86a   : > { %6077 = vmatprep.mubr.msk.f32.mxu0 %vm587_vm0, %v7859_v52  ;;  %6095 = vmatpush3.xpose.msk.msra.mxu0 %vm587_vm0, %v8314_v12  ;;  %v3949_v12 = vld [vmem:[#allocation8 + $0x1a0] sm:$0xff] }
 0x86b   : > { %6096 = vmatprep.subr.msk.mxu0 %vm587_vm0, %v8315_v19 }
 0x86d   : > { %6078 = vmatmul.mubr.msk.f32.gmra.mxu0 %vm587_vm0, %v7867_v51 }
 0x86e   : > { %6097 = vmatpush3.xpose.msk.msra.mxu0 %vm587_vm0, %v8315_v19  ;;  %6102 = vmatprep.mubr.msk.f32.mxu0 %vm587_vm0, %v7849_v62  ;;  %v8319_v62 = vld [vmem:[#allocation23_spill] sm:$0xff] }
 0x86f   : > { %6098 = vmatprep.subr.msk.mxu0 %vm587_vm0, %v8316_v16 }
 0x872   : > { %6099 = vmatpush3.xpose.msk.msra.mxu0 %vm587_vm0, %v8316_v16 }
 0x873   : > { %6100 = vmatprep.subr.msk.mxu0 %vm587_vm0, %v8317_v30 }
 0x876   : > { %6101 = vmatpush3.xpose.msk.msra.mxu0 %vm587_vm0, %v8317_v30  ;;  %v3952_v30 = vld [vmem:[#allocation8 + $0x1b8] sm:$0xff] }
 0x877   : > { %6122 = vmatprep.subr.mxu0 %v8318_v34 }
 0x879   : > { %6103 = vmatmul.mubr.msk.f32.vlgmr.msra.gmra.mxu0 %vm587_vm0, %v7847_v40  ;;  %v3844_v40 = vld [vmem:[#allocation8 + $0x188] sm:$0xff] }
 0x87a   : > { %6105 = vmatprep.mubr.msk.f32.mxu0 %vm587_vm0, %v7859_v52  ;;  %6123 = vmatpush3.msra.mxu0 %v8318_v34 }
 0x87b   : > { %6124 = vmatprep.subr.mxu0 %v8319_v62 }
 0x87c   : > { %6125 = vmatpush3.msra.mxu0 %v8319_v62 }
 0x87d   : > { %6106 = vmatmul.mubr.msk.f32.gmra.mxu0 %vm587_vm0, %v7867_v51  ;;  %6126 = vmatprep.subr.mxu0 %v8320_v48 }
 0x87e   : > { %6127 = vmatpush3.msra.mxu0 %v8320_v48 }
 0x87f   : > { %6128 = vmatprep.subr.mxu0 %v8321_v6 }
 0x880   : > { %6129 = vmatpush3.msra.mxu0 %v8321_v6  ;;  %v3951_v6 = vld [vmem:[#allocation8 + $0x1b0] sm:$0xff] }
 0x881   : > { %6150 = vmatprep.subr.mxu0 %v7069_v54 }
 0x8f0   : > { %v6062_v52 = vpop.f32.mrf.mxu1 }
 0x8f1   : > { %v7953_v2 = vadd.f32 %v6062_v52, %v3844_v40 }
 0x8f2   : > { %v3929_v17 = vpop.f32.mrf.mxu1 }
 0x8f3   : > { %v7955_v33 = vadd.f32 %v3929_v17, %v3843_v38  ;;  %v4221_v51 = vsel %vm587_vm0, %v7953_v2, -inf }
 0x8f4   : > { %4222 = vmax.xlane.f32.xlu0 %v4221_v51 }
 0x8f5   : > { %v4218_v18 = vsel %vm587_vm0, %v7955_v33, -inf }
 0x8f7   : > { %v6065_v58 = vpop.f32.mrf.mxu1 }
 0x8f8   : > { %v7961_v32 = vadd.f32 %v6065_v58, %v3846_v56  ;;  %4219 = vmax.xlane.f32.xlu0 %v4218_v18  ;;  %v4130_v58 = vld [vmem:[#allocation8 + $0x1e8] sm:$0xff] }
 0x8f9   : > { %v3939_v63 = vpop.f32.mrf.mxu1 }
 0x8fa   : > { %v7963_v27 = vadd.f32 %v3939_v63, %v3845_v44  ;;  %v4227_v24 = vsel %vm587_vm0, %v7961_v32, -inf  ;;  %v4129_v44 = vld [vmem:[#allocation8 + $0x1e0] sm:$0xff] }
 0x8fc   : > { %4228 = vmax.xlane.f32.xlu0 %v4227_v24  ;;  %v4224_v60 = vsel %vm587_vm0, %v7963_v27, -inf }
 0x8fd   : > { %4225 = vmax.xlane.f32.xlu1 %v4224_v60  ;;  %v4132_v60 = vld [vmem:[#allocation8 + $0x1f8] sm:$0xff] }
 0x900   : > { %v6090_v26 = vpop.f32.mrf.mxu1 }
 0x901   : > { %v7969_v25 = vadd.f32 %v6090_v26, %v4040_v50 }
 0x902   : > { %v4109_v5 = vpop.f32.mrf.mxu1 }
 0x903   : > { %v7971_v29 = vadd.f32 %v4109_v5, %v4039_v57  ;;  %v4249_v36 = vsel %vm587_vm0, %v7969_v25, -inf  ;;  %v4131_v5 = vld [vmem:[#allocation8 + $0x1f0] sm:$0xff] }
 0x904   : > { %v6093_v8 = vpop.f32.mrf.mxu1  ;;  %4250 = vmax.xlane.f32.xlu0 %v4249_v36 }
 0x905   : > { %v7975_v55 = vadd.f32 %v6093_v8, %v4042_v7  ;;  %v4246_v1 = vsel %vm587_vm0, %v7971_v29, -inf }
 0x906   : > { %v4119_v42 = vpop.f32.mrf.mxu1  ;;  %4247 = vmax.xlane.f32.xlu1 %v4246_v1 }
 0x907   : > { %v7979_v59 = vadd.f32 %v4119_v42, %v4041_v10  ;;  %v4255_v61 = vsel %vm587_vm0, %v7975_v55, -inf }
 0x908   : > { %4256 = vmax.xlane.f32.xlu0 %v4255_v61 }
 0x909   : > { %v4252_v0 = vsel %vm587_vm0, %v7979_v59, -inf }
 0x90a   : > { %4253 = vmax.xlane.f32.xlu1 %v4252_v0 }
 0x918   : > { %v6048_v4 = vpop.f32.mrf.mxu0 }
 0x919   : > { %v7987_v13 = vadd.f32 %v6048_v4, %v2772_v22 }
 0x91a   : > { %v3819_v21 = vpop.f32.mrf.mxu0 }
 0x91b   : > { %v7990_v20 = vadd.f32 %v3819_v21, %v8324_v9 }
 0x91d   : > { %v6051_v43 = vpop.f32.mrf.mxu0 }
 0x91e   : > { %v7993_v45 = vadd.f32 %v6051_v43, %v8325_v35 }
 0x91f   : > { %v3829_v14 = vpop.f32.mrf.mxu0 }
 0x920   : > { %v7996_v37 = vadd.f32 %v3829_v14, %v8326_v41 }
 0x929   : > { %v6076_v23 = vpop.f32.mrf.mxu0 }
 0x92a   : > { %v7998_v19 = vadd.f32 %v6076_v23, %v3950_v3 }
 0x92b   : > { %v4019_v16 = vpop.f32.mrf.mxu0 }
 0x92c   : > { %v8000_v34 = vadd.f32 %v4019_v16, %v3949_v12  ;;  %v4233_v62 = vsel %vm587_vm0, %v7998_v19, -inf }
 0x92d   : > { %v6079_v48 = vpop.f32.mrf.mxu0  ;;  %4234 = vmax.xlane.f32.xlu0 %v4233_v62 }
 0x92e   : > { %v8004_v40 = vadd.f32 %v6079_v48, %v3952_v30  ;;  %v4230_v52 = vsel %vm587_vm0, %v8000_v34, -inf }
 0x92f   : > { %v4029_v38 = vpop.f32.mrf.mxu0  ;;  %4231 = vmax.xlane.f32.xlu1 %v4230_v52 }
 0x930   : > { %v8008_v17 = vadd.f32 %v4029_v38, %v3951_v6  ;;  %v4239_v51 = vsel %vm587_vm0, %v8004_v40, -inf }
 0x932   : > { %v4236_v56 = vsel %vm587_vm0, %v8008_v17, -inf }
 0x933   : > { %4240 = vmax.xlane.f32.xlu1 %v4239_v51  ;;  %4237 = vmax.xlane.f32.xlu0 %v4236_v56 }
 0x939   : > { %v6104_v18 = vpop.f32.mrf.mxu0 }
 0x93a   : > { %v8014_v63 = vadd.f32 %v6104_v18, %v4130_v58 }
 0x93b   : > { %v4199_v24 = vpop.f32.mrf.mxu0 }
 0x93c   : > { %v8016_v50 = vadd.f32 %v4199_v24, %v4129_v44  ;;  %v4265_v26 = vsel %vm587_vm0, %v8014_v63, -inf }
 0x93d   : > { %v6107_v57 = vpop.f32.mrf.mxu0  ;;  %4266 = vmax.xlane.f32.xlu0 %v4265_v26 }
 0x93e   : > { %v8020_v7 = vadd.f32 %v6107_v57, %v4132_v60  ;;  %v4262_v36 = vsel %vm587_vm0, %v8016_v50, -inf }
 0x93f   : > { %v4209_v8 = vpop.f32.mrf.mxu0  ;;  %4263 = vmax.xlane.f32.xlu1 %v4262_v36 }
 0x940   : > { %v8024_v10 = vadd.f32 %v4209_v8, %v4131_v5  ;;  %v4271_v1 = vsel %vm587_vm0, %v8020_v7, -inf }
 0x941   : > { %4272 = vmax.xlane.f32.xlu0 %v4271_v1 }
 0x942   : > { %v4268_v42 = vsel %vm587_vm0, %v8024_v10, -inf }
 0x943   : > { %4269 = vmax.xlane.f32.xlu1 %v4268_v42 }
 0x97d   : > { %v4223_v61 = vpop.xlane.xlu0 %4222 }
 0x981   : > { %v4220_v0 = vpop.xlane.xlu0 %4219 }
 0x985   : > { %v4229_v31 = vpop.xlane.xlu0 %4228 }
 0x986   : > { %v4226_v15 = vpop.xlane.xlu1 %4225 }
 0x98d   : > { %v4251_v4 = vpop.xlane.xlu0 %4250 }
 0x98f   : > { %v4248_v22 = vpop.xlane.xlu1 %4247 }
 0x991   : > { %v4257_v9 = vpop.xlane.xlu0 %4256 }
 0x993   : > { %v4254_v21 = vpop.xlane.xlu1 %4253 }
 0x9b6   : > { %v4235_v35 = vpop.xlane.xlu0 %4234 }
 0x9b7   : > { %v4243_v14 = vmax.f32 %v4223_v61, %v4235_v35 }
 0x9b8   : > { %v4232_v43 = vpop.xlane.xlu1 %4231 }
 0x9b9   : > { %v4242_v23 = vmax.f32 %v4220_v0, %v4232_v43  ;;  %v4259_v12 = vmax.f32 %v4243_v14, %v4251_v4 }
 0x9bb   : > { %v4258_v6 = vmax.f32 %v4242_v23, %v4248_v22 }
 0x9bc   : > { %v4238_v41 = vpop.xlane.xlu0 %4237  ;;  %v4241_v3 = vpop.xlane.xlu1 %4240 }
 0x9bd   : > { %v4245_v16 = vmax.f32 %v4229_v31, %v4241_v3  ;;  %v4244_v56 = vmax.f32 %v4226_v15, %v4238_v41 }
 0x9bf   : > { %v4261_v18 = vmax.f32 %v4245_v16, %v4257_v9 }
 0x9c6   : > { %v4267_v30 = vpop.xlane.xlu0 %4266 }
 0x9c7   : > { %v4275_v62 = vmax.f32 %v4259_v12, %v4267_v30 }
 0x9c8   : > { %v4264_v48 = vpop.xlane.xlu1 %4263 }
 0x9c9   : > { %v4279_v52 = vsub.f32 %v7953_v2, %v4275_v62  ;;  %v4291_v38 = vsub.f32 %v7998_v19, %v4275_v62  ;;  %v4303_v51 = vsub.f32 %v7969_v25, %v4275_v62  ;;  %v4274_v58 = vmax.f32 %v4258_v6, %v4264_v48 }
 0x9ca   : > { %v4273_v44 = vpop.xlane.xlu0 %4272  ;;  %v4260_v19 = vmax.f32 %v4244_v56, %v4254_v21  ;;  %v4315_v25 = vsub.f32 %v8014_v63, %v4275_v62 }
 0x9cb   : > { %v4284_v24 = vmul.f32 1.442695, %v4279_v52  ;;  %v4296_v60 = vmul.f32 1.442695, %v4291_v38  ;;  %v4308_v26 = vmul.f32 1.442695, %v4303_v51  ;;  %v4278_v57 = vsub.f32 %v7955_v33, %v4274_v58 }
 0x9cc   : > { %v4290_v5 = vsub.f32 %v8000_v34, %v4274_v58  ;;  %v4277_v36 = vmax.f32 %v4261_v18, %v4273_v44  ;;  %v4270_v8 = vpop.xlane.xlu1 %4269  ;;  %v4320_v33 = vmul.f32 1.442695, %v4315_v25  ;;  %v4302_v31 = vsub.f32 %v7971_v29, %v4274_v58 }
 0x9cd   : > { %6385 = vpow2.f32 %v4284_v24  ;;  %v4282_v2 = vmul.f32 1.442695, %v4278_v57  ;;  %v4276_v61 = vmax.f32 %v4260_v19, %v4270_v8  ;;  %v4314_v4 = vsub.f32 %v8016_v50, %v4274_v58  ;;  %v4796_v8 = vld [vmem:[#allocation9 + $0x70] sm:$0xff] }
 0x9ce   : > { %6387 = vpow2.f32 %v4296_v60  ;;  %v4294_v1 = vmul.f32 1.442695, %v4290_v5  ;;  %v4281_v42 = vsub.f32 %v7961_v32, %v4277_v36  ;;  %v4293_v34 = vsub.f32 %v8004_v40, %v4277_v36 }
 0x9cf   : > { %6389 = vpow2.f32 %v4308_v26  ;;  %v4280_v0 = vsub.f32 %v7963_v27, %v4276_v61  ;;  %v4292_v15 = vsub.f32 %v8008_v17, %v4276_v61  ;;  %v4306_v32 = vmul.f32 1.442695, %v4302_v31 }
 0x9d0   : > { %6391 = vpow2.f32 %v4282_v2  ;;  %v4288_v22 = vmul.f32 1.442695, %v4281_v42  ;;  %v4300_v9 = vmul.f32 1.442695, %v4293_v34  ;;  %v4304_v43 = vsub.f32 %v7979_v59, %v4276_v61  ;;  %v4795_v2 = vld [vmem:[#allocation9 + $0x68] sm:$0xff] }
 0x9d1   : > { %6393 = vpow2.f32 %v4294_v1  ;;  %v4286_v21 = vmul.f32 1.442695, %v4280_v0  ;;  %v4298_v63 = vmul.f32 1.442695, %v4292_v15  ;;  %v4318_v35 = vmul.f32 1.442695, %v4314_v4 }
 0x9d2   : > { %6395 = vpow2.f32 %v4320_v33  ;;  %v4316_v27 = vsub.f32 %v8024_v10, %v4276_v61  ;;  %v4305_v29 = vsub.f32 %v7975_v55, %v4277_v36  ;;  %v4317_v14 = vsub.f32 %v8020_v7, %v4277_v36  ;;  %v4797_v36 = vld [vmem:[#allocation9 + $0x78] sm:$0xff]  ;;  %v4794_v1 = vld [vmem:[#allocation9 + $0x60] sm:$0xff] }
 0x9d3   : > { %6397 = vpow2.f32 %v4288_v22  ;;  %v4310_v41 = vmul.f32 1.442695, %v4304_v43 }
 0x9d4   : > { %6399 = vpow2.f32 %v4286_v21  ;;  %v4322_v23 = vmul.f32 1.442695, %v4316_v27  ;;  %v4312_v16 = vmul.f32 1.442695, %v4305_v29  ;;  %v4324_v30 = vmul.f32 1.442695, %v4317_v14 }
 0x9d5   : > { %6401 = vpow2.f32 %v4298_v63 }
 0x9d6   : > { %6403 = vpow2.f32 %v4300_v9 }
 0x9d7   : > { %6405 = vpow2.f32 %v4306_v32 }
 0x9d8   : > { %6407 = vpow2.f32 %v4318_v35 }
 0x9d9   : > { %6409 = vpow2.f32 %v4310_v41 }
 0x9da   : > { %v6386_v40 = vpop.eup %6385  ;;  %6411 = vpow2.f32 %v4322_v23 }
 0x9db   : > { %v6388_v17 = vpop.eup %6387  ;;  %v4329_v50 = vsel %vm587_vm0, %v6386_v40, 0.0  ;;  %6413 = vpow2.f32 %v4312_v16 }
 0x9dc   : > { %v4341_v3 = vsel %vm587_vm0, %v6388_v17, 0.0  ;;  %4330 = vadd.xlane.f32.xlu1 %v4329_v50  ;;  %v6390_v59 = vpop.eup %6389  ;;  %6415 = vpow2.f32 %v4324_v30 }
 0x9dd   : > { %4342 = vadd.xlane.f32.xlu0 %v4341_v3  ;;  %v6392_v10 = vpop.eup %6391  ;;  %v4357_v55 = vsel %vm587_vm0, %v6390_v59, 0.0 }
 0x9de   : > { %v6394_v12 = vpop.eup %6393  ;;  %6130 = vmatprep.mubr.msk.f32.mxu0 %vm587_vm0, %v6392_v10  ;;  %v4326_v62 = vsel %vm587_vm0, %v6392_v10, 0.0 }
 0x9df   : > { %6116 = vmatprep.mubr.msk.f32.mxu1 %vm587_vm0, %v6394_v12  ;;  %6131 = vmatmul.mubr.msk.f32.vlgmr.msra.gmra.mxu0 %vm587_vm0, %v6386_v40  ;;  %v6396_v7 = vpop.eup %6395 }
 0x9e0   : > { %6117 = vmatmul.mubr.msk.f32.vlgmr.msra.gmra.mxu1 %vm587_vm0, %v6388_v17  ;;  %6151 = vmatpush3.msra.mxu0 %v7069_v54  ;;  %v6398_v48 = vpop.eup %6397 }
 0x9e1   : > { %6137 = vmatpush3.msra.mxu1 %v7055_v47  ;;  %6152 = vmatprep.subr.mxu0 %v7153_v39  ;;  %v6400_v47 = vpop.eup %6399  ;;  %v4335_v58 = vsel %vm587_vm0, %v6398_v48, 0.0 }
 0x9e2   : > { %6138 = vmatprep.subr.mxu1 %v7139_v46  ;;  %4358 = vadd.xlane.f32.xlu0 %v4357_v55  ;;  %v6402_v54 = vpop.eup %6401  ;;  %v4332_v24 = vsel %vm587_vm0, %v6400_v47, 0.0 }
 0x9e3   : > { %6139 = vmatpush3.msra.mxu1 %v7139_v46  ;;  %6153 = vmatpush3.msra.mxu0 %v7153_v39  ;;  %v6404_v6 = vpop.eup %6403  ;;  %v4344_v44 = vsel %vm587_vm0, %v6402_v54, 0.0 }
 0x9e4   : > { %4327 = vadd.xlane.f32.xlu1 %v4326_v62  ;;  %6140 = vmatprep.subr.mxu1 %v7141_v53  ;;  %v6406_v46 = vpop.eup %6405  ;;  %v4347_v18 = vsel %vm587_vm0, %v6404_v6, 0.0 }
 0x9e5   : > { %6154 = vmatprep.subr.mxu0 %v8284_v28  ;;  %6141 = vmatpush3.msra.mxu1 %v7141_v53  ;;  %v6408_v39 = vpop.eup %6407  ;;  %v4373_v53 = vsel %vm587_vm0, %v6396_v7, 0.0 }
 0x9e6   : > { %6133 = vmatprep.mubr.msk.f32.mxu0 %vm587_vm0, %v6400_v47  ;;  %6155 = vmatpush3.msra.mxu0 %v8284_v28  ;;  %v4354_v28 = vsel %vm587_vm0, %v6406_v46, 0.0  ;;  %v6410_v52 = vpop.eup %6409  ;;  %v4370_v56 = vsel %vm587_vm0, %v6408_v39, 0.0 }
 0x9e7   : > { %6119 = vmatprep.mubr.msk.f32.mxu1 %vm587_vm0, %v6402_v54  ;;  %6134 = vmatmul.mubr.msk.f32.gmra.mxu0 %vm587_vm0, %v6398_v48  ;;  %v6412_v38 = vpop.eup %6411  ;;  %v4360_v26 = vsel %vm587_vm0, %v6410_v52, 0.0 }
 0x9e8   : > { %6120 = vmatmul.mubr.msk.f32.gmra.mxu1 %vm587_vm0, %v6404_v6  ;;  %6142 = vmatprep.subr.mxu1 %v8285_v11  ;;  %v6414_v51 = vpop.eup %6413  ;;  %v4376_v5 = vsel %vm587_vm0, %v6412_v38, 0.0 }
 0x9e9   : > { %6144 = vmatprep.mubr.msk.f32.mxu1 %vm587_vm0, %v6406_v46  ;;  %6156 = vmatprep.subr.mxu0 %v7197_v49  ;;  %v4363_v60 = vsel %vm587_vm0, %v6414_v51, 0.0 }
 0x9ea   : > { %6158 = vmatprep.mubr.msk.f32.mxu0 %vm587_vm0, %v6408_v39  ;;  %6143 = vmatpush3.msra.mxu1 %v8285_v11  ;;  %v4338_v11 = vsel %vm587_vm0, %v6394_v12, 0.0 }
 0x9eb   : > { %4374 = vadd.xlane.f32.xlu0 %v4373_v53  ;;  %6157 = vmatpush3.msra.mxu0 %v7197_v49  ;;  %v6416_v49 = vpop.eup %6415 }
 0x9ec   : > { %4355 = vadd.xlane.f32.xlu1 %v4354_v28  ;;  %6145 = vmatmul.mubr.msk.f32.vlgmr.msra.gmra.mxu1 %vm587_vm0, %v6390_v59  ;;  %v4379_v57 = vsel %vm587_vm0, %v6416_v49, 0.0 }
 0x9ed   : > { %6159 = vmatmul.mubr.msk.f32.vlgmr.msra.gmra.mxu0 %vm587_vm0, %v6396_v7  ;;  %6147 = vmatprep.mubr.msk.f32.mxu1 %vm587_vm0, %v6410_v52 }
 0x9ee   : > { %6161 = vmatprep.mubr.msk.f32.mxu0 %vm587_vm0, %v6412_v38  ;;  %6164 = vmatprep.subr.mxu1 %v4797_v36 }
 0x9ef   : > { %4339 = vadd.xlane.f32.xlu0 %v4338_v11  ;;  %6165 = vmatpush3.msra.mxu1 %v4797_v36 }
 0x9f0   : > { %4371 = vadd.xlane.f32.xlu1 %v4370_v56  ;;  %6148 = vmatmul.mubr.msk.f32.gmra.mxu1 %vm587_vm0, %v6414_v51 }
 0x9f1   : > { %6162 = vmatmul.mubr.msk.f32.gmra.mxu0 %vm587_vm0, %v6416_v49  ;;  %6166 = vmatprep.subr.mxu1 %v4796_v8 }
 0x9f2   : > { %6167 = vmatpush3.msra.mxu1 %v4796_v8 }
 0x9f3   : > { %4336 = vadd.xlane.f32.xlu0 %v4335_v58  ;;  %6168 = vmatprep.subr.mxu1 %v4795_v2 }
 0x9f4   : > { %4348 = vadd.xlane.f32.xlu1 %v4347_v18  ;;  %6169 = vmatpush3.msra.mxu1 %v4795_v2 }
 0x9f5   : > { %6170 = vmatprep.subr.mxu1 %v4794_v1 }
 0x9f6   : > { %6171 = vmatpush3.msra.mxu1 %v4794_v1 }
 0x9f7   : > { %4345 = vadd.xlane.f32.xlu0 %v4344_v44 }
 0x9f8   : > { %4333 = vadd.xlane.f32.xlu1 %v4332_v24 }
 0x9fb   : > { %4364 = vadd.xlane.f32.xlu0 %v4363_v60 }
 0x9fc   : > { %4361 = vadd.xlane.f32.xlu1 %v4360_v26 }
 0x9ff   : > { %4380 = vadd.xlane.f32.xlu0 %v4379_v57 }
 0xa00   : > { %4377 = vadd.xlane.f32.xlu1 %v4376_v5 }
 0xa65   : > { %v4331_v19 = vpop.xlane.xlu1 %4330 }
 0xa66   : > { %v4343_v25 = vpop.xlane.xlu0 %4342 }
 0xa67   : > { %v4351_v35 = vadd.f32 %v4343_v25, %v4331_v19 }
 0xa6b   : > { %v4359_v61 = vpop.xlane.xlu0 %4358 }
 0xa6c   : > { %v4367_v40 = vadd.f32 %v4359_v61, %v4351_v35 }
 0xa6d   : > { %v4328_v42 = vpop.xlane.xlu1 %4327 }
 0xa74   : > { %v4375_v33 = vpop.xlane.xlu0 %4374 }
 0xa75   : > { %v4356_v0 = vpop.xlane.xlu1 %4355  ;;  %v4383_v14 = vadd.f32 %v4375_v33, %v4367_v40  ;;  %v5318_v33 = vld [vmem:[%s8168_s5] ss:$0 sm:$0xff] }
 0xa76   : > { %v6434_v40 = vld [vmem:[%s6816_s11] sm:$0xff] }
 0xa78   : > { %v4340_v15 = vpop.xlane.xlu0 %4339 }
 0xa79   : > { %v4372_v34 = vpop.xlane.xlu1 %4371  ;;  %v4350_v63 = vadd.f32 %v4340_v15, %v4328_v42 }
 0xa7b   : > { %v4366_v32 = vadd.f32 %v4356_v0, %v4350_v63 }
 0xa7c   : > { %v4337_v22 = vpop.xlane.xlu0 %4336 }
 0xa7d   : > { %v4349_v31 = vpop.xlane.xlu1 %4348  ;;  %v4382_v29 = vadd.f32 %v4372_v34, %v4366_v32 }
 0xa7e   : > { %v4353_v41 = vadd.f32 %v4349_v31, %v4337_v22 }
 0xa7f   : > { %6417 = vrcp.f32 %v4382_v29  ;;  %v6435_v29 = vld [vmem:[%s6816_s11 + $0x18] sm:$0xff] }
 0xa80   : > { %v4346_v21 = vpop.xlane.xlu0 %4345  ;;  %6419 = vrcp.f32 %v4383_v14 }
 0xa81   : > { %v4334_v4 = vpop.xlane.xlu1 %4333 }
 0xa82   : > { %v4352_v50 = vadd.f32 %v4346_v21, %v4334_v4 }
 0xa84   : > { %v4365_v43 = vpop.xlane.xlu0 %4364 }
 0xa85   : > { %v4362_v9 = vpop.xlane.xlu1 %4361  ;;  %v4369_v12 = vadd.f32 %v4365_v43, %v4353_v41 }
 0xa86   : > { %v4368_v59 = vadd.f32 %v4362_v9, %v4352_v50  ;;  %v6433_v9 = vld [vmem:[%s6816_s11 + $0x8] sm:$0xff] }
 0xa88   : > { %v4381_v23 = vpop.xlane.xlu0 %4380 }
 0xa89   : > { %v4378_v3 = vpop.xlane.xlu1 %4377  ;;  %v4385_v55 = vadd.f32 %v4381_v23, %v4369_v12 }
 0xa8a   : > { %v4384_v30 = vadd.f32 %v4378_v3, %v4368_v59 }
 0xa8c   : > { %6421 = vrcp.f32 %v4384_v30  ;;  %v6418_v24 = vpop.eup %6417 }
 0xa8d   : > { %6423 = vrcp.f32 %v4385_v55  ;;  %v6420_v26 = vpop.eup %6419 }
 0xa99   : > { %v6422_v19 = vpop.eup %6421 }
 0xa9a   : > { %v6424_v25 = vpop.eup %6423 }
 0xa9f   : > { %v6132_v27 = vpop.f32.mrf.mxu0 }
 0xaa0   : > { %v6118_v17 = vpop.f32.mrf.mxu1 }
 0xaa1   : > { %v4569_v10 = vpop.f32.mrf.mxu0  ;;  %v4575_v54 = vadd.f32 %v6132_v27, %v6118_v17 }
 0xaa2   : > { %v4472_v16 = vpop.f32.mrf.mxu1 }
 0xaa3   : > { %v4570_v46 = vadd.f32 %v4569_v10, %v4472_v16 }
 0xaa7   : > { %v6135_v7 = vpop.f32.mrf.mxu0 }
 0xaa8   : > { %v6121_v62 = vpop.f32.mrf.mxu1 }
 0xaa9   : > { %v4579_v48 = vpop.f32.mrf.mxu0  ;;  %v4585_v52 = vadd.f32 %v6135_v7, %v6121_v62 }
 0xaaa   : > { %v4482_v47 = vpop.f32.mrf.mxu1 }
 0xaab   : > { %v4580_v49 = vadd.f32 %v4579_v48, %v4482_v47 }
 0xaac   : > { %v6146_v6 = vpop.f32.mrf.mxu1 }
 0xaad   : > { %v4686_v39 = vadd.f32 %v6146_v6, %v4575_v54  ;;  %v6160_v53 = vpop.f32.mrf.mxu0 }
 0xaae   : > { %v4666_v28 = vpop.f32.mrf.mxu1 }
 0xaaf   : > { %v4685_v38 = vadd.f32 %v4666_v28, %v4570_v46  ;;  %v4767_v11 = vpop.f32.mrf.mxu0  ;;  %v4787_v51 = vadd.f32 %v6160_v53, %v4686_v39 }
 0xab0   : > { %v6149_v56 = vpop.f32.mrf.mxu1 }
 0xab1   : > { %v4786_v58 = vadd.f32 %v4767_v11, %v4685_v38  ;;  %v4688_v18 = vadd.f32 %v6149_v56, %v4585_v52  ;;  %v6163_v44 = vpop.f32.mrf.mxu0  ;;  %v4791_v36 = vmul.f32 %v6420_v26, %v4787_v51  ;;  %v5320_v26 = vld [vmem:[%s8168_s5 + $0x2] ss:$0 sm:$0xff] }
 0xab2   : > { %v4676_v60 = vpop.f32.mrf.mxu1 }
 0xab3   : > { %v4790_v57 = vmul.f32 %v6418_v24, %v4786_v58  ;;  %v4687_v5 = vadd.f32 %v4676_v60, %v4580_v49  ;;  %v4789_v8 = vadd.f32 %v6163_v44, %v4688_v18  ;;  %v4777_v2 = vpop.f32.mrf.mxu0  ;;  %v5319_v44 = vld [vmem:[%s8168_s5 + $0x1] ss:$0 sm:$0xff] }
 0xab5   : > { %v4788_v1 = vadd.f32 %v4777_v2, %v4687_v5  ;;  %6172 = vmatprep.mubr.msk.f32.mxu1 %vm587_vm0, %v4790_v57  ;;  %v4793_v61 = vmul.f32 %v6424_v25, %v4789_v8 }
 0xab6   : > { %6173 = vmatmul.mubr.msk.f32.vlgmr.msra.gmra.mxu1 %vm587_vm0, %v4791_v36 }
 0xab7   : > { %v4792_v42 = vmul.f32 %v6422_v19, %v4788_v1 }
 0xab9   : > { %6175 = vmatprep.mubr.msk.f32.mxu1 %vm587_vm0, %v4792_v42 }
 0xaba   : > { %6176 = vmatmul.mubr.msk.f32.gmra.mxu1 %vm587_vm0, %v4793_v61 }
 0xb76   : > { %v6174_v0 = vpop.f32.mrf.mxu1 }
 0xb77   : > { %v4896_v34 = vadd.f32 %v6174_v0, %v7987_v13 }
 0xb78   : > { %v4876_v15 = vpop.f32.mrf.mxu1 }
 0xb79   : > { %v4905_v31 = vadd.f32 %v5318_v33, %v4896_v34  ;;  %v4895_v22 = vadd.f32 %v4876_v15, %v7990_v20  ;;  %v6436_v20 = vld [vmem:[%s6816_s11 + $0x10] sm:$0xff]  ;;  %s5327_s11 = sshll.u32 %s6688_s25, 9  ;;  %s6629_s25 = smov [#allocation11]  }
 0xb7a   : > { %v6177_v4 = vpop.f32.mrf.mxu1  ;;  %s8119_s10 = scalar_lea.hbm %s8169_s6, %s5327_s11  ;;  %s6547_s26 = sshll.u32 %s6629_s25, 4  ;;  %s6548_s26 = int_to_ptr.vmem [resolvable:$false] %s6547_s26 }
 0xb7b   : > { %v4904_v21 = vadd.f32 %v5318_v33, %v4895_v22  ;;  %v4898_v63 = vadd.f32 %v6177_v4, %v7993_v45  ;;  %v4909_v32 = vadd.f32 %v6433_v9, %v4905_v31  ;;  %s6549_s9 = scalar_lea.vmem %s6548_s26, 1024  ;;  %p6550_p1 = scmp.lt.s32.totalorder %s8121_s27, %s6548_s26 }
 0xb7c   : > { %v4886_v43 = vpop.f32.mrf.mxu1  ;;  %p6551_p2 = scmp.lt.s32.totalorder %s6549_s9, %s6543_s12 }
 0xb7d   : > { %v4907_v35 = vadd.f32 %v5318_v33, %v4898_v63  ;;  %v4897_v27 = vadd.f32 %v4886_v43, %v7996_v37  ;;  %4914 = vadd.xlane.f32.xlu0 %v4909_v32  ;;  %v4908_v17 = vadd.f32 %v6434_v40, %v4904_v21 }
 0xb7e   : > { %p6552_p5 = por %p6551_p2, %p6550_p1 }
 0xb7f   : > { %v4906_v13 = vadd.f32 %v5318_v33, %v4897_v27  ;;  %4912 = vadd.xlane.f32.xlu1 %v4908_v17  ;;  %v4911_v50 = vadd.f32 %v6435_v29, %v4907_v35 }
 0xb80   : > { %p6553_p9 = pnand %p6552_p5, %p6546_p0 }
 0xb81   : > { %4918 = vadd.xlane.f32.xlu0 %v4911_v50  ;;  %v4910_v14 = vadd.f32 %v6436_v20, %v4906_v13 }
 0xb83   : > { %4916 = vadd.xlane.f32.xlu1 %v4910_v14 }
 0xc06   : > { %v4915_v41 = vpop.xlane.xlu0 %4914 }
 0xc07   : > { %v4922_v3 = vmul.f32 0.0078125, %v4915_v41 }
 0xc08   : > { %v4913_v45 = vpop.xlane.xlu1 %4912 }
 0xc09   : > { %v4926_v59 = vsub.f32 %v4909_v32, %v4922_v3  ;;  %v4921_v23 = vmul.f32 0.0078125, %v4913_v45 }
 0xc0a   : > { %v4919_v10 = vpop.xlane.xlu0 %4918 }
 0xc0b   : > { %v4925_v12 = vsub.f32 %v4908_v17, %v4921_v23  ;;  %v4924_v16 = vmul.f32 0.0078125, %v4919_v10  ;;  %v4930_v37 = vmul.f32 %v4926_v59, %v4926_v59 }
 0xc0c   : > { %v4917_v30 = vpop.xlane.xlu1 %4916 }
 0xc0d   : > { %v4928_v55 = vsub.f32 %v4911_v50, %v4924_v16  ;;  %v4923_v7 = vmul.f32 0.0078125, %v4917_v30  ;;  %4935 = vadd.xlane.f32.xlu0 %v4930_v37  ;;  %v4929_v62 = vmul.f32 %v4925_v12, %v4925_v12 }
 0xc0f   : > { %v4927_v48 = vsub.f32 %v4910_v14, %v4923_v7  ;;  %4933 = vadd.xlane.f32.xlu1 %v4929_v62  ;;  %v4932_v47 = vmul.f32 %v4928_v55, %v4928_v55 }
 0xc11   : > { %4939 = vadd.xlane.f32.xlu0 %v4932_v47  ;;  %v4931_v54 = vmul.f32 %v4927_v48, %v4927_v48 }
 0xc13   : > { %4937 = vadd.xlane.f32.xlu1 %v4931_v54 }
 0xc96   : > { %v4936_v6 = vpop.xlane.xlu0 %4935 }
 0xc97   : > { %v4942_v46 = vmul.f32 0.0078125, %v4936_v6 }
 0xc98   : > { %v4934_v39 = vpop.xlane.xlu1 %4933 }
 0xc99   : > { %v4946_v53 = vadd.f32 1e-05, %v4942_v46  ;;  %v4941_v28 = vmul.f32 0.0078125, %v4934_v39 }
 0xc9a   : > { %v4940_v52 = vpop.xlane.xlu0 %4939 }
 0xc9b   : > { %6425 = vrsqrt.f32 %v4946_v53  ;;  %v4945_v38 = vadd.f32 1e-05, %v4941_v28  ;;  %v4944_v11 = vmul.f32 0.0078125, %v4940_v52 }
 0xc9c   : > { %v4938_v51 = vpop.xlane.xlu1 %4937 }
 0xc9d   : > { %6427 = vrsqrt.f32 %v4945_v38  ;;  %v4948_v56 = vadd.f32 1e-05, %v4944_v11  ;;  %v4943_v49 = vmul.f32 0.0078125, %v4938_v51 }
 0xc9f   : > { %6429 = vrsqrt.f32 %v4948_v56  ;;  %v4947_v58 = vadd.f32 1e-05, %v4943_v49 }
 0xca1   : > { %6431 = vrsqrt.f32 %v4947_v58 }
 0xca8   : > { %v6426_v18 = vpop.eup %6425 }
 0xca9   : > { %v4954_v24 = vmul.f32 %v6426_v18, %v4926_v59 }
 0xcaa   : > { %v6428_v60 = vpop.eup %6427 }
 0xcab   : > { %v4963_v57 = vmul.f32 %v5319_v44, %v4954_v24  ;;  %v4953_v5 = vmul.f32 %v6428_v60, %v4925_v12 }
 0xcac   : > { %v6430_v36 = vpop.eup %6429 }
 0xcad   : > { %v4972_v8 = vadd.f32 %v5320_v26, %v4963_v57  ;;  %v4962_v2 = vmul.f32 %v5319_v44, %v4953_v5  ;;  %v4956_v1 = vmul.f32 %v6430_v36, %v4928_v55 }
 0xcae   : > { %v6432_v19 = vpop.eup %6431 }
 0xcaf   : > { %4976 = vst [vmem:[%s313_s19 + $0x8] sm:$0xff] %v4972_v8  ;;  %v4971_v25 = vadd.f32 %v5320_v26, %v4962_v2  ;;  %v4965_v42 = vmul.f32 %v5319_v44, %v4956_v1  ;;  %v4955_v61 = vmul.f32 %v6432_v19, %v4927_v48 }
 0xcb1   : > { %4975 = vst [vmem:[%s313_s19] sm:$0xff] %v4971_v25  ;;  %v4974_v0 = vadd.f32 %v5320_v26, %v4965_v42  ;;  %v4964_v33 = vmul.f32 %v5319_v44, %v4955_v61 }
 0xcb3   : > { %4978 = vst [vmem:[%s313_s19 + $0x18] sm:$0xff] %v4974_v0  ;;  %v4973_v34 = vadd.f32 %v5320_v26, %v4964_v33 }
 0xcb5   : > { %4977 = vst [vmem:[%s313_s19 + $0x10] sm:$0xff] %v4973_v34 }
 0xcb6   : > { %6556 = shalt.err (!%p6553_p9)
}
 0xcb7   : > { %s6557_s15 = scalar_lea.hbm %s8119_s10, 512  ;;  %s6561_s20 = scalar_lea.hbm %s8169_s6, 2048 }
 0xcb8   : > { %p6558_p7 = scmp.ne.s32.totalorder %s8119_s10, %s6557_s15  ;;  %p6562_p6 = scmp.lt.s32.totalorder %s8119_s10, %s8169_s6 }
 0xcb9   : > { %p6563_p10 = scmp.lt.s32.totalorder %s6561_s20, %s6557_s15 }
 0xcba   : > { %p6559_p4 = pnand %p6558_p7, %p8327_p13 }
 0xcbb   : > { %p6564_p12 = por %p6563_p10, %p6562_p6 }
 0xcbc   : > { %p6560_p8 = pneg %p6559_p4 }
 0xcbe   : > { %p6565_p11 = pnand %p6564_p12, %p6560_p8 }
 0xcc0   : > { %6568 = shalt.err (!%p6565_p11)
}
 0xcc1   : > { %s6630_s29 = smov 128   ;;  %s6631_s30 = smov 8  }
 0xcc2   : > { %6192 = dma.vmem_to_hbm [thread:$0]  (%p8327_p13), %s8121_s27, 512, %s8119_s10, %s4980_s18, %s6630_s29, %s6630_s29, %s6631_s30  }
 0xcc3 PF: > { %p6219_p3 = scmp.ge.s32.totalorder %s6615_s24, 2  ;;  %s5008_s12 = sand.u32 1, %s6603_s21  }
 0xcc4   : > { %p8328_p0 = scmp.ne.s32.totalorder %s8240_s28, 0  ;;  %s5009_s25 = scalar_lea.sflag [#allocation5], %s5008_s12 }
 0xcc6   : > { %p6209_p1 = pnand %p6219_p3, %p8328_p0 }
 0xcc8   : > { %p6210_p2 = pneg %p6209_p1 }
 0xcca   : > { %6598 = dma.done.wait (%p6210_p2), %s5009_s25, 512  }
 0xccb   : > { %6600 = vsyncadd (%p6210_p2), %s5009_s25, 4294966784  ;;  %p21_p5 = scmp.ge.s32.totalorder %s6741_s7, 6   ;;  %s8329_s21 = smov %s6607_s22 }
 0xccc   : > { %s8330_s22 = smov %s6611_s23  ;;  %s8331_s23 = smov %s6762_s13 }
 0xccd   : > { %s8332_s24 = smov %s6741_s7  ;;  %23 = sbr.rel (!%p21_p5) target bundleno = 7 (0x7), region = 116 }
 0xcd2   :  { %5014 = vsyncpa [#allocation4], 1 }
 0xcd3   :  { %5016 = vsyncpa [#allocation4 + $0x1], 1 }
 0xcd4   :  { %5017 = vsyncpa [#allocation7], 1 }
 0xcd5   :  { %5018 = vsyncpa [#allocation10], 1 }
 0xcd6   :  { %5019 = vsyncpa [#allocation5], 1 }
 0xcd7   :  { %5021 = vsyncpa [#allocation5 + $0x1], 1 }

</bundles_post_ra>
